<compile_context>
chip_gen: v5e
topology: v5e:2x2
jax: 0.10.0
libtpu: 0.0.40
codegen_flags: <defaults>
</compile_context>

<pallas_src>
import functools

import jax
import jax.numpy as jnp
from jax.experimental import pallas as pl
from jax.experimental.pallas import tpu as pltpu


# ----------------------------------------------------------------------------
# Pallas kernels
# ----------------------------------------------------------------------------
def _mm_kernel(x_ref, w_ref, b_ref, o_ref, *, relu):
    # bf16 MXU inputs, f32 accumulation + epilogue; output stored in o_ref.dtype.
    acc = jnp.dot(x_ref[0], w_ref[0], preferred_element_type=jnp.float32)
    acc = acc + b_ref[0]
    if relu:
        acc = jnp.maximum(acc, 0.0)
    o_ref[0, :, :] = acc.astype(o_ref.dtype)


def _mm_stats_kernel(x_ref, w_ref, b_ref, o_ref, s_ref, *, relu, tm, m_valid):
    # conv + bias (+ReLU) and one-pass per-channel sum / sum-of-squares
    # (BatchNorm batch statistics) with padded rows masked out.
    acc = jnp.dot(x_ref[0], w_ref[0], preferred_element_type=jnp.float32)
    acc = acc + b_ref[0]
    if relu:
        acc = jnp.maximum(acc, 0.0)
    o_ref[0, :, :] = acc.astype(o_ref.dtype)

    row = pl.program_id(1) * tm + jax.lax.broadcasted_iota(jnp.int32, (tm, 1), 0)
    valid = (row < m_valid).astype(jnp.float32)
    xm = acc * valid
    s1 = jnp.sum(xm, axis=0, keepdims=True)          # (1, C)
    s2 = jnp.sum(xm * xm, axis=0, keepdims=True)     # (1, C)
    s_ref[0, :, :] = jnp.concatenate([s1, s2], axis=0)


def _block_kernel(p_ref, w1_ref, b1_ref, w2_ref, b2_ref, r_ref, o_ref):
    # Fused residual Block: out = residual + relu(relu(p@W1+b1) @ W2 + b2)
    h = jnp.dot(p_ref[...], w1_ref[...], preferred_element_type=jnp.float32)
    h = jnp.maximum(h + b1_ref[...], 0.0)
    y = jnp.dot(h.astype(w2_ref.dtype), w2_ref[...],
                preferred_element_type=jnp.float32)
    y = jnp.maximum(y + b2_ref[...], 0.0)
    o_ref[...] = (r_ref[...].astype(jnp.float32) + y).astype(o_ref.dtype)


def _affine_add_kernel(x_ref, s_ref, t_ref, r_ref, o_ref):
    # Fused BN apply + torch.add(body_out, x, alpha=0.5); lane-dense layout.
    x = x_ref[...].astype(jnp.float32)
    r = r_ref[...].astype(jnp.float32)
    o_ref[...] = (r + 0.5 * (x * s_ref[...] + t_ref[...])).astype(o_ref.dtype)


# ----------------------------------------------------------------------------
# Pallas wrappers
# ----------------------------------------------------------------------------
_VMEM_LIMIT = 48 * 1024 * 1024   # safe on v7x (64 MiB phys); generous on v5e/v6e


def _cparams(ndims):
    return pltpu.CompilerParams(
        dimension_semantics=("parallel",) * ndims,
        vmem_limit_bytes=_VMEM_LIMIT)


def _round_up(x, m):
    return ((x + m - 1) // m) * m


def _pick_tm(m, cap=4096):
    # Large tiles (otherwise per-step-overhead bound), >=2 grid steps whenever
    # m > 16 (v7x has two TensorCores), multiples of 16 so bf16 blocks match
    # the packed (16, 128) sublane tile.
    tm = _round_up((m + 1) // 2, 16)
    return max(16, min(tm, cap))


def pallas_matmul(patches, w2d, bias, *, relu, want_stats, out_dtype):
    """relu?(patches[g] @ w2d[g] + bias[g]) for every group g, one pallas_call.

    patches: (G, M, K) bf16; w2d: (G, K, C) bf16; bias: (G, C) f32.
    Optionally emits per-group per-channel (sum, sumsq) BN batch statistics as
    a fused per-tile epilogue output (reduced over tiles outside).
    """
    G, M, K = patches.shape
    C = w2d.shape[-1]
    TM = _pick_tm(M)
    Mp = _round_up(M, TM)
    if Mp != M:
        patches = jnp.pad(patches, ((0, 0), (0, Mp - M), (0, 0)))
    ntiles = Mp // TM
    b3 = bias.reshape(G, 1, C).astype(jnp.float32)

    x_spec = pl.BlockSpec((1, TM, K), lambda g, i: (g, i, 0))
    w_spec = pl.BlockSpec((1, K, C), lambda g, i: (g, 0, 0))
    b_spec = pl.BlockSpec((1, 1, C), lambda g, i: (g, 0, 0))
    o_spec = pl.BlockSpec((1, TM, C), lambda g, i: (g, i, 0))

    if want_stats:
        s_spec = pl.BlockSpec((1, 2, C), lambda g, i: (g * ntiles + i, 0, 0))
        out, stats = pl.pallas_call(
            functools.partial(_mm_stats_kernel, relu=relu, tm=TM, m_valid=M),
            grid=(G, ntiles),
            in_specs=[x_spec, w_spec, b_spec],
            out_specs=(o_spec, s_spec),
            out_shape=(jax.ShapeDtypeStruct((G, Mp, C), out_dtype),
                       jax.ShapeDtypeStruct((G * ntiles, 2, C), jnp.float32)),
            compiler_params=_cparams(2),
        )(patches, w2d, b3)
        stats = jnp.sum(stats.reshape(G, ntiles, 2, C), axis=1)   # (G, 2, C)
        return out[:, :M], stats

    out = pl.pallas_call(
        functools.partial(_mm_kernel, relu=relu),
        grid=(G, ntiles),
        in_specs=[x_spec, w_spec, b_spec],
        out_specs=o_spec,
        out_shape=jax.ShapeDtypeStruct((G, Mp, C), out_dtype),
        compiler_params=_cparams(2),
    )(patches, w2d, b3)
    return out[:, :M], None


def pallas_block(patches, w1_2d, b1, w2_2d, b2, residual,
                 out_dtype=jnp.bfloat16):
    """Fused residual Block on im2col patches of the 3x3 conv."""
    M, K1 = patches.shape
    Cexp = w1_2d.shape[1]
    Cch = w2_2d.shape[1]
    TM = _pick_tm(M)
    Mp = _round_up(M, TM)
    if Mp != M:
        patches = jnp.pad(patches, ((0, Mp - M), (0, 0)))
        residual = jnp.pad(residual, ((0, Mp - M), (0, 0)))
    ntiles = Mp // TM

    out = pl.pallas_call(
        _block_kernel,
        grid=(ntiles,),
        in_specs=[pl.BlockSpec((TM, K1), lambda i: (i, 0)),
                  pl.BlockSpec((K1, Cexp), lambda i: (0, 0)),
                  pl.BlockSpec((1, Cexp), lambda i: (0, 0)),
                  pl.BlockSpec((Cexp, Cch), lambda i: (0, 0)),
                  pl.BlockSpec((1, Cch), lambda i: (0, 0)),
                  pl.BlockSpec((TM, Cch), lambda i: (i, 0))],
        out_specs=pl.BlockSpec((TM, Cch), lambda i: (i, 0)),
        out_shape=jax.ShapeDtypeStruct((Mp, Cch), out_dtype),
        compiler_params=_cparams(1),
    )(patches, w1_2d, b1.reshape(1, Cexp).astype(jnp.float32),
      w2_2d, b2.reshape(1, Cch).astype(jnp.float32), residual)
    return out[:M]


def pallas_bn_add_half(y_nhwc, scale, shift, res_nhwc, out_dtype=jnp.bfloat16):
    """out = res + 0.5 * (y*scale + shift)   (fused BN apply + FPN merge).

    Lane-dense: whenever C divides 128 the (M, C) arrays are viewed as
    (M*C/128, 128) so every load/store is a full-lane (unmasked) op.
    """
    shp = y_nhwc.shape
    C = shp[-1]
    total = y_nhwc.size
    if 128 % C == 0 and total % 128 == 0:
        lane = 128
        rep = 128 // C
        s2 = jnp.tile(scale.astype(jnp.float32), rep).reshape(1, lane)
        t2 = jnp.tile(shift.astype(jnp.float32), rep).reshape(1, lane)
    else:
        lane = C
        s2 = scale.reshape(1, C).astype(jnp.float32)
        t2 = shift.reshape(1, C).astype(jnp.float32)
    x2 = y_nhwc.reshape(-1, lane)
    r2 = res_nhwc.reshape(-1, lane).astype(jnp.float32)
    M = x2.shape[0]
    TM = _pick_tm(M, cap=8192)
    Mp = _round_up(M, TM)
    if Mp != M:
        pad = ((0, Mp - M), (0, 0))
        x2 = jnp.pad(x2, pad)
        r2 = jnp.pad(r2, pad)

    out = pl.pallas_call(
        _affine_add_kernel,
        grid=(Mp // TM,),
        in_specs=[pl.BlockSpec((TM, lane), lambda i: (i, 0)),
                  pl.BlockSpec((1, lane), lambda i: (0, 0)),
                  pl.BlockSpec((1, lane), lambda i: (0, 0)),
                  pl.BlockSpec((TM, lane), lambda i: (i, 0))],
        out_specs=pl.BlockSpec((TM, lane), lambda i: (i, 0)),
        out_shape=jax.ShapeDtypeStruct((Mp, lane), out_dtype),
        compiler_params=_cparams(1),
    )(x2, s2, t2, r2)
    return out[:M].reshape(shp)


# ----------------------------------------------------------------------------
# Layer glue (patch extraction in XLA, compute in Pallas)
# ----------------------------------------------------------------------------
# TODO(synk): the im2col patch extraction and the depth-to-space interleave of
# the transposed conv remain XLA-side layout glue; moving the 3x3 im2col
# inside the kernels needs overlapping/halo BlockSpecs that were judged too
# risky here.  The deferred BN applies and bf16 casts fuse into these passes,
# so only one bf16 patch array per conv ever touches HBM.
def _im2col(x_bf16, kh, kw, stride, padding):
    N, H, W, Cin = x_bf16.shape
    xp = x_bf16 if padding == 0 else jnp.pad(
        x_bf16, ((0, 0), (padding, padding), (padding, padding), (0, 0)))
    Ho = (H + 2 * padding - kh) // stride + 1
    Wo = (W + 2 * padding - kw) // stride + 1
    cols = []
    for i in range(kh):
        for j in range(kw):
            cols.append(xp[:, i: i + stride * (Ho - 1) + 1: stride,
                              j: j + stride * (Wo - 1) + 1: stride, :])
    patches = jnp.concatenate(cols, axis=-1).reshape(N * Ho * Wo, kh * kw * Cin)
    return patches, Ho, Wo


def conv2d_grouped(xs, convs, stride, padding, *, relu, want_stats,
                   out_dtype=jnp.bfloat16):
    """G same-shape convs (different inputs + weights) in ONE pallas_call."""
    kh, kw = convs[0]["w"].shape[2], convs[0]["w"].shape[3]
    pats = []
    for x in xs:
        p, Ho, Wo = _im2col(x.astype(jnp.bfloat16), kh, kw, stride, padding)
        pats.append(p)
    patches = jnp.stack(pats)                                     # (G, M, K)
    w2d = jnp.stack([
        jnp.transpose(c["w"], (2, 3, 1, 0)).reshape(
            kh * kw * c["w"].shape[1], c["w"].shape[0])
        for c in convs]).astype(jnp.bfloat16)                     # (G, K, C)
    bias = jnp.stack([c["b"] for c in convs]).astype(jnp.float32)  # (G, C)
    out, stats = pallas_matmul(patches, w2d, bias, relu=relu,
                               want_stats=want_stats, out_dtype=out_dtype)
    N = xs[0].shape[0]
    Cout = convs[0]["w"].shape[0]
    outs = tuple(out[g].reshape(N, Ho, Wo, Cout) for g in range(len(xs)))
    return outs, stats, N * Ho * Wo


def conv2d(x, w, b, stride, padding, *, relu=True, want_stats=False,
           out_dtype=jnp.bfloat16):
    outs, stats, cnt = conv2d_grouped([x], [{"w": w, "b": b}], stride, padding,
                                      relu=relu, want_stats=want_stats,
                                      out_dtype=out_dtype)
    if want_stats:
        return outs[0], (stats[0], cnt)
    return outs[0]


def conv_transpose2d(x_nhwc, wt, b, *, want_stats=False,
                     out_dtype=jnp.bfloat16):
    """PyTorch ConvTranspose2d(k=3, stride=2, pad=1, output_pad=1) via sub-pixel
    (4-phase) decomposition: a single 2x2-tap matmul with a (4*Cin, 4*Cout)
    phase-combined weight on the ORIGINAL-resolution input (no zero-dilation)."""
    Cin, Cout, kh, kw = wt.shape
    xb = x_nhwc.astype(jnp.bfloat16)
    N, H, W, _ = xb.shape
    # equivalent forward-conv weight: flip spatially, swap in/out channels
    w_eq = jnp.transpose(wt[:, :, ::-1, ::-1], (1, 0, 2, 3))   # (Cout, Cin, 3, 3)

    def tap_idx(phase, d):
        if phase == 0:
            return 1 if d == 0 else None
        return 0 if d == 0 else 2

    Wc = jnp.zeros((2, 2, Cin, 2, 2, Cout), jnp.float32)
    for a in (0, 1):
        for bb in (0, 1):
            for dr in (0, 1):
                for dc in (0, 1):
                    p = tap_idx(a, dr)
                    q = tap_idx(bb, dc)
                    if p is None or q is None:
                        continue
                    Wc = Wc.at[dr, dc, :, a, bb, :].set(w_eq[:, :, p, q].T)
    w2d = Wc.reshape(1, 4 * Cin, 4 * Cout).astype(jnp.bfloat16)
    bias4 = jnp.tile(b, 4).reshape(1, 4 * Cout)

    xp = jnp.pad(xb, ((0, 0), (0, 1), (0, 1), (0, 0)))
    cols = [xp[:, dr: dr + H, dc: dc + W, :] for dr in (0, 1) for dc in (0, 1)]
    patches = jnp.concatenate(cols, axis=-1).reshape(1, N * H * W, 4 * Cin)

    out2d, stats = pallas_matmul(patches, w2d, bias4, relu=True,
                                 want_stats=want_stats, out_dtype=out_dtype)
    out = out2d.reshape(N, H, W, 2, 2, Cout)
    # TODO(synk): the depth-to-space interleave stays in XLA; it fuses with the
    # consumer's patch build except when feeding the merge kernel directly.
    out = jnp.transpose(out, (0, 1, 3, 2, 4, 5)).reshape(N, 2 * H, 2 * W, Cout)
    if want_stats:
        st = stats[0].reshape(2, 4, Cout).sum(axis=1)   # fold the 4 phases
        return out, (st, N * H * W * 4)
    return out


def bn_scale_shift(stats, count, gamma, beta, eps=1e-5):
    """Training-mode BatchNorm2d (biased batch variance) folded to scale/shift.

    stats[..., 0, :] = per-channel sum, stats[..., 1, :] = per-channel sumsq.
    """
    s1 = stats[..., 0, :]
    s2 = stats[..., 1, :]
    mean = s1 / count
    var = jnp.maximum(s2 / count - mean * mean, 0.0)
    scale = gamma * jax.lax.rsqrt(var + eps)
    shift = beta - mean * scale
    return scale, shift


def block_forward(x_nhwc, blk):
    """Fused residual Block (conv3x3+ReLU -> conv1x1+ReLU -> +residual)."""
    xb = x_nhwc.astype(jnp.bfloat16)
    N, H, W, Cch = xb.shape
    w1 = blk["c1"]["w"]                              # (Cexp, Cch, 3, 3)
    Cexp = w1.shape[0]
    patches, _, _ = _im2col(xb, 3, 3, 1, 1)
    w1_2d = jnp.transpose(w1, (2, 3, 1, 0)).reshape(9 * Cch, Cexp)
    w2_2d = jnp.transpose(blk["c2"]["w"].reshape(Cch, Cexp), (1, 0))  # (Cexp, Cch)
    res = xb.reshape(N * H * W, Cch)
    out = pallas_block(patches, w1_2d.astype(jnp.bfloat16), blk["c1"]["b"],
                       w2_2d.astype(jnp.bfloat16), blk["c2"]["b"], res)
    return out.reshape(N, H, W, Cch)


def conv_bn_layer(x_nhwc, conv_p, bn_p, stride, padding):
    """Conv -> ReLU -> BatchNorm.

    The BN batch statistics are a fused epilogue output of the conv kernel; the
    affine apply is deliberately left as a plain jnp expression so XLA fuses it
    into the consumer's im2col / bf16 cast (no standalone HBM round trip)."""
    y, (stats, cnt) = conv2d(x_nhwc, conv_p["w"], conv_p["b"], stride, padding,
                             relu=True, want_stats=True)
    scale, shift = bn_scale_shift(stats, cnt, bn_p["gamma"], bn_p["beta"])
    return y.astype(jnp.float32) * scale + shift


# ----------------------------------------------------------------------------
# Parameter construction (deterministic, mirrors rHnetFPN.__init__ shapes)
# ----------------------------------------------------------------------------
class _KeyGen:
    def __init__(self, key):
        self._key = key

    def next(self):
        self._key, k = jax.random.split(self._key)
        return k


def _make_conv(kg, cin, cout, k):
    n = k * k * cout
    w = jax.random.normal(kg.next(), (cout, cin, k, k), jnp.float32) * (2.0 / n) ** 0.5
    b = 0.05 * jax.random.normal(kg.next(), (cout,), jnp.float32)
    return {"w": w, "b": b}


def _make_convT(kg, cin, cout, k):
    n = k * k * cout
    w = jax.random.normal(kg.next(), (cin, cout, k, k), jnp.float32) * (2.0 / n) ** 0.5
    b = 0.05 * jax.random.normal(kg.next(), (cout,), jnp.float32)
    return {"w": w, "b": b}


def _make_bn(c):
    return {"gamma": jnp.ones((c,), jnp.float32), "beta": jnp.zeros((c,), jnp.float32)}


def init_params(cfg, key):
    kg = _KeyGen(key)
    p = {}
    stem_dimsx = [cfg["in_channels"]] + cfg["stem_dims"]
    p["stem"] = [
        {"conv": _make_conv(kg, stem_dimsx[i], stem_dimsx[i + 1], 3),
         "bn": _make_bn(stem_dimsx[i + 1])}
        for i in range(len(stem_dimsx) - 1)
    ]
    dimsx = [cfg["stem_dims"][-1]] + cfg["dims"]
    p["body"] = []
    for i in range(len(cfg["depths"])):
        blocks = []
        for _ in range(cfg["depths"][i]):
            blocks.append({
                "c1": _make_conv(kg, dimsx[i], dimsx[i] * cfg["expand"], 3),
                "c2": _make_conv(kg, dimsx[i] * cfg["expand"], dimsx[i], 1),
            })
        p["body"].append({
            "blocks": blocks,
            "down": _make_conv(kg, dimsx[i], dimsx[i + 1], 3),
            "bn": _make_bn(dimsx[i + 1]),
        })
    fpn_dimsx = [cfg["dims"][-1]] + cfg["fpn_dims"]
    p["downscale"], p["upscale"] = [], []
    for i in range(len(cfg["fpn_dims"])):
        p["downscale"].append({
            "conv": _make_conv(kg, fpn_dimsx[i], fpn_dimsx[i + 1], 3),
            "bn": _make_bn(fpn_dimsx[i + 1]),
        })
        p["upscale"].append({
            "convt": _make_convT(kg, fpn_dimsx[-i - 1], fpn_dimsx[-i - 2], 3),
            "bn": _make_bn(fpn_dimsx[-i - 2]),
        })
    class_dimsx = [cfg["dims"][-1]] + cfg["class_dims"]
    p["head1"], p["head2"], p["head3"] = [], [], []
    for i in range(len(class_dimsx) - 1):
        for name in ("head1", "head2", "head3"):
            p[name].append({
                "conv": _make_conv(kg, class_dimsx[i], class_dimsx[i + 1], 3),
                "bn": _make_bn(class_dimsx[i + 1]),
            })
    p["head1"].append({"conv": _make_conv(kg, class_dimsx[-1], 1, 3)})
    p["head2"].append({"conv": _make_conv(kg, class_dimsx[-1], 2, 3)})
    p["head3"].append({"conv": _make_conv(kg, class_dimsx[-1], 2, 3)})
    return p


# ----------------------------------------------------------------------------
# Forward pass (mirrors rHnetFPN.forward; note the reference routes x3 through
# head2, so x3 == x2 and is computed once and duplicated at the final concat)
# ----------------------------------------------------------------------------
def rhnet_fpn_forward(params, x_nchw):
    x = jnp.transpose(x_nchw, (0, 2, 3, 1)).astype(jnp.float32)   # NCHW -> NHWC

    # stem: Conv(s2) -> ReLU -> BN
    for layer in params["stem"]:
        x = conv_bn_layer(x, layer["conv"], layer["bn"], stride=2, padding=1)

    # body: [fused Block]*depth -> Conv(s2) -> ReLU -> BN
    for sec in params["body"]:
        for blk in sec["blocks"]:
            x = block_forward(x, blk)
        x = conv_bn_layer(x, sec["down"], sec["bn"], stride=2, padding=1)

    body_out = x        # f32 residual of the FPN merge

    # FPN down
    for layer in params["downscale"]:
        x = conv_bn_layer(x, layer["conv"], layer["bn"], stride=2, padding=1)

    # FPN up; the last BN apply is fused with torch.add(body_out, x, alpha=0.5)
    ups = params["upscale"]
    for idx, layer in enumerate(ups):
        y, (stats, cnt) = conv_transpose2d(x, layer["convt"]["w"],
                                           layer["convt"]["b"], want_stats=True)
        scale, shift = bn_scale_shift(stats, cnt, layer["bn"]["gamma"],
                                      layer["bn"]["beta"])
        if idx == len(ups) - 1:
            x = pallas_bn_add_half(y, scale, shift, body_out)
        else:
            x = y.astype(jnp.float32) * scale + shift     # deferred BN apply
    if not ups:   # degenerate config: x = body_out + 0.5 * x
        x = body_out + 0.5 * x

    # heads
    n_head = len(params["head1"])
    if n_head == 1:
        h1f, h2f = params["head1"][0], params["head2"][0]
        x1 = conv2d(x, h1f["conv"]["w"], h1f["conv"]["b"], 1, 1,
                    relu=False, out_dtype=jnp.float32)
        x2 = conv2d(x, h2f["conv"]["w"], h2f["conv"]["b"], 1, 1,
                    relu=False, out_dtype=jnp.float32)
    else:
        # stage 0: x == x2 == x3 -> run head1[0] and head2[0] as ONE wider conv
        h1, h2 = params["head1"][0], params["head2"][0]
        w_cat = jnp.concatenate([h1["conv"]["w"], h2["conv"]["w"]], axis=0)
        b_cat = jnp.concatenate([h1["conv"]["b"], h2["conv"]["b"]], axis=0)
        g_cat = jnp.concatenate([h1["bn"]["gamma"], h2["bn"]["gamma"]], axis=0)
        be_cat = jnp.concatenate([h1["bn"]["beta"], h2["bn"]["beta"]], axis=0)
        y, (stats, cnt) = conv2d(x, w_cat, b_cat, 1, 1,
                                 relu=True, want_stats=True)
        scale, shift = bn_scale_shift(stats, cnt, g_cat, be_cat)
        yb = y.astype(jnp.float32) * scale + shift          # deferred BN apply
        cd = h1["conv"]["w"].shape[0]
        x1, x2 = yb[..., :cd], yb[..., cd:]

        # middle stages: head1[i] and head2[i] batched into ONE pallas_call
        for i in range(1, n_head - 1):
            p1, p2 = params["head1"][i], params["head2"][i]
            (y1, y2), stats, cnt = conv2d_grouped(
                [x1, x2], [p1["conv"], p2["conv"]], 1, 1,
                relu=True, want_stats=True)
            gam = jnp.stack([p1["bn"]["gamma"], p2["bn"]["gamma"]])
            bet = jnp.stack([p1["bn"]["beta"], p2["bn"]["beta"]])
            scale, shift = bn_scale_shift(stats, cnt, gam, bet)   # (2, C)
            x1 = y1.astype(jnp.float32) * scale[0] + shift[0]
            x2 = y2.astype(jnp.float32) * scale[1] + shift[1]

        # final convs (no ReLU / BN), batched; head1's Cout=1 padded to 2
        h1f, h2f = params["head1"][-1], params["head2"][-1]
        w1p = jnp.pad(h1f["conv"]["w"], ((0, 1), (0, 0), (0, 0), (0, 0)))
        b1p = jnp.pad(h1f["conv"]["b"], ((0, 1),))
        (o1, o2), _, _ = conv2d_grouped(
            [x1, x2], [{"w": w1p, "b": b1p}, h2f["conv"]], 1, 1,
            relu=False, want_stats=False, out_dtype=jnp.float32)
        x1 = o1[..., :1]
        x2 = o2

    out = jnp.concatenate([x1, x2, x2], axis=-1)     # x3 == x2 (dedup)
    return jnp.transpose(out, (0, 3, 1, 2))          # NHWC -> NCHW


# ----------------------------------------------------------------------------
# main
# ----------------------------------------------------------------------------
if __name__ == "__main__":
    cfg = dict(
        depths=[1, 1],
        stem_dims=[8, 8],
        dims=[8, 16],
        fpn_dims=[16],
        in_channels=3,
        class_dims=[16, 8],
        expand=2,
    )
    key = jax.random.PRNGKey(0)
    k_param, k_input = jax.random.split(key)
    params = init_params(cfg, k_param)

    # input (N, C, H, W); H, W divisible by 2**(stem + body + fpn) = 32
    x = jax.random.normal(k_input, (2, 3, 32, 32), jnp.float32)

    fwd = jax.jit(rhnet_fpn_forward)
    out = jax.block_until_ready(fwd(params, x))

    expected = (2, 1 + 2 + 2, 32 // 16, 32 // 16)
    assert out.shape == expected, (out.shape, expected)
    assert bool(jnp.all(jnp.isfinite(out)))
    print("KERNEL_OK")
</pallas_src>

<mosaic_0001>
module attributes {stable_mosaic.version = 11 : i64} {
  func.func @_mm_stats_kernel(%arg0: i32, %arg1: i32, %arg2: memref<1x256x27xbf16, #tpu.memory_space<vmem>>, %arg3: memref<1x27x8xbf16, #tpu.memory_space<vmem>>, %arg4: memref<1x1x8xf32, #tpu.memory_space<vmem>>, %arg5: memref<1x256x8xbf16, #tpu.memory_space<vmem>>, %arg6: memref<1x2x8xf32, #tpu.memory_space<vmem>>) attributes {dimension_semantics = [#tpu.dimension_semantics<parallel>, #tpu.dimension_semantics<parallel>], iteration_bounds = array<i64: 1, 2>, scalar_prefetch = 0 : i64, scratch_operands = 0 : i64, tpu.core_type = #tpu.core_type<tc>, window_params = [{transform_indices = @transform_0, window_bounds = array<i64: 1, 256, 27>}, {transform_indices = @transform_1, window_bounds = array<i64: 1, 27, 8>}, {transform_indices = @transform_2, window_bounds = array<i64: 1, 1, 8>}, {transform_indices = @transform_3, window_bounds = array<i64: 1, 256, 8>}, {transform_indices = @transform_4, window_bounds = array<i64: 1, 2, 8>}]} {
    %c0 = arith.constant 0 : index
    %c0_0 = arith.constant 0 : index
    %c0_1 = arith.constant 0 : index
    %0 = vector.load %arg2[%c0, %c0_0, %c0_1] : memref<1x256x27xbf16, #tpu.memory_space<vmem>>, vector<1x256x27xbf16>
    %1 = vector.shape_cast %0 : vector<1x256x27xbf16> to vector<256x27xbf16>
    %c0_2 = arith.constant 0 : index
    %c0_3 = arith.constant 0 : index
    %c0_4 = arith.constant 0 : index
    %2 = vector.load %arg3[%c0_2, %c0_3, %c0_4] : memref<1x27x8xbf16, #tpu.memory_space<vmem>>, vector<1x27x8xbf16>
    %3 = vector.shape_cast %2 : vector<1x27x8xbf16> to vector<27x8xbf16>
    %cst = arith.constant dense<0.000000e+00> : vector<256x8xf32>
    %4 = tpu.matmul %1, %3, %cst {dimension_numbers = #tpu.dot_dimension_numbers<[1], [0], [0], [1], [0, 0, 1, 1], [], []>} : vector<256x27xbf16>, vector<27x8xbf16>, vector<256x8xf32> -> vector<256x8xf32>
    %c0_5 = arith.constant 0 : index
    %c0_6 = arith.constant 0 : index
    %c0_7 = arith.constant 0 : index
    %5 = vector.load %arg4[%c0_5, %c0_6, %c0_7] : memref<1x1x8xf32, #tpu.memory_space<vmem>>, vector<1x1x8xf32>
    %6 = vector.shape_cast %5 : vector<1x1x8xf32> to vector<1x8xf32>
    %7 = vector.broadcast %6 : vector<1x8xf32> to vector<256x8xf32>
    %8 = arith.addf %4, %7 : vector<256x8xf32>
    %cst_8 = arith.constant 0.000000e+00 : f32
    %9 = vector.broadcast %cst_8 : f32 to vector<256x8xf32>
    %10 = arith.maximumf %8, %9 : vector<256x8xf32>
    %11 = arith.truncf %10 : vector<256x8xf32> to vector<256x8xbf16>
    %c0_9 = arith.constant 0 : index
    %c0_10 = arith.constant 0 : index
    %c0_11 = arith.constant 0 : index
    %12 = vector.load %arg5[%c0_9, %c0_10, %c0_11] : memref<1x256x8xbf16, #tpu.memory_space<vmem>>, vector<1x256x8xbf16>
    %13 = vector.shape_cast %12 : vector<1x256x8xbf16> to vector<256x8xbf16>
    %14 = vector.shape_cast %11 : vector<256x8xbf16> to vector<1x256x8xbf16>
    tpu.vector_store %arg5[%c0_9, %c0_10, %c0_11], %14 {strides = array<i32>} : memref<1x256x8xbf16, #tpu.memory_space<vmem>>, vector<1x256x8xbf16>,
    %c256_i32 = arith.constant 256 : i32
    %15 = arith.muli %arg1, %c256_i32 : i32
    %16 = tpu.iota {dimensions = array<i32: 0>} : vector<256x1xi32>
    %17 = vector.broadcast %15 : i32 to vector<256x1xi32>
    %18 = arith.addi %17, %16 : vector<256x1xi32>
    %c512_i32 = arith.constant 512 : i32
    %19 = vector.broadcast %c512_i32 : i32 to vector<256x1xi32>
    %20 = arith.cmpi slt, %18, %19 : vector<256x1xi32>
    %21 = arith.extui %20 : vector<256x1xi1> to vector<256x1xi32>
    %22 = arith.sitofp %21 : vector<256x1xi32> to vector<256x1xf32>
    %23 = vector.broadcast %22 : vector<256x1xf32> to vector<256x8xf32>
    %24 = arith.mulf %10, %23 : vector<256x8xf32>
    %cst_12 = arith.constant dense<0.000000e+00> : vector<8xf32>
    %25 = vector.multi_reduction <add>, %24, %cst_12 [0] : vector<256x8xf32> to vector<8xf32>
    %26 = vector.shape_cast %25 : vector<8xf32> to vector<1x8xf32>
    %27 = arith.mulf %24, %24 : vector<256x8xf32>
    %cst_13 = arith.constant dense<0.000000e+00> : vector<8xf32>
    %28 = vector.multi_reduction <add>, %27, %cst_13 [0] : vector<256x8xf32> to vector<8xf32>
    %29 = vector.shape_cast %28 : vector<8xf32> to vector<1x8xf32>
    %30 = tpu.concatenate %26, %29 in 0 : vector<1x8xf32>, vector<1x8xf32> -> vector<2x8xf32>
    %c0_14 = arith.constant 0 : index
    %c0_15 = arith.constant 0 : index
    %c0_16 = arith.constant 0 : index
    %31 = vector.load %arg6[%c0_14, %c0_15, %c0_16] : memref<1x2x8xf32, #tpu.memory_space<vmem>>, vector<1x2x8xf32>
    %32 = vector.shape_cast %31 : vector<1x2x8xf32> to vector<2x8xf32>
    %33 = vector.shape_cast %30 : vector<2x8xf32> to vector<1x2x8xf32>
    tpu.vector_store %arg6[%c0_14, %c0_15, %c0_16], %33 {strides = array<i32>} : memref<1x2x8xf32, #tpu.memory_space<vmem>>, vector<1x2x8xf32>,
    return
  }
  func.func @transform_0(%arg0: i32, %arg1: i32) -> (i32, i32, i32) {
    %c0_i32 = arith.constant 0 : i32
    %c0_i32_0 = arith.constant 0 : i32
    return %arg0, %arg1, %c0_i32 : i32, i32, i32
  }
  func.func @transform_1(%arg0: i32, %arg1: i32) -> (i32, i32, i32) {
    %c0_i32 = arith.constant 0 : i32
    %c0_i32_0 = arith.constant 0 : i32
    %c0_i32_1 = arith.constant 0 : i32
    return %arg0, %c0_i32, %c0_i32_0 : i32, i32, i32
  }
  func.func @transform_2(%arg0: i32, %arg1: i32) -> (i32, i32, i32) {
    %c0_i32 = arith.constant 0 : i32
    %c0_i32_0 = arith.constant 0 : i32
    %c0_i32_1 = arith.constant 0 : i32
    return %arg0, %c0_i32, %c0_i32_0 : i32, i32, i32
  }
  func.func @transform_3(%arg0: i32, %arg1: i32) -> (i32, i32, i32) {
    %c0_i32 = arith.constant 0 : i32
    %c0_i32_0 = arith.constant 0 : i32
    return %arg0, %arg1, %c0_i32 : i32, i32, i32
  }
  func.func @transform_4(%arg0: i32, %arg1: i32) -> (i32, i32, i32) {
    %c2_i32 = arith.constant 2 : i32
    %0 = arith.muli %arg0, %c2_i32 : i32
    %1 = arith.addi %0, %arg1 : i32
    %c0_i32 = arith.constant 0 : i32
    %c0_i32_0 = arith.constant 0 : i32
    %c0_i32_1 = arith.constant 0 : i32
    return %1, %c0_i32, %c0_i32_0 : i32, i32, i32
  }
}

module attributes {stable_mosaic.version = 11 : i64} {
  func.func @_mm_stats_kernel(%arg0: i32, %arg1: i32, %arg2: memref<1x64x72xbf16, #tpu.memory_space<vmem>>, %arg3: memref<1x72x8xbf16, #tpu.memory_space<vmem>>, %arg4: memref<1x1x8xf32, #tpu.memory_space<vmem>>, %arg5: memref<1x64x8xbf16, #tpu.memory_space<vmem>>, %arg6: memref<1x2x8xf32, #tpu.memory_space<vmem>>) attributes {dimension_semantics = [#tpu.dimension_semantics<parallel>, #tpu.dimension_semantics<parallel>], iteration_bounds = array<i64: 1, 2>, scalar_prefetch = 0 : i64, scratch_operands = 0 : i64, tpu.core_type = #tpu.core_type<tc>, window_params = [{transform_indices = @transform_0, window_bounds = array<i64: 1, 64, 72>}, {transform_indices = @transform_1, window_bounds = array<i64: 1, 72, 8>}, {transform_indices = @transform_2, window_bounds = array<i64: 1, 1, 8>}, {transform_indices = @transform_3, window_bounds = array<i64: 1, 64, 8>}, {transform_indices = @transform_4, window_bounds = array<i64: 1, 2, 8>}]} {
    %c0 = arith.constant 0 : index
    %c0_0 = arith.constant 0 : index
    %c0_1 = arith.constant 0 : index
    %0 = vector.load %arg2[%c0, %c0_0, %c0_1] : memref<1x64x72xbf16, #tpu.memory_space<vmem>>, vector<1x64x72xbf16>
    %1 = vector.shape_cast %0 : vector<1x64x72xbf16> to vector<64x72xbf16>
    %c0_2 = arith.constant 0 : index
    %c0_3 = arith.constant 0 : index
    %c0_4 = arith.constant 0 : index
    %2 = vector.load %arg3[%c0_2, %c0_3, %c0_4] : memref<1x72x8xbf16, #tpu.memory_space<vmem>>, vector<1x72x8xbf16>
    %3 = vector.shape_cast %2 : vector<1x72x8xbf16> to vector<72x8xbf16>
    %cst = arith.constant dense<0.000000e+00> : vector<64x8xf32>
    %4 = tpu.matmul %1, %3, %cst {dimension_numbers = #tpu.dot_dimension_numbers<[1], [0], [0], [1], [0, 0, 1, 1], [], []>} : vector<64x72xbf16>, vector<72x8xbf16>, vector<64x8xf32> -> vector<64x8xf32>
    %c0_5 = arith.constant 0 : index
    %c0_6 = arith.constant 0 : index
    %c0_7 = arith.constant 0 : index
    %5 = vector.load %arg4[%c0_5, %c0_6, %c0_7] : memref<1x1x8xf32, #tpu.memory_space<vmem>>, vector<1x1x8xf32>
    %6 = vector.shape_cast %5 : vector<1x1x8xf32> to vector<1x8xf32>
    %7 = vector.broadcast %6 : vector<1x8xf32> to vector<64x8xf32>
    %8 = arith.addf %4, %7 : vector<64x8xf32>
    %cst_8 = arith.constant 0.000000e+00 : f32
    %9 = vector.broadcast %cst_8 : f32 to vector<64x8xf32>
    %10 = arith.maximumf %8, %9 : vector<64x8xf32>
    %11 = arith.truncf %10 : vector<64x8xf32> to vector<64x8xbf16>
    %c0_9 = arith.constant 0 : index
    %c0_10 = arith.constant 0 : index
    %c0_11 = arith.constant 0 : index
    %12 = vector.load %arg5[%c0_9, %c0_10, %c0_11] : memref<1x64x8xbf16, #tpu.memory_space<vmem>>, vector<1x64x8xbf16>
    %13 = vector.shape_cast %12 : vector<1x64x8xbf16> to vector<64x8xbf16>
    %14 = vector.shape_cast %11 : vector<64x8xbf16> to vector<1x64x8xbf16>
    tpu.vector_store %arg5[%c0_9, %c0_10, %c0_11], %14 {strides = array<i32>} : memref<1x64x8xbf16, #tpu.memory_space<vmem>>, vector<1x64x8xbf16>,
    %c64_i32 = arith.constant 64 : i32
    %15 = arith.muli %arg1, %c64_i32 : i32
    %16 = tpu.iota {dimensions = array<i32: 0>} : vector<64x1xi32>
    %17 = vector.broadcast %15 : i32 to vector<64x1xi32>
    %18 = arith.addi %17, %16 : vector<64x1xi32>
    %c128_i32 = arith.constant 128 : i32
    %19 = vector.broadcast %c128_i32 : i32 to vector<64x1xi32>
    %20 = arith.cmpi slt, %18, %19 : vector<64x1xi32>
    %21 = arith.extui %20 : vector<64x1xi1> to vector<64x1xi32>
    %22 = arith.sitofp %21 : vector<64x1xi32> to vector<64x1xf32>
    %23 = vector.broadcast %22 : vector<64x1xf32> to vector<64x8xf32>
    %24 = arith.mulf %10, %23 : vector<64x8xf32>
    %cst_12 = arith.constant dense<0.000000e+00> : vector<8xf32>
    %25 = vector.multi_reduction <add>, %24, %cst_12 [0] : vector<64x8xf32> to vector<8xf32>
    %26 = vector.shape_cast %25 : vector<8xf32> to vector<1x8xf32>
    %27 = arith.mulf %24, %24 : vector<64x8xf32>
    %cst_13 = arith.constant dense<0.000000e+00> : vector<8xf32>
    %28 = vector.multi_reduction <add>, %27, %cst_13 [0] : vector<64x8xf32> to vector<8xf32>
    %29 = vector.shape_cast %28 : vector<8xf32> to vector<1x8xf32>
    %30 = tpu.concatenate %26, %29 in 0 : vector<1x8xf32>, vector<1x8xf32> -> vector<2x8xf32>
    %c0_14 = arith.constant 0 : index
    %c0_15 = arith.constant 0 : index
    %c0_16 = arith.constant 0 : index
    %31 = vector.load %arg6[%c0_14, %c0_15, %c0_16] : memref<1x2x8xf32, #tpu.memory_space<vmem>>, vector<1x2x8xf32>
    %32 = vector.shape_cast %31 : vector<1x2x8xf32> to vector<2x8xf32>
    %33 = vector.shape_cast %30 : vector<2x8xf32> to vector<1x2x8xf32>
    tpu.vector_store %arg6[%c0_14, %c0_15, %c0_16], %33 {strides = array<i32>} : memref<1x2x8xf32, #tpu.memory_space<vmem>>, vector<1x2x8xf32>,
    return
  }
  func.func @transform_0(%arg0: i32, %arg1: i32) -> (i32, i32, i32) {
    %c0_i32 = arith.constant 0 : i32
    %c0_i32_0 = arith.constant 0 : i32
    return %arg0, %arg1, %c0_i32 : i32, i32, i32
  }
  func.func @transform_1(%arg0: i32, %arg1: i32) -> (i32, i32, i32) {
    %c0_i32 = arith.constant 0 : i32
    %c0_i32_0 = arith.constant 0 : i32
    %c0_i32_1 = arith.constant 0 : i32
    return %arg0, %c0_i32, %c0_i32_0 : i32, i32, i32
  }
  func.func @transform_2(%arg0: i32, %arg1: i32) -> (i32, i32, i32) {
    %c0_i32 = arith.constant 0 : i32
    %c0_i32_0 = arith.constant 0 : i32
    %c0_i32_1 = arith.constant 0 : i32
    return %arg0, %c0_i32, %c0_i32_0 : i32, i32, i32
  }
  func.func @transform_3(%arg0: i32, %arg1: i32) -> (i32, i32, i32) {
    %c0_i32 = arith.constant 0 : i32
    %c0_i32_0 = arith.constant 0 : i32
    return %arg0, %arg1, %c0_i32 : i32, i32, i32
  }
  func.func @transform_4(%arg0: i32, %arg1: i32) -> (i32, i32, i32) {
    %c2_i32 = arith.constant 2 : i32
    %0 = arith.muli %arg0, %c2_i32 : i32
    %1 = arith.addi %0, %arg1 : i32
    %c0_i32 = arith.constant 0 : i32
    %c0_i32_0 = arith.constant 0 : i32
    %c0_i32_1 = arith.constant 0 : i32
    return %1, %c0_i32, %c0_i32_0 : i32, i32, i32
  }
}

module attributes {stable_mosaic.version = 11 : i64} {
  func.func @_block_kernel(%arg0: i32, %arg1: memref<64x72xbf16, #tpu.memory_space<vmem>>, %arg2: memref<72x16xbf16, #tpu.memory_space<vmem>>, %arg3: memref<1x16xf32, #tpu.memory_space<vmem>>, %arg4: memref<16x8xbf16, #tpu.memory_space<vmem>>, %arg5: memref<1x8xf32, #tpu.memory_space<vmem>>, %arg6: memref<64x8xbf16, #tpu.memory_space<vmem>>, %arg7: memref<64x8xbf16, #tpu.memory_space<vmem>>) attributes {dimension_semantics = [#tpu.dimension_semantics<parallel>], iteration_bounds = array<i64: 2>, scalar_prefetch = 0 : i64, scratch_operands = 0 : i64, tpu.core_type = #tpu.core_type<tc>, window_params = [{transform_indices = @transform_0, window_bounds = array<i64: 64, 72>}, {pipeline_mode = #tpu.pipeline_mode<synchronous>, transform_indices = @transform_1, window_bounds = array<i64: 72, 16>}, {pipeline_mode = #tpu.pipeline_mode<synchronous>, transform_indices = @transform_2, window_bounds = array<i64: 1, 16>}, {pipeline_mode = #tpu.pipeline_mode<synchronous>, transform_indices = @transform_3, window_bounds = array<i64: 16, 8>}, {pipeline_mode = #tpu.pipeline_mode<synchronous>, transform_indices = @transform_4, window_bounds = array<i64: 1, 8>}, {transform_indices = @transform_5, window_bounds = array<i64: 64, 8>}, {transform_indices = @transform_6, window_bounds = array<i64: 64, 8>}]} {
    %c0 = arith.constant 0 : index
    %c0_0 = arith.constant 0 : index
    %0 = vector.load %arg1[%c0, %c0_0] : memref<64x72xbf16, #tpu.memory_space<vmem>>, vector<64x72xbf16>
    %c0_1 = arith.constant 0 : index
    %c0_2 = arith.constant 0 : index
    %1 = vector.load %arg2[%c0_1, %c0_2] : memref<72x16xbf16, #tpu.memory_space<vmem>>, vector<72x16xbf16>
    %cst = arith.constant dense<0.000000e+00> : vector<64x16xf32>
    %2 = tpu.matmul %0, %1, %cst {dimension_numbers = #tpu.dot_dimension_numbers<[1], [0], [0], [1], [0, 0, 1, 1], [], []>} : vector<64x72xbf16>, vector<72x16xbf16>, vector<64x16xf32> -> vector<64x16xf32>
    %c0_3 = arith.constant 0 : index
    %c0_4 = arith.constant 0 : index
    %3 = vector.load %arg3[%c0_3, %c0_4] : memref<1x16xf32, #tpu.memory_space<vmem>>, vector<1x16xf32>
    %4 = vector.broadcast %3 : vector<1x16xf32> to vector<64x16xf32>
    %5 = arith.addf %2, %4 : vector<64x16xf32>
    %cst_5 = arith.constant 0.000000e+00 : f32
    %6 = vector.broadcast %cst_5 : f32 to vector<64x16xf32>
    %7 = arith.maximumf %5, %6 : vector<64x16xf32>
    %8 = arith.truncf %7 : vector<64x16xf32> to vector<64x16xbf16>
    %c0_6 = arith.constant 0 : index
    %c0_7 = arith.constant 0 : index
    %9 = vector.load %arg4[%c0_6, %c0_7] : memref<16x8xbf16, #tpu.memory_space<vmem>>, vector<16x8xbf16>
    %cst_8 = arith.constant dense<0.000000e+00> : vector<64x8xf32>
    %10 = tpu.matmul %8, %9, %cst_8 {dimension_numbers = #tpu.dot_dimension_numbers<[1], [0], [0], [1], [0, 0, 1, 1], [], []>} : vector<64x16xbf16>, vector<16x8xbf16>, vector<64x8xf32> -> vector<64x8xf32>
    %c0_9 = arith.constant 0 : index
    %c0_10 = arith.constant 0 : index
    %11 = vector.load %arg5[%c0_9, %c0_10] : memref<1x8xf32, #tpu.memory_space<vmem>>, vector<1x8xf32>
    %12 = vector.broadcast %11 : vector<1x8xf32> to vector<64x8xf32>
    %13 = arith.addf %10, %12 : vector<64x8xf32>
    %cst_11 = arith.constant 0.000000e+00 : f32
    %14 = vector.broadcast %cst_11 : f32 to vector<64x8xf32>
    %15 = arith.maximumf %13, %14 : vector<64x8xf32>
    %c0_12 = arith.constant 0 : index
    %c0_13 = arith.constant 0 : index
    %16 = vector.load %arg6[%c0_12, %c0_13] : memref<64x8xbf16, #tpu.memory_space<vmem>>, vector<64x8xbf16>
    %17 = arith.extf %16 : vector<64x8xbf16> to vector<64x8xf32>
    %18 = arith.addf %17, %15 : vector<64x8xf32>
    %19 = arith.truncf %18 : vector<64x8xf32> to vector<64x8xbf16>
    %c0_14 = arith.constant 0 : index
    %c0_15 = arith.constant 0 : index
    %20 = vector.load %arg7[%c0_14, %c0_15] : memref<64x8xbf16, #tpu.memory_space<vmem>>, vector<64x8xbf16>
    tpu.vector_store %arg7[%c0_14, %c0_15], %19 {strides = array<i32>} : memref<64x8xbf16, #tpu.memory_space<vmem>>, vector<64x8xbf16>,
    return
  }
  func.func @transform_0(%arg0: i32) -> (i32, i32) {
    %c0_i32 = arith.constant 0 : i32
    %c0_i32_0 = arith.constant 0 : i32
    return %arg0, %c0_i32 : i32, i32
  }
  func.func @transform_1(%arg0: i32) -> (i32, i32) {
    %c0_i32 = arith.constant 0 : i32
    %c0_i32_0 = arith.constant 0 : i32
    %c0_i32_1 = arith.constant 0 : i32
    return %c0_i32, %c0_i32_0 : i32, i32
  }
  func.func @transform_2(%arg0: i32) -> (i32, i32) {
    %c0_i32 = arith.constant 0 : i32
    %c0_i32_0 = arith.constant 0 : i32
    %c0_i32_1 = arith.constant 0 : i32
    return %c0_i32, %c0_i32_0 : i32, i32
  }
  func.func @transform_3(%arg0: i32) -> (i32, i32) {
    %c0_i32 = arith.constant 0 : i32
    %c0_i32_0 = arith.constant 0 : i32
    %c0_i32_1 = arith.constant 0 : i32
    return %c0_i32, %c0_i32_0 : i32, i32
  }
  func.func @transform_4(%arg0: i32) -> (i32, i32) {
    %c0_i32 = arith.constant 0 : i32
    %c0_i32_0 = arith.constant 0 : i32
    %c0_i32_1 = arith.constant 0 : i32
    return %c0_i32, %c0_i32_0 : i32, i32
  }
  func.func @transform_5(%arg0: i32) -> (i32, i32) {
    %c0_i32 = arith.constant 0 : i32
    %c0_i32_0 = arith.constant 0 : i32
    return %arg0, %c0_i32 : i32, i32
  }
  func.func @transform_6(%arg0: i32) -> (i32, i32) {
    %c0_i32 = arith.constant 0 : i32
    %c0_i32_0 = arith.constant 0 : i32
    return %arg0, %c0_i32 : i32, i32
  }
}

module attributes {stable_mosaic.version = 11 : i64} {
  func.func @_mm_stats_kernel(%arg0: i32, %arg1: i32, %arg2: memref<1x16x72xbf16, #tpu.memory_space<vmem>>, %arg3: memref<1x72x8xbf16, #tpu.memory_space<vmem>>, %arg4: memref<1x1x8xf32, #tpu.memory_space<vmem>>, %arg5: memref<1x16x8xbf16, #tpu.memory_space<vmem>>, %arg6: memref<1x2x8xf32, #tpu.memory_space<vmem>>) attributes {dimension_semantics = [#tpu.dimension_semantics<parallel>, #tpu.dimension_semantics<parallel>], iteration_bounds = array<i64: 1, 2>, scalar_prefetch = 0 : i64, scratch_operands = 0 : i64, tpu.core_type = #tpu.core_type<tc>, window_params = [{transform_indices = @transform_0, window_bounds = array<i64: 1, 16, 72>}, {transform_indices = @transform_1, window_bounds = array<i64: 1, 72, 8>}, {transform_indices = @transform_2, window_bounds = array<i64: 1, 1, 8>}, {transform_indices = @transform_3, window_bounds = array<i64: 1, 16, 8>}, {transform_indices = @transform_4, window_bounds = array<i64: 1, 2, 8>}]} {
    %c0 = arith.constant 0 : index
    %c0_0 = arith.constant 0 : index
    %c0_1 = arith.constant 0 : index
    %0 = vector.load %arg2[%c0, %c0_0, %c0_1] : memref<1x16x72xbf16, #tpu.memory_space<vmem>>, vector<1x16x72xbf16>
    %1 = vector.shape_cast %0 : vector<1x16x72xbf16> to vector<16x72xbf16>
    %c0_2 = arith.constant 0 : index
    %c0_3 = arith.constant 0 : index
    %c0_4 = arith.constant 0 : index
    %2 = vector.load %arg3[%c0_2, %c0_3, %c0_4] : memref<1x72x8xbf16, #tpu.memory_space<vmem>>, vector<1x72x8xbf16>
    %3 = vector.shape_cast %2 : vector<1x72x8xbf16> to vector<72x8xbf16>
    %cst = arith.constant dense<0.000000e+00> : vector<16x8xf32>
    %4 = tpu.matmul %1, %3, %cst {dimension_numbers = #tpu.dot_dimension_numbers<[1], [0], [0], [1], [0, 0, 1, 1], [], []>} : vector<16x72xbf16>, vector<72x8xbf16>, vector<16x8xf32> -> vector<16x8xf32>
    %c0_5 = arith.constant 0 : index
    %c0_6 = arith.constant 0 : index
    %c0_7 = arith.constant 0 : index
    %5 = vector.load %arg4[%c0_5, %c0_6, %c0_7] : memref<1x1x8xf32, #tpu.memory_space<vmem>>, vector<1x1x8xf32>
    %6 = vector.shape_cast %5 : vector<1x1x8xf32> to vector<1x8xf32>
    %7 = vector.broadcast %6 : vector<1x8xf32> to vector<16x8xf32>
    %8 = arith.addf %4, %7 : vector<16x8xf32>
    %cst_8 = arith.constant 0.000000e+00 : f32
    %9 = vector.broadcast %cst_8 : f32 to vector<16x8xf32>
    %10 = arith.maximumf %8, %9 : vector<16x8xf32>
    %11 = arith.truncf %10 : vector<16x8xf32> to vector<16x8xbf16>
    %c0_9 = arith.constant 0 : index
    %c0_10 = arith.constant 0 : index
    %c0_11 = arith.constant 0 : index
    %12 = vector.load %arg5[%c0_9, %c0_10, %c0_11] : memref<1x16x8xbf16, #tpu.memory_space<vmem>>, vector<1x16x8xbf16>
    %13 = vector.shape_cast %12 : vector<1x16x8xbf16> to vector<16x8xbf16>
    %14 = vector.shape_cast %11 : vector<16x8xbf16> to vector<1x16x8xbf16>
    tpu.vector_store %arg5[%c0_9, %c0_10, %c0_11], %14 {strides = array<i32>} : memref<1x16x8xbf16, #tpu.memory_space<vmem>>, vector<1x16x8xbf16>,
    %c16_i32 = arith.constant 16 : i32
    %15 = arith.muli %arg1, %c16_i32 : i32
    %16 = tpu.iota {dimensions = array<i32: 0>} : vector<16x1xi32>
    %17 = vector.broadcast %15 : i32 to vector<16x1xi32>
    %18 = arith.addi %17, %16 : vector<16x1xi32>
    %c32_i32 = arith.constant 32 : i32
    %19 = vector.broadcast %c32_i32 : i32 to vector<16x1xi32>
    %20 = arith.cmpi slt, %18, %19 : vector<16x1xi32>
    %21 = arith.extui %20 : vector<16x1xi1> to vector<16x1xi32>
    %22 = arith.sitofp %21 : vector<16x1xi32> to vector<16x1xf32>
    %23 = vector.broadcast %22 : vector<16x1xf32> to vector<16x8xf32>
    %24 = arith.mulf %10, %23 : vector<16x8xf32>
    %cst_12 = arith.constant dense<0.000000e+00> : vector<8xf32>
    %25 = vector.multi_reduction <add>, %24, %cst_12 [0] : vector<16x8xf32> to vector<8xf32>
    %26 = vector.shape_cast %25 : vector<8xf32> to vector<1x8xf32>
    %27 = arith.mulf %24, %24 : vector<16x8xf32>
    %cst_13 = arith.constant dense<0.000000e+00> : vector<8xf32>
    %28 = vector.multi_reduction <add>, %27, %cst_13 [0] : vector<16x8xf32> to vector<8xf32>
    %29 = vector.shape_cast %28 : vector<8xf32> to vector<1x8xf32>
    %30 = tpu.concatenate %26, %29 in 0 : vector<1x8xf32>, vector<1x8xf32> -> vector<2x8xf32>
    %c0_14 = arith.constant 0 : index
    %c0_15 = arith.constant 0 : index
    %c0_16 = arith.constant 0 : index
    %31 = vector.load %arg6[%c0_14, %c0_15, %c0_16] : memref<1x2x8xf32, #tpu.memory_space<vmem>>, vector<1x2x8xf32>
    %32 = vector.shape_cast %31 : vector<1x2x8xf32> to vector<2x8xf32>
    %33 = vector.shape_cast %30 : vector<2x8xf32> to vector<1x2x8xf32>
    tpu.vector_store %arg6[%c0_14, %c0_15, %c0_16], %33 {strides = array<i32>} : memref<1x2x8xf32, #tpu.memory_space<vmem>>, vector<1x2x8xf32>,
    return
  }
  func.func @transform_0(%arg0: i32, %arg1: i32) -> (i32, i32, i32) {
    %c0_i32 = arith.constant 0 : i32
    %c0_i32_0 = arith.constant 0 : i32
    return %arg0, %arg1, %c0_i32 : i32, i32, i32
  }
  func.func @transform_1(%arg0: i32, %arg1: i32) -> (i32, i32, i32) {
    %c0_i32 = arith.constant 0 : i32
    %c0_i32_0 = arith.constant 0 : i32
    %c0_i32_1 = arith.constant 0 : i32
    return %arg0, %c0_i32, %c0_i32_0 : i32, i32, i32
  }
  func.func @transform_2(%arg0: i32, %arg1: i32) -> (i32, i32, i32) {
    %c0_i32 = arith.constant 0 : i32
    %c0_i32_0 = arith.constant 0 : i32
    %c0_i32_1 = arith.constant 0 : i32
    return %arg0, %c0_i32, %c0_i32_0 : i32, i32, i32
  }
  func.func @transform_3(%arg0: i32, %arg1: i32) -> (i32, i32, i32) {
    %c0_i32 = arith.constant 0 : i32
    %c0_i32_0 = arith.constant 0 : i32
    return %arg0, %arg1, %c0_i32 : i32, i32, i32
  }
  func.func @transform_4(%arg0: i32, %arg1: i32) -> (i32, i32, i32) {
    %c2_i32 = arith.constant 2 : i32
    %0 = arith.muli %arg0, %c2_i32 : i32
    %1 = arith.addi %0, %arg1 : i32
    %c0_i32 = arith.constant 0 : i32
    %c0_i32_0 = arith.constant 0 : i32
    %c0_i32_1 = arith.constant 0 : i32
    return %1, %c0_i32, %c0_i32_0 : i32, i32, i32
  }
}

module attributes {stable_mosaic.version = 11 : i64} {
  func.func @_block_kernel(%arg0: i32, %arg1: memref<16x72xbf16, #tpu.memory_space<vmem>>, %arg2: memref<72x16xbf16, #tpu.memory_space<vmem>>, %arg3: memref<1x16xf32, #tpu.memory_space<vmem>>, %arg4: memref<16x8xbf16, #tpu.memory_space<vmem>>, %arg5: memref<1x8xf32, #tpu.memory_space<vmem>>, %arg6: memref<16x8xbf16, #tpu.memory_space<vmem>>, %arg7: memref<16x8xbf16, #tpu.memory_space<vmem>>) attributes {dimension_semantics = [#tpu.dimension_semantics<parallel>], iteration_bounds = array<i64: 2>, scalar_prefetch = 0 : i64, scratch_operands = 0 : i64, tpu.core_type = #tpu.core_type<tc>, window_params = [{transform_indices = @transform_0, window_bounds = array<i64: 16, 72>}, {pipeline_mode = #tpu.pipeline_mode<synchronous>, transform_indices = @transform_1, window_bounds = array<i64: 72, 16>}, {pipeline_mode = #tpu.pipeline_mode<synchronous>, transform_indices = @transform_2, window_bounds = array<i64: 1, 16>}, {pipeline_mode = #tpu.pipeline_mode<synchronous>, transform_indices = @transform_3, window_bounds = array<i64: 16, 8>}, {pipeline_mode = #tpu.pipeline_mode<synchronous>, transform_indices = @transform_4, window_bounds = array<i64: 1, 8>}, {transform_indices = @transform_5, window_bounds = array<i64: 16, 8>}, {transform_indices = @transform_6, window_bounds = array<i64: 16, 8>}]} {
    %c0 = arith.constant 0 : index
    %c0_0 = arith.constant 0 : index
    %0 = vector.load %arg1[%c0, %c0_0] : memref<16x72xbf16, #tpu.memory_space<vmem>>, vector<16x72xbf16>
    %c0_1 = arith.constant 0 : index
    %c0_2 = arith.constant 0 : index
    %1 = vector.load %arg2[%c0_1, %c0_2] : memref<72x16xbf16, #tpu.memory_space<vmem>>, vector<72x16xbf16>
    %cst = arith.constant dense<0.000000e+00> : vector<16x16xf32>
    %2 = tpu.matmul %0, %1, %cst {dimension_numbers = #tpu.dot_dimension_numbers<[1], [0], [0], [1], [0, 0, 1, 1], [], []>} : vector<16x72xbf16>, vector<72x16xbf16>, vector<16x16xf32> -> vector<16x16xf32>
    %c0_3 = arith.constant 0 : index
    %c0_4 = arith.constant 0 : index
    %3 = vector.load %arg3[%c0_3, %c0_4] : memref<1x16xf32, #tpu.memory_space<vmem>>, vector<1x16xf32>
    %4 = vector.broadcast %3 : vector<1x16xf32> to vector<16x16xf32>
    %5 = arith.addf %2, %4 : vector<16x16xf32>
    %cst_5 = arith.constant 0.000000e+00 : f32
    %6 = vector.broadcast %cst_5 : f32 to vector<16x16xf32>
    %7 = arith.maximumf %5, %6 : vector<16x16xf32>
    %8 = arith.truncf %7 : vector<16x16xf32> to vector<16x16xbf16>
    %c0_6 = arith.constant 0 : index
    %c0_7 = arith.constant 0 : index
    %9 = vector.load %arg4[%c0_6, %c0_7] : memref<16x8xbf16, #tpu.memory_space<vmem>>, vector<16x8xbf16>
    %cst_8 = arith.constant dense<0.000000e+00> : vector<16x8xf32>
    %10 = tpu.matmul %8, %9, %cst_8 {dimension_numbers = #tpu.dot_dimension_numbers<[1], [0], [0], [1], [0, 0, 1, 1], [], []>} : vector<16x16xbf16>, vector<16x8xbf16>, vector<16x8xf32> -> vector<16x8xf32>
    %c0_9 = arith.constant 0 : index
    %c0_10 = arith.constant 0 : index
    %11 = vector.load %arg5[%c0_9, %c0_10] : memref<1x8xf32, #tpu.memory_space<vmem>>, vector<1x8xf32>
    %12 = vector.broadcast %11 : vector<1x8xf32> to vector<16x8xf32>
    %13 = arith.addf %10, %12 : vector<16x8xf32>
    %cst_11 = arith.constant 0.000000e+00 : f32
    %14 = vector.broadcast %cst_11 : f32 to vector<16x8xf32>
    %15 = arith.maximumf %13, %14 : vector<16x8xf32>
    %c0_12 = arith.constant 0 : index
    %c0_13 = arith.constant 0 : index
    %16 = vector.load %arg6[%c0_12, %c0_13] : memref<16x8xbf16, #tpu.memory_space<vmem>>, vector<16x8xbf16>
    %17 = arith.extf %16 : vector<16x8xbf16> to vector<16x8xf32>
    %18 = arith.addf %17, %15 : vector<16x8xf32>
    %19 = arith.truncf %18 : vector<16x8xf32> to vector<16x8xbf16>
    %c0_14 = arith.constant 0 : index
    %c0_15 = arith.constant 0 : index
    %20 = vector.load %arg7[%c0_14, %c0_15] : memref<16x8xbf16, #tpu.memory_space<vmem>>, vector<16x8xbf16>
    tpu.vector_store %arg7[%c0_14, %c0_15], %19 {strides = array<i32>} : memref<16x8xbf16, #tpu.memory_space<vmem>>, vector<16x8xbf16>,
    return
  }
  func.func @transform_0(%arg0: i32) -> (i32, i32) {
    %c0_i32 = arith.constant 0 : i32
    %c0_i32_0 = arith.constant 0 : i32
    return %arg0, %c0_i32 : i32, i32
  }
  func.func @transform_1(%arg0: i32) -> (i32, i32) {
    %c0_i32 = arith.constant 0 : i32
    %c0_i32_0 = arith.constant 0 : i32
    %c0_i32_1 = arith.constant 0 : i32
    return %c0_i32, %c0_i32_0 : i32, i32
  }
  func.func @transform_2(%arg0: i32) -> (i32, i32) {
    %c0_i32 = arith.constant 0 : i32
    %c0_i32_0 = arith.constant 0 : i32
    %c0_i32_1 = arith.constant 0 : i32
    return %c0_i32, %c0_i32_0 : i32, i32
  }
  func.func @transform_3(%arg0: i32) -> (i32, i32) {
    %c0_i32 = arith.constant 0 : i32
    %c0_i32_0 = arith.constant 0 : i32
    %c0_i32_1 = arith.constant 0 : i32
    return %c0_i32, %c0_i32_0 : i32, i32
  }
  func.func @transform_4(%arg0: i32) -> (i32, i32) {
    %c0_i32 = arith.constant 0 : i32
    %c0_i32_0 = arith.constant 0 : i32
    %c0_i32_1 = arith.constant 0 : i32
    return %c0_i32, %c0_i32_0 : i32, i32
  }
  func.func @transform_5(%arg0: i32) -> (i32, i32) {
    %c0_i32 = arith.constant 0 : i32
    %c0_i32_0 = arith.constant 0 : i32
    return %arg0, %c0_i32 : i32, i32
  }
  func.func @transform_6(%arg0: i32) -> (i32, i32) {
    %c0_i32 = arith.constant 0 : i32
    %c0_i32_0 = arith.constant 0 : i32
    return %arg0, %c0_i32 : i32, i32
  }
}

module attributes {stable_mosaic.version = 11 : i64} {
  func.func @_mm_stats_kernel(%arg0: i32, %arg1: i32, %arg2: memref<1x16x72xbf16, #tpu.memory_space<vmem>>, %arg3: memref<1x72x16xbf16, #tpu.memory_space<vmem>>, %arg4: memref<1x1x16xf32, #tpu.memory_space<vmem>>, %arg5: memref<1x16x16xbf16, #tpu.memory_space<vmem>>, %arg6: memref<1x2x16xf32, #tpu.memory_space<vmem>>) attributes {dimension_semantics = [#tpu.dimension_semantics<parallel>, #tpu.dimension_semantics<parallel>], iteration_bounds = array<i64: 1, 1>, scalar_prefetch = 0 : i64, scratch_operands = 0 : i64, tpu.core_type = #tpu.core_type<tc>, window_params = [{transform_indices = @transform_0, window_bounds = array<i64: 1, 16, 72>}, {transform_indices = @transform_1, window_bounds = array<i64: 1, 72, 16>}, {transform_indices = @transform_2, window_bounds = array<i64: 1, 1, 16>}, {transform_indices = @transform_3, window_bounds = array<i64: 1, 16, 16>}, {transform_indices = @transform_4, window_bounds = array<i64: 1, 2, 16>}]} {
    %c0 = arith.constant 0 : index
    %c0_0 = arith.constant 0 : index
    %c0_1 = arith.constant 0 : index
    %0 = vector.load %arg2[%c0, %c0_0, %c0_1] : memref<1x16x72xbf16, #tpu.memory_space<vmem>>, vector<1x16x72xbf16>
    %1 = vector.shape_cast %0 : vector<1x16x72xbf16> to vector<16x72xbf16>
    %c0_2 = arith.constant 0 : index
    %c0_3 = arith.constant 0 : index
    %c0_4 = arith.constant 0 : index
    %2 = vector.load %arg3[%c0_2, %c0_3, %c0_4] : memref<1x72x16xbf16, #tpu.memory_space<vmem>>, vector<1x72x16xbf16>
    %3 = vector.shape_cast %2 : vector<1x72x16xbf16> to vector<72x16xbf16>
    %cst = arith.constant dense<0.000000e+00> : vector<16x16xf32>
    %4 = tpu.matmul %1, %3, %cst {dimension_numbers = #tpu.dot_dimension_numbers<[1], [0], [0], [1], [0, 0, 1, 1], [], []>} : vector<16x72xbf16>, vector<72x16xbf16>, vector<16x16xf32> -> vector<16x16xf32>
    %c0_5 = arith.constant 0 : index
    %c0_6 = arith.constant 0 : index
    %c0_7 = arith.constant 0 : index
    %5 = vector.load %arg4[%c0_5, %c0_6, %c0_7] : memref<1x1x16xf32, #tpu.memory_space<vmem>>, vector<1x1x16xf32>
    %6 = vector.shape_cast %5 : vector<1x1x16xf32> to vector<1x16xf32>
    %7 = vector.broadcast %6 : vector<1x16xf32> to vector<16x16xf32>
    %8 = arith.addf %4, %7 : vector<16x16xf32>
    %cst_8 = arith.constant 0.000000e+00 : f32
    %9 = vector.broadcast %cst_8 : f32 to vector<16x16xf32>
    %10 = arith.maximumf %8, %9 : vector<16x16xf32>
    %11 = arith.truncf %10 : vector<16x16xf32> to vector<16x16xbf16>
    %c0_9 = arith.constant 0 : index
    %c0_10 = arith.constant 0 : index
    %c0_11 = arith.constant 0 : index
    %12 = vector.load %arg5[%c0_9, %c0_10, %c0_11] : memref<1x16x16xbf16, #tpu.memory_space<vmem>>, vector<1x16x16xbf16>
    %13 = vector.shape_cast %12 : vector<1x16x16xbf16> to vector<16x16xbf16>
    %14 = vector.shape_cast %11 : vector<16x16xbf16> to vector<1x16x16xbf16>
    tpu.vector_store %arg5[%c0_9, %c0_10, %c0_11], %14 {strides = array<i32>} : memref<1x16x16xbf16, #tpu.memory_space<vmem>>, vector<1x16x16xbf16>,
    %c16_i32 = arith.constant 16 : i32
    %15 = arith.muli %arg1, %c16_i32 : i32
    %16 = tpu.iota {dimensions = array<i32: 0>} : vector<16x1xi32>
    %17 = vector.broadcast %15 : i32 to vector<16x1xi32>
    %18 = arith.addi %17, %16 : vector<16x1xi32>
    %c8_i32 = arith.constant 8 : i32
    %19 = vector.broadcast %c8_i32 : i32 to vector<16x1xi32>
    %20 = arith.cmpi slt, %18, %19 : vector<16x1xi32>
    %21 = arith.extui %20 : vector<16x1xi1> to vector<16x1xi32>
    %22 = arith.sitofp %21 : vector<16x1xi32> to vector<16x1xf32>
    %23 = vector.broadcast %22 : vector<16x1xf32> to vector<16x16xf32>
    %24 = arith.mulf %10, %23 : vector<16x16xf32>
    %cst_12 = arith.constant dense<0.000000e+00> : vector<16xf32>
    %25 = vector.multi_reduction <add>, %24, %cst_12 [0] : vector<16x16xf32> to vector<16xf32>
    %26 = vector.shape_cast %25 : vector<16xf32> to vector<1x16xf32>
    %27 = arith.mulf %24, %24 : vector<16x16xf32>
    %cst_13 = arith.constant dense<0.000000e+00> : vector<16xf32>
    %28 = vector.multi_reduction <add>, %27, %cst_13 [0] : vector<16x16xf32> to vector<16xf32>
    %29 = vector.shape_cast %28 : vector<16xf32> to vector<1x16xf32>
    %30 = tpu.concatenate %26, %29 in 0 : vector<1x16xf32>, vector<1x16xf32> -> vector<2x16xf32>
    %c0_14 = arith.constant 0 : index
    %c0_15 = arith.constant 0 : index
    %c0_16 = arith.constant 0 : index
    %31 = vector.load %arg6[%c0_14, %c0_15, %c0_16] : memref<1x2x16xf32, #tpu.memory_space<vmem>>, vector<1x2x16xf32>
    %32 = vector.shape_cast %31 : vector<1x2x16xf32> to vector<2x16xf32>
    %33 = vector.shape_cast %30 : vector<2x16xf32> to vector<1x2x16xf32>
    tpu.vector_store %arg6[%c0_14, %c0_15, %c0_16], %33 {strides = array<i32>} : memref<1x2x16xf32, #tpu.memory_space<vmem>>, vector<1x2x16xf32>,
    return
  }
  func.func @transform_0(%arg0: i32, %arg1: i32) -> (i32, i32, i32) {
    %c0_i32 = arith.constant 0 : i32
    %c0_i32_0 = arith.constant 0 : i32
    return %arg0, %arg1, %c0_i32 : i32, i32, i32
  }
  func.func @transform_1(%arg0: i32, %arg1: i32) -> (i32, i32, i32) {
    %c0_i32 = arith.constant 0 : i32
    %c0_i32_0 = arith.constant 0 : i32
    %c0_i32_1 = arith.constant 0 : i32
    return %arg0, %c0_i32, %c0_i32_0 : i32, i32, i32
  }
  func.func @transform_2(%arg0: i32, %arg1: i32) -> (i32, i32, i32) {
    %c0_i32 = arith.constant 0 : i32
    %c0_i32_0 = arith.constant 0 : i32
    %c0_i32_1 = arith.constant 0 : i32
    return %arg0, %c0_i32, %c0_i32_0 : i32, i32, i32
  }
  func.func @transform_3(%arg0: i32, %arg1: i32) -> (i32, i32, i32) {
    %c0_i32 = arith.constant 0 : i32
    %c0_i32_0 = arith.constant 0 : i32
    return %arg0, %arg1, %c0_i32 : i32, i32, i32
  }
  func.func @transform_4(%arg0: i32, %arg1: i32) -> (i32, i32, i32) {
    %c1_i32 = arith.constant 1 : i32
    %0 = arith.muli %arg0, %c1_i32 : i32
    %1 = arith.addi %0, %arg1 : i32
    %c0_i32 = arith.constant 0 : i32
    %c0_i32_0 = arith.constant 0 : i32
    %c0_i32_1 = arith.constant 0 : i32
    return %1, %c0_i32, %c0_i32_0 : i32, i32, i32
  }
}

module attributes {stable_mosaic.version = 11 : i64} {
  func.func @_mm_stats_kernel(%arg0: i32, %arg1: i32, %arg2: memref<1x16x144xbf16, #tpu.memory_space<vmem>>, %arg3: memref<1x144x16xbf16, #tpu.memory_space<vmem>>, %arg4: memref<1x1x16xf32, #tpu.memory_space<vmem>>, %arg5: memref<1x16x16xbf16, #tpu.memory_space<vmem>>, %arg6: memref<1x2x16xf32, #tpu.memory_space<vmem>>) attributes {dimension_semantics = [#tpu.dimension_semantics<parallel>, #tpu.dimension_semantics<parallel>], iteration_bounds = array<i64: 1, 1>, scalar_prefetch = 0 : i64, scratch_operands = 0 : i64, tpu.core_type = #tpu.core_type<tc>, window_params = [{transform_indices = @transform_0, window_bounds = array<i64: 1, 16, 144>}, {transform_indices = @transform_1, window_bounds = array<i64: 1, 144, 16>}, {transform_indices = @transform_2, window_bounds = array<i64: 1, 1, 16>}, {transform_indices = @transform_3, window_bounds = array<i64: 1, 16, 16>}, {transform_indices = @transform_4, window_bounds = array<i64: 1, 2, 16>}]} {
    %c0 = arith.constant 0 : index
    %c0_0 = arith.constant 0 : index
    %c0_1 = arith.constant 0 : index
    %0 = vector.load %arg2[%c0, %c0_0, %c0_1] : memref<1x16x144xbf16, #tpu.memory_space<vmem>>, vector<1x16x144xbf16>
    %1 = vector.shape_cast %0 : vector<1x16x144xbf16> to vector<16x144xbf16>
    %c0_2 = arith.constant 0 : index
    %c0_3 = arith.constant 0 : index
    %c0_4 = arith.constant 0 : index
    %2 = vector.load %arg3[%c0_2, %c0_3, %c0_4] : memref<1x144x16xbf16, #tpu.memory_space<vmem>>, vector<1x144x16xbf16>
    %3 = vector.shape_cast %2 : vector<1x144x16xbf16> to vector<144x16xbf16>
    %cst = arith.constant dense<0.000000e+00> : vector<16x16xf32>
    %4 = tpu.matmul %1, %3, %cst {dimension_numbers = #tpu.dot_dimension_numbers<[1], [0], [0], [1], [0, 0, 1, 1], [], []>} : vector<16x144xbf16>, vector<144x16xbf16>, vector<16x16xf32> -> vector<16x16xf32>
    %c0_5 = arith.constant 0 : index
    %c0_6 = arith.constant 0 : index
    %c0_7 = arith.constant 0 : index
    %5 = vector.load %arg4[%c0_5, %c0_6, %c0_7] : memref<1x1x16xf32, #tpu.memory_space<vmem>>, vector<1x1x16xf32>
    %6 = vector.shape_cast %5 : vector<1x1x16xf32> to vector<1x16xf32>
    %7 = vector.broadcast %6 : vector<1x16xf32> to vector<16x16xf32>
    %8 = arith.addf %4, %7 : vector<16x16xf32>
    %cst_8 = arith.constant 0.000000e+00 : f32
    %9 = vector.broadcast %cst_8 : f32 to vector<16x16xf32>
    %10 = arith.maximumf %8, %9 : vector<16x16xf32>
    %11 = arith.truncf %10 : vector<16x16xf32> to vector<16x16xbf16>
    %c0_9 = arith.constant 0 : index
    %c0_10 = arith.constant 0 : index
    %c0_11 = arith.constant 0 : index
    %12 = vector.load %arg5[%c0_9, %c0_10, %c0_11] : memref<1x16x16xbf16, #tpu.memory_space<vmem>>, vector<1x16x16xbf16>
    %13 = vector.shape_cast %12 : vector<1x16x16xbf16> to vector<16x16xbf16>
    %14 = vector.shape_cast %11 : vector<16x16xbf16> to vector<1x16x16xbf16>
    tpu.vector_store %arg5[%c0_9, %c0_10, %c0_11], %14 {strides = array<i32>} : memref<1x16x16xbf16, #tpu.memory_space<vmem>>, vector<1x16x16xbf16>,
    %c16_i32 = arith.constant 16 : i32
    %15 = arith.muli %arg1, %c16_i32 : i32
    %16 = tpu.iota {dimensions = array<i32: 0>} : vector<16x1xi32>
    %17 = vector.broadcast %15 : i32 to vector<16x1xi32>
    %18 = arith.addi %17, %16 : vector<16x1xi32>
    %c2_i32 = arith.constant 2 : i32
    %19 = vector.broadcast %c2_i32 : i32 to vector<16x1xi32>
    %20 = arith.cmpi slt, %18, %19 : vector<16x1xi32>
    %21 = arith.extui %20 : vector<16x1xi1> to vector<16x1xi32>
    %22 = arith.sitofp %21 : vector<16x1xi32> to vector<16x1xf32>
    %23 = vector.broadcast %22 : vector<16x1xf32> to vector<16x16xf32>
    %24 = arith.mulf %10, %23 : vector<16x16xf32>
    %cst_12 = arith.constant dense<0.000000e+00> : vector<16xf32>
    %25 = vector.multi_reduction <add>, %24, %cst_12 [0] : vector<16x16xf32> to vector<16xf32>
    %26 = vector.shape_cast %25 : vector<16xf32> to vector<1x16xf32>
    %27 = arith.mulf %24, %24 : vector<16x16xf32>
    %cst_13 = arith.constant dense<0.000000e+00> : vector<16xf32>
    %28 = vector.multi_reduction <add>, %27, %cst_13 [0] : vector<16x16xf32> to vector<16xf32>
    %29 = vector.shape_cast %28 : vector<16xf32> to vector<1x16xf32>
    %30 = tpu.concatenate %26, %29 in 0 : vector<1x16xf32>, vector<1x16xf32> -> vector<2x16xf32>
    %c0_14 = arith.constant 0 : index
    %c0_15 = arith.constant 0 : index
    %c0_16 = arith.constant 0 : index
    %31 = vector.load %arg6[%c0_14, %c0_15, %c0_16] : memref<1x2x16xf32, #tpu.memory_space<vmem>>, vector<1x2x16xf32>
    %32 = vector.shape_cast %31 : vector<1x2x16xf32> to vector<2x16xf32>
    %33 = vector.shape_cast %30 : vector<2x16xf32> to vector<1x2x16xf32>
    tpu.vector_store %arg6[%c0_14, %c0_15, %c0_16], %33 {strides = array<i32>} : memref<1x2x16xf32, #tpu.memory_space<vmem>>, vector<1x2x16xf32>,
    return
  }
  func.func @transform_0(%arg0: i32, %arg1: i32) -> (i32, i32, i32) {
    %c0_i32 = arith.constant 0 : i32
    %c0_i32_0 = arith.constant 0 : i32
    return %arg0, %arg1, %c0_i32 : i32, i32, i32
  }
  func.func @transform_1(%arg0: i32, %arg1: i32) -> (i32, i32, i32) {
    %c0_i32 = arith.constant 0 : i32
    %c0_i32_0 = arith.constant 0 : i32
    %c0_i32_1 = arith.constant 0 : i32
    return %arg0, %c0_i32, %c0_i32_0 : i32, i32, i32
  }
  func.func @transform_2(%arg0: i32, %arg1: i32) -> (i32, i32, i32) {
    %c0_i32 = arith.constant 0 : i32
    %c0_i32_0 = arith.constant 0 : i32
    %c0_i32_1 = arith.constant 0 : i32
    return %arg0, %c0_i32, %c0_i32_0 : i32, i32, i32
  }
  func.func @transform_3(%arg0: i32, %arg1: i32) -> (i32, i32, i32) {
    %c0_i32 = arith.constant 0 : i32
    %c0_i32_0 = arith.constant 0 : i32
    return %arg0, %arg1, %c0_i32 : i32, i32, i32
  }
  func.func @transform_4(%arg0: i32, %arg1: i32) -> (i32, i32, i32) {
    %c1_i32 = arith.constant 1 : i32
    %0 = arith.muli %arg0, %c1_i32 : i32
    %1 = arith.addi %0, %arg1 : i32
    %c0_i32 = arith.constant 0 : i32
    %c0_i32_0 = arith.constant 0 : i32
    %c0_i32_1 = arith.constant 0 : i32
    return %1, %c0_i32, %c0_i32_0 : i32, i32, i32
  }
}

module attributes {stable_mosaic.version = 11 : i64} {
  func.func @_mm_stats_kernel(%arg0: i32, %arg1: i32, %arg2: memref<1x16x64xbf16, #tpu.memory_space<vmem>>, %arg3: memref<1x64x64xbf16, #tpu.memory_space<vmem>>, %arg4: memref<1x1x64xf32, #tpu.memory_space<vmem>>, %arg5: memref<1x16x64xbf16, #tpu.memory_space<vmem>>, %arg6: memref<1x2x64xf32, #tpu.memory_space<vmem>>) attributes {dimension_semantics = [#tpu.dimension_semantics<parallel>, #tpu.dimension_semantics<parallel>], iteration_bounds = array<i64: 1, 1>, scalar_prefetch = 0 : i64, scratch_operands = 0 : i64, tpu.core_type = #tpu.core_type<tc>, window_params = [{transform_indices = @transform_0, window_bounds = array<i64: 1, 16, 64>}, {transform_indices = @transform_1, window_bounds = array<i64: 1, 64, 64>}, {transform_indices = @transform_2, window_bounds = array<i64: 1, 1, 64>}, {transform_indices = @transform_3, window_bounds = array<i64: 1, 16, 64>}, {transform_indices = @transform_4, window_bounds = array<i64: 1, 2, 64>}]} {
    %c0 = arith.constant 0 : index
    %c0_0 = arith.constant 0 : index
    %c0_1 = arith.constant 0 : index
    %0 = vector.load %arg2[%c0, %c0_0, %c0_1] : memref<1x16x64xbf16, #tpu.memory_space<vmem>>, vector<1x16x64xbf16>
    %1 = vector.shape_cast %0 : vector<1x16x64xbf16> to vector<16x64xbf16>
    %c0_2 = arith.constant 0 : index
    %c0_3 = arith.constant 0 : index
    %c0_4 = arith.constant 0 : index
    %2 = vector.load %arg3[%c0_2, %c0_3, %c0_4] : memref<1x64x64xbf16, #tpu.memory_space<vmem>>, vector<1x64x64xbf16>
    %3 = vector.shape_cast %2 : vector<1x64x64xbf16> to vector<64x64xbf16>
    %cst = arith.constant dense<0.000000e+00> : vector<16x64xf32>
    %4 = tpu.matmul %1, %3, %cst {dimension_numbers = #tpu.dot_dimension_numbers<[1], [0], [0], [1], [0, 0, 1, 1], [], []>} : vector<16x64xbf16>, vector<64x64xbf16>, vector<16x64xf32> -> vector<16x64xf32>
    %c0_5 = arith.constant 0 : index
    %c0_6 = arith.constant 0 : index
    %c0_7 = arith.constant 0 : index
    %5 = vector.load %arg4[%c0_5, %c0_6, %c0_7] : memref<1x1x64xf32, #tpu.memory_space<vmem>>, vector<1x1x64xf32>
    %6 = vector.shape_cast %5 : vector<1x1x64xf32> to vector<1x64xf32>
    %7 = vector.broadcast %6 : vector<1x64xf32> to vector<16x64xf32>
    %8 = arith.addf %4, %7 : vector<16x64xf32>
    %cst_8 = arith.constant 0.000000e+00 : f32
    %9 = vector.broadcast %cst_8 : f32 to vector<16x64xf32>
    %10 = arith.maximumf %8, %9 : vector<16x64xf32>
    %11 = arith.truncf %10 : vector<16x64xf32> to vector<16x64xbf16>
    %c0_9 = arith.constant 0 : index
    %c0_10 = arith.constant 0 : index
    %c0_11 = arith.constant 0 : index
    %12 = vector.load %arg5[%c0_9, %c0_10, %c0_11] : memref<1x16x64xbf16, #tpu.memory_space<vmem>>, vector<1x16x64xbf16>
    %13 = vector.shape_cast %12 : vector<1x16x64xbf16> to vector<16x64xbf16>
    %14 = vector.shape_cast %11 : vector<16x64xbf16> to vector<1x16x64xbf16>
    tpu.vector_store %arg5[%c0_9, %c0_10, %c0_11], %14 {strides = array<i32>} : memref<1x16x64xbf16, #tpu.memory_space<vmem>>, vector<1x16x64xbf16>,
    %c16_i32 = arith.constant 16 : i32
    %15 = arith.muli %arg1, %c16_i32 : i32
    %16 = tpu.iota {dimensions = array<i32: 0>} : vector<16x1xi32>
    %17 = vector.broadcast %15 : i32 to vector<16x1xi32>
    %18 = arith.addi %17, %16 : vector<16x1xi32>
    %c2_i32 = arith.constant 2 : i32
    %19 = vector.broadcast %c2_i32 : i32 to vector<16x1xi32>
    %20 = arith.cmpi slt, %18, %19 : vector<16x1xi32>
    %21 = arith.extui %20 : vector<16x1xi1> to vector<16x1xi32>
    %22 = arith.sitofp %21 : vector<16x1xi32> to vector<16x1xf32>
    %23 = vector.broadcast %22 : vector<16x1xf32> to vector<16x64xf32>
    %24 = arith.mulf %10, %23 : vector<16x64xf32>
    %cst_12 = arith.constant dense<0.000000e+00> : vector<64xf32>
    %25 = vector.multi_reduction <add>, %24, %cst_12 [0] : vector<16x64xf32> to vector<64xf32>
    %26 = vector.shape_cast %25 : vector<64xf32> to vector<1x64xf32>
    %27 = arith.mulf %24, %24 : vector<16x64xf32>
    %cst_13 = arith.constant dense<0.000000e+00> : vector<64xf32>
    %28 = vector.multi_reduction <add>, %27, %cst_13 [0] : vector<16x64xf32> to vector<64xf32>
    %29 = vector.shape_cast %28 : vector<64xf32> to vector<1x64xf32>
    %30 = tpu.concatenate %26, %29 in 0 : vector<1x64xf32>, vector<1x64xf32> -> vector<2x64xf32>
    %c0_14 = arith.constant 0 : index
    %c0_15 = arith.constant 0 : index
    %c0_16 = arith.constant 0 : index
    %31 = vector.load %arg6[%c0_14, %c0_15, %c0_16] : memref<1x2x64xf32, #tpu.memory_space<vmem>>, vector<1x2x64xf32>
    %32 = vector.shape_cast %31 : vector<1x2x64xf32> to vector<2x64xf32>
    %33 = vector.shape_cast %30 : vector<2x64xf32> to vector<1x2x64xf32>
    tpu.vector_store %arg6[%c0_14, %c0_15, %c0_16], %33 {strides = array<i32>} : memref<1x2x64xf32, #tpu.memory_space<vmem>>, vector<1x2x64xf32>,
    return
  }
  func.func @transform_0(%arg0: i32, %arg1: i32) -> (i32, i32, i32) {
    %c0_i32 = arith.constant 0 : i32
    %c0_i32_0 = arith.constant 0 : i32
    return %arg0, %arg1, %c0_i32 : i32, i32, i32
  }
  func.func @transform_1(%arg0: i32, %arg1: i32) -> (i32, i32, i32) {
    %c0_i32 = arith.constant 0 : i32
    %c0_i32_0 = arith.constant 0 : i32
    %c0_i32_1 = arith.constant 0 : i32
    return %arg0, %c0_i32, %c0_i32_0 : i32, i32, i32
  }
  func.func @transform_2(%arg0: i32, %arg1: i32) -> (i32, i32, i32) {
    %c0_i32 = arith.constant 0 : i32
    %c0_i32_0 = arith.constant 0 : i32
    %c0_i32_1 = arith.constant 0 : i32
    return %arg0, %c0_i32, %c0_i32_0 : i32, i32, i32
  }
  func.func @transform_3(%arg0: i32, %arg1: i32) -> (i32, i32, i32) {
    %c0_i32 = arith.constant 0 : i32
    %c0_i32_0 = arith.constant 0 : i32
    return %arg0, %arg1, %c0_i32 : i32, i32, i32
  }
  func.func @transform_4(%arg0: i32, %arg1: i32) -> (i32, i32, i32) {
    %c1_i32 = arith.constant 1 : i32
    %0 = arith.muli %arg0, %c1_i32 : i32
    %1 = arith.addi %0, %arg1 : i32
    %c0_i32 = arith.constant 0 : i32
    %c0_i32_0 = arith.constant 0 : i32
    %c0_i32_1 = arith.constant 0 : i32
    return %1, %c0_i32, %c0_i32_0 : i32, i32, i32
  }
}

module attributes {stable_mosaic.version = 11 : i64} {
  func.func @_affine_add_kernel(%arg0: i32, %arg1: memref<16x128xbf16, #tpu.memory_space<vmem>>, %arg2: memref<1x128xf32, #tpu.memory_space<vmem>>, %arg3: memref<1x128xf32, #tpu.memory_space<vmem>>, %arg4: memref<16x128xf32, #tpu.memory_space<vmem>>, %arg5: memref<16x128xbf16, #tpu.memory_space<vmem>>) attributes {dimension_semantics = [#tpu.dimension_semantics<parallel>], iteration_bounds = array<i64: 1>, scalar_prefetch = 0 : i64, scratch_operands = 0 : i64, tpu.core_type = #tpu.core_type<tc>, window_params = [{transform_indices = @transform_0, window_bounds = array<i64: 16, 128>}, {pipeline_mode = #tpu.pipeline_mode<synchronous>, transform_indices = @transform_1, window_bounds = array<i64: 1, 128>}, {pipeline_mode = #tpu.pipeline_mode<synchronous>, transform_indices = @transform_2, window_bounds = array<i64: 1, 128>}, {transform_indices = @transform_3, window_bounds = array<i64: 16, 128>}, {transform_indices = @transform_4, window_bounds = array<i64: 16, 128>}]} {
    %c0 = arith.constant 0 : index
    %c0_0 = arith.constant 0 : index
    %0 = vector.load %arg1[%c0, %c0_0] : memref<16x128xbf16, #tpu.memory_space<vmem>>, vector<16x128xbf16>
    %1 = arith.extf %0 : vector<16x128xbf16> to vector<16x128xf32>
    %c0_1 = arith.constant 0 : index
    %c0_2 = arith.constant 0 : index
    %2 = vector.load %arg4[%c0_1, %c0_2] : memref<16x128xf32, #tpu.memory_space<vmem>>, vector<16x128xf32>
    %c0_3 = arith.constant 0 : index
    %c0_4 = arith.constant 0 : index
    %3 = vector.load %arg2[%c0_3, %c0_4] : memref<1x128xf32, #tpu.memory_space<vmem>>, vector<1x128xf32>
    %4 = vector.broadcast %3 : vector<1x128xf32> to vector<16x128xf32>
    %5 = arith.mulf %1, %4 : vector<16x128xf32>
    %c0_5 = arith.constant 0 : index
    %c0_6 = arith.constant 0 : index
    %6 = vector.load %arg3[%c0_5, %c0_6] : memref<1x128xf32, #tpu.memory_space<vmem>>, vector<1x128xf32>
    %7 = vector.broadcast %6 : vector<1x128xf32> to vector<16x128xf32>
    %8 = arith.addf %5, %7 : vector<16x128xf32>
    %cst = arith.constant 5.000000e-01 : f32
    %9 = vector.broadcast %cst : f32 to vector<16x128xf32>
    %10 = arith.mulf %9, %8 : vector<16x128xf32>
    %11 = arith.addf %2, %10 : vector<16x128xf32>
    %12 = arith.truncf %11 : vector<16x128xf32> to vector<16x128xbf16>
    %c0_7 = arith.constant 0 : index
    %c0_8 = arith.constant 0 : index
    %13 = vector.load %arg5[%c0_7, %c0_8] : memref<16x128xbf16, #tpu.memory_space<vmem>>, vector<16x128xbf16>
    tpu.vector_store %arg5[%c0_7, %c0_8], %12 {strides = array<i32>} : memref<16x128xbf16, #tpu.memory_space<vmem>>, vector<16x128xbf16>,
    return
  }
  func.func @transform_0(%arg0: i32) -> (i32, i32) {
    %c0_i32 = arith.constant 0 : i32
    %c0_i32_0 = arith.constant 0 : i32
    return %arg0, %c0_i32 : i32, i32
  }
  func.func @transform_1(%arg0: i32) -> (i32, i32) {
    %c0_i32 = arith.constant 0 : i32
    %c0_i32_0 = arith.constant 0 : i32
    %c0_i32_1 = arith.constant 0 : i32
    return %c0_i32, %c0_i32_0 : i32, i32
  }
  func.func @transform_2(%arg0: i32) -> (i32, i32) {
    %c0_i32 = arith.constant 0 : i32
    %c0_i32_0 = arith.constant 0 : i32
    %c0_i32_1 = arith.constant 0 : i32
    return %c0_i32, %c0_i32_0 : i32, i32
  }
  func.func @transform_3(%arg0: i32) -> (i32, i32) {
    %c0_i32 = arith.constant 0 : i32
    %c0_i32_0 = arith.constant 0 : i32
    return %arg0, %c0_i32 : i32, i32
  }
  func.func @transform_4(%arg0: i32) -> (i32, i32) {
    %c0_i32 = arith.constant 0 : i32
    %c0_i32_0 = arith.constant 0 : i32
    return %arg0, %c0_i32 : i32, i32
  }
}

module attributes {stable_mosaic.version = 11 : i64} {
  func.func @_mm_stats_kernel(%arg0: i32, %arg1: i32, %arg2: memref<1x16x144xbf16, #tpu.memory_space<vmem>>, %arg3: memref<1x144x32xbf16, #tpu.memory_space<vmem>>, %arg4: memref<1x1x32xf32, #tpu.memory_space<vmem>>, %arg5: memref<1x16x32xbf16, #tpu.memory_space<vmem>>, %arg6: memref<1x2x32xf32, #tpu.memory_space<vmem>>) attributes {dimension_semantics = [#tpu.dimension_semantics<parallel>, #tpu.dimension_semantics<parallel>], iteration_bounds = array<i64: 1, 1>, scalar_prefetch = 0 : i64, scratch_operands = 0 : i64, tpu.core_type = #tpu.core_type<tc>, window_params = [{transform_indices = @transform_0, window_bounds = array<i64: 1, 16, 144>}, {transform_indices = @transform_1, window_bounds = array<i64: 1, 144, 32>}, {transform_indices = @transform_2, window_bounds = array<i64: 1, 1, 32>}, {transform_indices = @transform_3, window_bounds = array<i64: 1, 16, 32>}, {transform_indices = @transform_4, window_bounds = array<i64: 1, 2, 32>}]} {
    %c0 = arith.constant 0 : index
    %c0_0 = arith.constant 0 : index
    %c0_1 = arith.constant 0 : index
    %0 = vector.load %arg2[%c0, %c0_0, %c0_1] : memref<1x16x144xbf16, #tpu.memory_space<vmem>>, vector<1x16x144xbf16>
    %1 = vector.shape_cast %0 : vector<1x16x144xbf16> to vector<16x144xbf16>
    %c0_2 = arith.constant 0 : index
    %c0_3 = arith.constant 0 : index
    %c0_4 = arith.constant 0 : index
    %2 = vector.load %arg3[%c0_2, %c0_3, %c0_4] : memref<1x144x32xbf16, #tpu.memory_space<vmem>>, vector<1x144x32xbf16>
    %3 = vector.shape_cast %2 : vector<1x144x32xbf16> to vector<144x32xbf16>
    %cst = arith.constant dense<0.000000e+00> : vector<16x32xf32>
    %4 = tpu.matmul %1, %3, %cst {dimension_numbers = #tpu.dot_dimension_numbers<[1], [0], [0], [1], [0, 0, 1, 1], [], []>} : vector<16x144xbf16>, vector<144x32xbf16>, vector<16x32xf32> -> vector<16x32xf32>
    %c0_5 = arith.constant 0 : index
    %c0_6 = arith.constant 0 : index
    %c0_7 = arith.constant 0 : index
    %5 = vector.load %arg4[%c0_5, %c0_6, %c0_7] : memref<1x1x32xf32, #tpu.memory_space<vmem>>, vector<1x1x32xf32>
    %6 = vector.shape_cast %5 : vector<1x1x32xf32> to vector<1x32xf32>
    %7 = vector.broadcast %6 : vector<1x32xf32> to vector<16x32xf32>
    %8 = arith.addf %4, %7 : vector<16x32xf32>
    %cst_8 = arith.constant 0.000000e+00 : f32
    %9 = vector.broadcast %cst_8 : f32 to vector<16x32xf32>
    %10 = arith.maximumf %8, %9 : vector<16x32xf32>
    %11 = arith.truncf %10 : vector<16x32xf32> to vector<16x32xbf16>
    %c0_9 = arith.constant 0 : index
    %c0_10 = arith.constant 0 : index
    %c0_11 = arith.constant 0 : index
    %12 = vector.load %arg5[%c0_9, %c0_10, %c0_11] : memref<1x16x32xbf16, #tpu.memory_space<vmem>>, vector<1x16x32xbf16>
    %13 = vector.shape_cast %12 : vector<1x16x32xbf16> to vector<16x32xbf16>
    %14 = vector.shape_cast %11 : vector<16x32xbf16> to vector<1x16x32xbf16>
    tpu.vector_store %arg5[%c0_9, %c0_10, %c0_11], %14 {strides = array<i32>} : memref<1x16x32xbf16, #tpu.memory_space<vmem>>, vector<1x16x32xbf16>,
    %c16_i32 = arith.constant 16 : i32
    %15 = arith.muli %arg1, %c16_i32 : i32
    %16 = tpu.iota {dimensions = array<i32: 0>} : vector<16x1xi32>
    %17 = vector.broadcast %15 : i32 to vector<16x1xi32>
    %18 = arith.addi %17, %16 : vector<16x1xi32>
    %c8_i32 = arith.constant 8 : i32
    %19 = vector.broadcast %c8_i32 : i32 to vector<16x1xi32>
    %20 = arith.cmpi slt, %18, %19 : vector<16x1xi32>
    %21 = arith.extui %20 : vector<16x1xi1> to vector<16x1xi32>
    %22 = arith.sitofp %21 : vector<16x1xi32> to vector<16x1xf32>
    %23 = vector.broadcast %22 : vector<16x1xf32> to vector<16x32xf32>
    %24 = arith.mulf %10, %23 : vector<16x32xf32>
    %cst_12 = arith.constant dense<0.000000e+00> : vector<32xf32>
    %25 = vector.multi_reduction <add>, %24, %cst_12 [0] : vector<16x32xf32> to vector<32xf32>
    %26 = vector.shape_cast %25 : vector<32xf32> to vector<1x32xf32>
    %27 = arith.mulf %24, %24 : vector<16x32xf32>
    %cst_13 = arith.constant dense<0.000000e+00> : vector<32xf32>
    %28 = vector.multi_reduction <add>, %27, %cst_13 [0] : vector<16x32xf32> to vector<32xf32>
    %29 = vector.shape_cast %28 : vector<32xf32> to vector<1x32xf32>
    %30 = tpu.concatenate %26, %29 in 0 : vector<1x32xf32>, vector<1x32xf32> -> vector<2x32xf32>
    %c0_14 = arith.constant 0 : index
    %c0_15 = arith.constant 0 : index
    %c0_16 = arith.constant 0 : index
    %31 = vector.load %arg6[%c0_14, %c0_15, %c0_16] : memref<1x2x32xf32, #tpu.memory_space<vmem>>, vector<1x2x32xf32>
    %32 = vector.shape_cast %31 : vector<1x2x32xf32> to vector<2x32xf32>
    %33 = vector.shape_cast %30 : vector<2x32xf32> to vector<1x2x32xf32>
    tpu.vector_store %arg6[%c0_14, %c0_15, %c0_16], %33 {strides = array<i32>} : memref<1x2x32xf32, #tpu.memory_space<vmem>>, vector<1x2x32xf32>,
    return
  }
  func.func @transform_0(%arg0: i32, %arg1: i32) -> (i32, i32, i32) {
    %c0_i32 = arith.constant 0 : i32
    %c0_i32_0 = arith.constant 0 : i32
    return %arg0, %arg1, %c0_i32 : i32, i32, i32
  }
  func.func @transform_1(%arg0: i32, %arg1: i32) -> (i32, i32, i32) {
    %c0_i32 = arith.constant 0 : i32
    %c0_i32_0 = arith.constant 0 : i32
    %c0_i32_1 = arith.constant 0 : i32
    return %arg0, %c0_i32, %c0_i32_0 : i32, i32, i32
  }
  func.func @transform_2(%arg0: i32, %arg1: i32) -> (i32, i32, i32) {
    %c0_i32 = arith.constant 0 : i32
    %c0_i32_0 = arith.constant 0 : i32
    %c0_i32_1 = arith.constant 0 : i32
    return %arg0, %c0_i32, %c0_i32_0 : i32, i32, i32
  }
  func.func @transform_3(%arg0: i32, %arg1: i32) -> (i32, i32, i32) {
    %c0_i32 = arith.constant 0 : i32
    %c0_i32_0 = arith.constant 0 : i32
    return %arg0, %arg1, %c0_i32 : i32, i32, i32
  }
  func.func @transform_4(%arg0: i32, %arg1: i32) -> (i32, i32, i32) {
    %c1_i32 = arith.constant 1 : i32
    %0 = arith.muli %arg0, %c1_i32 : i32
    %1 = arith.addi %0, %arg1 : i32
    %c0_i32 = arith.constant 0 : i32
    %c0_i32_0 = arith.constant 0 : i32
    %c0_i32_1 = arith.constant 0 : i32
    return %1, %c0_i32, %c0_i32_0 : i32, i32, i32
  }
}

module attributes {stable_mosaic.version = 11 : i64} {
  func.func @_mm_stats_kernel(%arg0: i32, %arg1: i32, %arg2: memref<1x16x144xbf16, #tpu.memory_space<vmem>>, %arg3: memref<1x144x8xbf16, #tpu.memory_space<vmem>>, %arg4: memref<1x1x8xf32, #tpu.memory_space<vmem>>, %arg5: memref<1x16x8xbf16, #tpu.memory_space<vmem>>, %arg6: memref<1x2x8xf32, #tpu.memory_space<vmem>>) attributes {dimension_semantics = [#tpu.dimension_semantics<parallel>, #tpu.dimension_semantics<parallel>], iteration_bounds = array<i64: 2, 1>, scalar_prefetch = 0 : i64, scratch_operands = 0 : i64, tpu.core_type = #tpu.core_type<tc>, window_params = [{transform_indices = @transform_0, window_bounds = array<i64: 1, 16, 144>}, {transform_indices = @transform_1, window_bounds = array<i64: 1, 144, 8>}, {transform_indices = @transform_2, window_bounds = array<i64: 1, 1, 8>}, {transform_indices = @transform_3, window_bounds = array<i64: 1, 16, 8>}, {transform_indices = @transform_4, window_bounds = array<i64: 1, 2, 8>}]} {
    %c0 = arith.constant 0 : index
    %c0_0 = arith.constant 0 : index
    %c0_1 = arith.constant 0 : index
    %0 = vector.load %arg2[%c0, %c0_0, %c0_1] : memref<1x16x144xbf16, #tpu.memory_space<vmem>>, vector<1x16x144xbf16>
    %1 = vector.shape_cast %0 : vector<1x16x144xbf16> to vector<16x144xbf16>
    %c0_2 = arith.constant 0 : index
    %c0_3 = arith.constant 0 : index
    %c0_4 = arith.constant 0 : index
    %2 = vector.load %arg3[%c0_2, %c0_3, %c0_4] : memref<1x144x8xbf16, #tpu.memory_space<vmem>>, vector<1x144x8xbf16>
    %3 = vector.shape_cast %2 : vector<1x144x8xbf16> to vector<144x8xbf16>
    %cst = arith.constant dense<0.000000e+00> : vector<16x8xf32>
    %4 = tpu.matmul %1, %3, %cst {dimension_numbers = #tpu.dot_dimension_numbers<[1], [0], [0], [1], [0, 0, 1, 1], [], []>} : vector<16x144xbf16>, vector<144x8xbf16>, vector<16x8xf32> -> vector<16x8xf32>
    %c0_5 = arith.constant 0 : index
    %c0_6 = arith.constant 0 : index
    %c0_7 = arith.constant 0 : index
    %5 = vector.load %arg4[%c0_5, %c0_6, %c0_7] : memref<1x1x8xf32, #tpu.memory_space<vmem>>, vector<1x1x8xf32>
    %6 = vector.shape_cast %5 : vector<1x1x8xf32> to vector<1x8xf32>
    %7 = vector.broadcast %6 : vector<1x8xf32> to vector<16x8xf32>
    %8 = arith.addf %4, %7 : vector<16x8xf32>
    %cst_8 = arith.constant 0.000000e+00 : f32
    %9 = vector.broadcast %cst_8 : f32 to vector<16x8xf32>
    %10 = arith.maximumf %8, %9 : vector<16x8xf32>
    %11 = arith.truncf %10 : vector<16x8xf32> to vector<16x8xbf16>
    %c0_9 = arith.constant 0 : index
    %c0_10 = arith.constant 0 : index
    %c0_11 = arith.constant 0 : index
    %12 = vector.load %arg5[%c0_9, %c0_10, %c0_11] : memref<1x16x8xbf16, #tpu.memory_space<vmem>>, vector<1x16x8xbf16>
    %13 = vector.shape_cast %12 : vector<1x16x8xbf16> to vector<16x8xbf16>
    %14 = vector.shape_cast %11 : vector<16x8xbf16> to vector<1x16x8xbf16>
    tpu.vector_store %arg5[%c0_9, %c0_10, %c0_11], %14 {strides = array<i32>} : memref<1x16x8xbf16, #tpu.memory_space<vmem>>, vector<1x16x8xbf16>,
    %c16_i32 = arith.constant 16 : i32
    %15 = arith.muli %arg1, %c16_i32 : i32
    %16 = tpu.iota {dimensions = array<i32: 0>} : vector<16x1xi32>
    %17 = vector.broadcast %15 : i32 to vector<16x1xi32>
    %18 = arith.addi %17, %16 : vector<16x1xi32>
    %c8_i32 = arith.constant 8 : i32
    %19 = vector.broadcast %c8_i32 : i32 to vector<16x1xi32>
    %20 = arith.cmpi slt, %18, %19 : vector<16x1xi32>
    %21 = arith.extui %20 : vector<16x1xi1> to vector<16x1xi32>
    %22 = arith.sitofp %21 : vector<16x1xi32> to vector<16x1xf32>
    %23 = vector.broadcast %22 : vector<16x1xf32> to vector<16x8xf32>
    %24 = arith.mulf %10, %23 : vector<16x8xf32>
    %cst_12 = arith.constant dense<0.000000e+00> : vector<8xf32>
    %25 = vector.multi_reduction <add>, %24, %cst_12 [0] : vector<16x8xf32> to vector<8xf32>
    %26 = vector.shape_cast %25 : vector<8xf32> to vector<1x8xf32>
    %27 = arith.mulf %24, %24 : vector<16x8xf32>
    %cst_13 = arith.constant dense<0.000000e+00> : vector<8xf32>
    %28 = vector.multi_reduction <add>, %27, %cst_13 [0] : vector<16x8xf32> to vector<8xf32>
    %29 = vector.shape_cast %28 : vector<8xf32> to vector<1x8xf32>
    %30 = tpu.concatenate %26, %29 in 0 : vector<1x8xf32>, vector<1x8xf32> -> vector<2x8xf32>
    %c0_14 = arith.constant 0 : index
    %c0_15 = arith.constant 0 : index
    %c0_16 = arith.constant 0 : index
    %31 = vector.load %arg6[%c0_14, %c0_15, %c0_16] : memref<1x2x8xf32, #tpu.memory_space<vmem>>, vector<1x2x8xf32>
    %32 = vector.shape_cast %31 : vector<1x2x8xf32> to vector<2x8xf32>
    %33 = vector.shape_cast %30 : vector<2x8xf32> to vector<1x2x8xf32>
    tpu.vector_store %arg6[%c0_14, %c0_15, %c0_16], %33 {strides = array<i32>} : memref<1x2x8xf32, #tpu.memory_space<vmem>>, vector<1x2x8xf32>,
    return
  }
  func.func @transform_0(%arg0: i32, %arg1: i32) -> (i32, i32, i32) {
    %c0_i32 = arith.constant 0 : i32
    %c0_i32_0 = arith.constant 0 : i32
    return %arg0, %arg1, %c0_i32 : i32, i32, i32
  }
  func.func @transform_1(%arg0: i32, %arg1: i32) -> (i32, i32, i32) {
    %c0_i32 = arith.constant 0 : i32
    %c0_i32_0 = arith.constant 0 : i32
    %c0_i32_1 = arith.constant 0 : i32
    return %arg0, %c0_i32, %c0_i32_0 : i32, i32, i32
  }
  func.func @transform_2(%arg0: i32, %arg1: i32) -> (i32, i32, i32) {
    %c0_i32 = arith.constant 0 : i32
    %c0_i32_0 = arith.constant 0 : i32
    %c0_i32_1 = arith.constant 0 : i32
    return %arg0, %c0_i32, %c0_i32_0 : i32, i32, i32
  }
  func.func @transform_3(%arg0: i32, %arg1: i32) -> (i32, i32, i32) {
    %c0_i32 = arith.constant 0 : i32
    %c0_i32_0 = arith.constant 0 : i32
    return %arg0, %arg1, %c0_i32 : i32, i32, i32
  }
  func.func @transform_4(%arg0: i32, %arg1: i32) -> (i32, i32, i32) {
    %c1_i32 = arith.constant 1 : i32
    %0 = arith.muli %arg0, %c1_i32 : i32
    %1 = arith.addi %0, %arg1 : i32
    %c0_i32 = arith.constant 0 : i32
    %c0_i32_0 = arith.constant 0 : i32
    %c0_i32_1 = arith.constant 0 : i32
    return %1, %c0_i32, %c0_i32_0 : i32, i32, i32
  }
}

module attributes {stable_mosaic.version = 11 : i64} {
  func.func @_mm_kernel(%arg0: i32, %arg1: i32, %arg2: memref<1x16x72xbf16, #tpu.memory_space<vmem>>, %arg3: memref<1x72x2xbf16, #tpu.memory_space<vmem>>, %arg4: memref<1x1x2xf32, #tpu.memory_space<vmem>>, %arg5: memref<1x16x2xf32, #tpu.memory_space<vmem>>) attributes {dimension_semantics = [#tpu.dimension_semantics<parallel>, #tpu.dimension_semantics<parallel>], iteration_bounds = array<i64: 2, 1>, scalar_prefetch = 0 : i64, scratch_operands = 0 : i64, tpu.core_type = #tpu.core_type<tc>, window_params = [{transform_indices = @transform_0, window_bounds = array<i64: 1, 16, 72>}, {transform_indices = @transform_1, window_bounds = array<i64: 1, 72, 2>}, {transform_indices = @transform_2, window_bounds = array<i64: 1, 1, 2>}, {transform_indices = @transform_3, window_bounds = array<i64: 1, 16, 2>}]} {
    %c0 = arith.constant 0 : index
    %c0_0 = arith.constant 0 : index
    %c0_1 = arith.constant 0 : index
    %0 = vector.load %arg2[%c0, %c0_0, %c0_1] : memref<1x16x72xbf16, #tpu.memory_space<vmem>>, vector<1x16x72xbf16>
    %1 = vector.shape_cast %0 : vector<1x16x72xbf16> to vector<16x72xbf16>
    %c0_2 = arith.constant 0 : index
    %c0_3 = arith.constant 0 : index
    %c0_4 = arith.constant 0 : index
    %2 = vector.load %arg3[%c0_2, %c0_3, %c0_4] : memref<1x72x2xbf16, #tpu.memory_space<vmem>>, vector<1x72x2xbf16>
    %3 = vector.shape_cast %2 : vector<1x72x2xbf16> to vector<72x2xbf16>
    %cst = arith.constant dense<0.000000e+00> : vector<16x2xf32>
    %4 = tpu.matmul %1, %3, %cst {dimension_numbers = #tpu.dot_dimension_numbers<[1], [0], [0], [1], [0, 0, 1, 1], [], []>} : vector<16x72xbf16>, vector<72x2xbf16>, vector<16x2xf32> -> vector<16x2xf32>
    %c0_5 = arith.constant 0 : index
    %c0_6 = arith.constant 0 : index
    %c0_7 = arith.constant 0 : index
    %5 = vector.load %arg4[%c0_5, %c0_6, %c0_7] : memref<1x1x2xf32, #tpu.memory_space<vmem>>, vector<1x1x2xf32>
    %6 = vector.shape_cast %5 : vector<1x1x2xf32> to vector<1x2xf32>
    %7 = vector.broadcast %6 : vector<1x2xf32> to vector<16x2xf32>
    %8 = arith.addf %4, %7 : vector<16x2xf32>
    %c0_8 = arith.constant 0 : index
    %c0_9 = arith.constant 0 : index
    %c0_10 = arith.constant 0 : index
    %9 = vector.load %arg5[%c0_8, %c0_9, %c0_10] : memref<1x16x2xf32, #tpu.memory_space<vmem>>, vector<1x16x2xf32>
    %10 = vector.shape_cast %9 : vector<1x16x2xf32> to vector<16x2xf32>
    %11 = vector.shape_cast %8 : vector<16x2xf32> to vector<1x16x2xf32>
    tpu.vector_store %arg5[%c0_8, %c0_9, %c0_10], %11 {strides = array<i32>} : memref<1x16x2xf32, #tpu.memory_space<vmem>>, vector<1x16x2xf32>,
    return
  }
  func.func @transform_0(%arg0: i32, %arg1: i32) -> (i32, i32, i32) {
    %c0_i32 = arith.constant 0 : i32
    %c0_i32_0 = arith.constant 0 : i32
    return %arg0, %arg1, %c0_i32 : i32, i32, i32
  }
  func.func @transform_1(%arg0: i32, %arg1: i32) -> (i32, i32, i32) {
    %c0_i32 = arith.constant 0 : i32
    %c0_i32_0 = arith.constant 0 : i32
    %c0_i32_1 = arith.constant 0 : i32
    return %arg0, %c0_i32, %c0_i32_0 : i32, i32, i32
  }
  func.func @transform_2(%arg0: i32, %arg1: i32) -> (i32, i32, i32) {
    %c0_i32 = arith.constant 0 : i32
    %c0_i32_0 = arith.constant 0 : i32
    %c0_i32_1 = arith.constant 0 : i32
    return %arg0, %c0_i32, %c0_i32_0 : i32, i32, i32
  }
  func.func @transform_3(%arg0: i32, %arg1: i32) -> (i32, i32, i32) {
    %c0_i32 = arith.constant 0 : i32
    %c0_i32_0 = arith.constant 0 : i32
    return %arg0, %arg1, %c0_i32 : i32, i32, i32
  }
}

</mosaic_0001>

<bundles_post_ra>
// kernel: rhnet_fpn_forward.12
= control target key start
LH: loop header
LB: loop body
LE: loop exit
PB: predicated region body
PF: predicated region fallthrough
CT: control target
= control target key end

     0   :  { %s1424_s15 = smov 0   ;;  %s1426_s16 = smov 0   ;;  %s2004_s0 = inlined_call_operand.vmem [shape: bf16[1,512,27], index: 0, kind: input, shape index: {}]   ;;  %s2005_s1 = inlined_call_operand.vmem [shape: bf16[1,27,8], index: 1, kind: input, shape index: {}]   ;;  %s2006_s2 = inlined_call_operand.vmem [shape: f32[1,1,8], index: 2, kind: input, shape index: {}]   ;;  %s2007_s3 = inlined_call_operand.vmem [shape: bf16[1,512,8], index: 3, kind: output, shape index: {0}]   ;;  %s2008_s4 = inlined_call_operand.vmem [shape: f32[2,2,8], index: 4, kind: output, shape index: {1}]  }
   0x1   :  { %s1428_s17 = smov 0  }
   0x2 LB: > { %s24_s18 = sadd.s32 1, %s1391_s16  ;;  %p1193_p0 = scmp.ge.s32.totalorder %s1395_s17, 1  ;;  %s1395_s17 = sphi %s1428_s17, %s15_s17   ;;  %s1391_s16 = sphi %s1426_s16, %s2010_s16   ;;  %s1387_s15 = sphi %s1424_s15, %s2009_s15  }
   0x3   : > { %p25_p1 = scmp.ge.s32.totalorder %s24_s18, 2  ;;  %p208_p2 = scmp.lt.s32.totalorder %s1395_s17, 3 }
   0x5   : > { %s2012_s18 = smov (%p25_p1, %s24_s18), 0  ;;  %p209_p3 = pnand %p1193_p0, %p208_p2 }
   0x6   : > { %s1194_s23 = sshll.u32 (!%p209_p3), %s1387_s15, 5  ;;  %s1287_s6 = sshll.u32 (!%p209_p3), %s1387_s15, 8 }
   0x7   : > { %212 = sbr.rel (%p209_p3) target bundleno = 280 (0x118), region = 32  ;;  %p259_p4 = scmp.lt.s32.totalorder (!%p209_p3), %s1194_s23, 63 }
   0x8   : > { %p286_p5 = scmp.lt.s32.totalorder (!%p209_p3), %s1387_s15, 1 }
   0xc   : > { %v1269_v0 = vld [vmem:[%s2005_s1 + $0x8] sm:$0xf]  ;;  %v1339_v1 = vld [vmem:[%s2005_s1 + $0x8] sm:$0x30]  ;;  %vm473_vm0 = vcmask 1044480   ;;  %vm474_vm1 = vcmask 1045504   ;;  %v667_v24 = vlaneseq  ;;  %v1505_v30 = vstv %s1287_s6 }
   0xd   : > { %v1270_v2 = vor.u32 %v1339_v1, %v1269_v0  ;;  %v1397_v3 = vmov 65535   ;;  %s2014_s23 = smov (!%p259_p4, %s1194_s23), 63  ;;  %v1338_v7 = vld [vmem:[%s2005_s1] sm:$0xff]  ;;  %vm424_vm2 = vcmask 220160   ;;  %vm633_vm3 = vcmask 60416   ;;  %s2016_s15 = smov (!%p286_p5, %s1387_s15), 1 }
   0xe   : > { %v475_v4 = vsel %vm473_vm0, 4294967295, %v1397_v3  ;;  %s1195_s26 = sshll.u32 %s2014_s23, 2  ;;  %v1499_v25 = vld [vmem:[%s2006_s2] ss:$0 sm:$0xff]  ;;  %v1502_v27 = vshrl.u32 %v667_v24, 7  ;;  %v1398_v63 = vmov 0.0  }
   0xf   : > { %v476_v5 = vsel %vm474_vm1, %v475_v4, 0  ;;  %s1462_s29 = scalar_lea.vmem %s2004_s0, %s1195_s26  ;;  %s1517_s9 = scalar_lea.vmem %s2007_s3, %s1195_s26  ;;  %vm861_vm7 = vcmask 64512  }
  0x10   : > { %v478_v6 = vand.u32 %v1270_v2, %v476_v5  ;;  %v1322_v8 = vld [vmem:[%s1462_s29] sm:$0xff]  ;;  %v1323_v12 = vld [vmem:[%s1462_s29 + $0x8] sm:$0xff]  ;;  %v1324_v16 = vld [vmem:[%s1462_s29 + $0x10] sm:$0xff]  ;;  %v701_v34 = vadd.s32 %v1505_v30, %v1502_v27  ;;  %v669_v36 = vadd.s32 8, %v1502_v27  ;;  %v676_v38 = vadd.s32 64, %v1502_v27  ;;  %s1198_s10 = sshll.u32 %s2016_s15, 1 }
  0x11   : > { %v1326_v9 = vld [vmem:[%s1462_s29 + $0x20] sm:$0xff]  ;;  %v1327_v13 = vld [vmem:[%s1462_s29 + $0x28] sm:$0xff]  ;;  %v1328_v17 = vld [vmem:[%s1462_s29 + $0x30] sm:$0xff]  ;;  %v670_v39 = vadd.s32 16, %v1502_v27  ;;  %v677_v47 = vadd.s32 72, %v1502_v27  ;;  %v671_v50 = vadd.s32 24, %v1502_v27  ;;  %s289_s13 = scalar_lea.vmem %s2008_s4, %s1198_s10 }
  0x12   : > { %486 = vmatpush.bf16.msra.mxu0 %v478_v6  ;;  %1340 = vmatpush.bf16.msra.mxu1 %v478_v6  ;;  %v1330_v10 = vld [vmem:[%s1462_s29 + $0x40] sm:$0xff]  ;;  %v1331_v14 = vld [vmem:[%s1462_s29 + $0x48] sm:$0xff]  ;;  %v1332_v18 = vld [vmem:[%s1462_s29 + $0x50] sm:$0xff]  ;;  %vm733_vm4 = vcmp.lt.s32.totalorder %v701_v34, 512  ;;  %v702_v45 = vadd.s32 %v1505_v30, %v669_v36  ;;  %v709_v48 = vadd.s32 %v1505_v30, %v676_v38  ;;  %v678_v54 = vadd.s32 80, %v1502_v27 }
  0x13   : > { %1341 = vmatpush.bf16.msra.mxu2 %v478_v6  ;;  %1342 = vmatpush.bf16.msra.mxu3 %v478_v6  ;;  %v1334_v11 = vld [vmem:[%s1462_s29 + $0x60] sm:$0xff]  ;;  %v1335_v15 = vld [vmem:[%s1462_s29 + $0x68] sm:$0xff]  ;;  %v1336_v19 = vld [vmem:[%s1462_s29 + $0x70] sm:$0xff]  ;;  %v703_v49 = vadd.s32 %v1505_v30, %v670_v39  ;;  %v684_v55 = vadd.s32 128, %v1502_v27  ;;  %v672_v57 = vadd.s32 32, %v1502_v27  ;;  %v679_v58 = vadd.s32 88, %v1502_v27 }
  0x14   : > { %v1325_v20 = vld [vmem:[%s1462_s29 + $0x18] sm:$0xff]  ;;  %vm734_vm5 = vcmp.lt.s32.totalorder %v702_v45, 512  ;;  %v710_v61 = vadd.s32 %v1505_v30, %v677_v47  ;;  %v1288_v0 = vsel %vm733_vm4, 1.0, %v1398_v63  ;;  %vm741_vm6 = vcmp.lt.s32.totalorder %v709_v48, 512 }
  0x15   : > { %v1329_v21 = vld [vmem:[%s1462_s29 + $0x38] sm:$0xff]  ;;  %v704_v1 = vadd.s32 %v1505_v30, %v671_v50  ;;  %v685_v2 = vadd.s32 136, %v1502_v27  ;;  %vm735_vm8 = vcmp.lt.s32.totalorder %v703_v49, 512  ;;  %v711_v3 = vadd.s32 %v1505_v30, %v678_v54 }
  0x16   : > { %487 = vmatpush.bf16.msra.mxu0 %v1338_v7  ;;  %1343 = vmatpush.bf16.msra.mxu1 %v1338_v7  ;;  %v1333_v22 = vld [vmem:[%s1462_s29 + $0x58] sm:$0xff]  ;;  %v717_v4 = vadd.s32 %v1505_v30, %v684_v55  ;;  %v1289_v6 = vsel %vm734_vm5, 1.0, %v1398_v63  ;;  %vm742_vm9 = vcmp.lt.s32.totalorder %v710_v61, 512  ;;  %v686_v50 = vadd.s32 144, %v1502_v27 }
  0x17   : > { %1344 = vmatpush.bf16.msra.mxu2 %v1338_v7  ;;  %1345 = vmatpush.bf16.msra.mxu3 %v1338_v7  ;;  %v1337_v23 = vld [vmem:[%s1462_s29 + $0x78] sm:$0xff]  ;;  %vm736_vm10 = vcmp.lt.s32.totalorder %v704_v1, 512  ;;  %vm743_vm11 = vcmp.lt.s32.totalorder %v711_v3, 512 }
  0x18   : > { %vm749_vm12 = vcmp.lt.s32.totalorder %v717_v4, 512  ;;  %v719_v3 = vadd.s32 %v1505_v30, %v686_v50 }
  0x19   : > { %1271 = vmatmul.msk.bf16.vlgmr.msra.gmra.mxu0 %vm424_vm2, %v1322_v8  ;;  %1275 = vmatmul.msk.bf16.vlgmr.msra.gmra.mxu1 %vm424_vm2, %v1326_v9  ;;  %v705_v9 = vadd.s32 %v1505_v30, %v672_v57 }
  0x1a   : > { %1279 = vmatmul.msk.bf16.vlgmr.msra.gmra.mxu2 %vm424_vm2, %v1330_v10  ;;  %1283 = vmatmul.msk.bf16.vlgmr.msra.gmra.mxu3 %vm424_vm2, %v1334_v11  ;;  %v712_v10 = vadd.s32 %v1505_v30, %v679_v58  ;;  %vm751_vm1 = vcmp.lt.s32.totalorder %v719_v3, 512 }
  0x1b   : > { %vm737_vm13 = vcmp.lt.s32.totalorder %v705_v9, 512 }
  0x1c   : > { %vm744_vm14 = vcmp.lt.s32.totalorder %v712_v10, 512  ;;  %v1607_v36 = vsel %vm737_vm13, 1.0, %v1398_v63 }
  0x29   : > { %1272 = vmatmul.msk.bf16.gmra.mxu0 %vm424_vm2, %v1323_v12  ;;  %1276 = vmatmul.msk.bf16.gmra.mxu1 %vm424_vm2, %v1327_v13  ;;  %v1296_v12 = vsel %vm741_vm6, 1.0, %v1398_v63 }
  0x2a   : > { %1280 = vmatmul.msk.bf16.gmra.mxu2 %vm424_vm2, %v1331_v14  ;;  %1284 = vmatmul.msk.bf16.gmra.mxu3 %vm424_vm2, %v1335_v15  ;;  %v1575_v15 = vsel %vm735_vm8, 1.0, %v1398_v63 }
  0x39   : > { %1273 = vmatmul.msk.bf16.gmra.mxu0 %vm424_vm2, %v1324_v16  ;;  %1277 = vmatmul.msk.bf16.gmra.mxu1 %vm424_vm2, %v1328_v17  ;;  %v718_v17 = vadd.s32 %v1505_v30, %v685_v2 }
  0x3a   : > { %1281 = vmatmul.msk.bf16.gmra.mxu2 %vm424_vm2, %v1332_v18  ;;  %1285 = vmatmul.msk.bf16.gmra.mxu3 %vm424_vm2, %v1336_v19 }
  0x3b   : > { %vm750_vm15 = vcmp.lt.s32.totalorder %v718_v17, 512 }
  0x3c   : > { %v1305_v58 = vsel %vm750_vm15, 1.0, %v1398_v63 }
  0x49   : > { %1274 = vmatmul.msk.bf16.gmra.mxu0 %vm424_vm2, %v1325_v20  ;;  %1278 = vmatmul.msk.bf16.gmra.mxu1 %vm424_vm2, %v1329_v21 }
  0x4a   : > { %1282 = vmatmul.msk.bf16.gmra.mxu2 %vm424_vm2, %v1333_v22  ;;  %1286 = vmatmul.msk.bf16.gmra.mxu3 %vm424_vm2, %v1337_v23  ;;  %v1297_v23 = vsel %vm742_vm9, 1.0, %v1398_v63 }
  0x96   : > { %v489_v26 = vpop.f32.mrf.mxu0  ;;  %v509_v28 = vpop.f32.mrf.mxu1 }
  0x97   : > { %v490_v29 = vadd.f32 %v1499_v25, %v489_v26  ;;  %v510_v31 = vadd.f32 %v1499_v25, %v509_v28  ;;  %v673_v26 = vadd.s32 40, %v1502_v27  ;;  %v1594_v28 = vsel %vm736_vm10, 1.0, %v1398_v63 }
  0x99   : > { %v1508_v32 = vmax.f32 %v490_v29, 0.0  ;;  %v1510_v33 = vmax.f32 %v510_v31, 0.0  ;;  %v1597_v29 = vsel %vm743_vm11, 1.0, %v1398_v63  ;;  %v1304_v31 = vsel %vm749_vm12, 1.0, %v1398_v63 }
  0x9a   : > { %v706_v47 = vadd.s32 %v1505_v30, %v673_v26 }
  0x9b   : > { %v601_v35 = vpack.c.bf16 %v1508_v32, %v1508_v32  ;;  %v609_v37 = vpack.c.bf16 %v1510_v33, %v1510_v33  ;;  %v829_v20 = vmul.f32 %v1288_v0, %v1508_v32 }
  0x9c   : > { %vm738_vm0 = vcmp.lt.s32.totalorder %v706_v47, 512 }
  0x9d   : > { %634 = vst.msk [vmem:[%s1517_s9] sm:$0xf] %vm633_vm3, %v601_v35  ;;  %v529_v40 = vpop.f32.mrf.mxu2  ;;  %v549_v62 = vpop.f32.mrf.mxu3  ;;  %v837_v35 = vmul.f32 %v1296_v12, %v1510_v33  ;;  %v1663_v12 = vsel %vm738_vm0, 1.0, %v1398_v63 }
  0x9e   : > { %v491_v41 = vpop.f32.mrf.mxu0  ;;  %642 = vst.msk [vmem:[%s1517_s9 + $0x20] sm:$0xf] %vm633_vm3, %v609_v37  ;;  %v511_v42 = vpop.f32.mrf.mxu1  ;;  %v530_v43 = vadd.f32 %v1499_v25, %v529_v40  ;;  %v550_v32 = vadd.f32 %v1499_v25, %v549_v62  ;;  %v1610_v37 = vsel %vm744_vm14, 1.0, %v1398_v63  ;;  %v862_v40 = vsel %vm861_vm7, %v829_v20, 0.0 }
  0x9f   : > { %v492_v44 = vadd.f32 %v1499_v25, %v491_v41  ;;  %v512_v46 = vadd.f32 %v1499_v25, %v511_v42  ;;  %v931_v41 = vmul.f32 %v829_v20, %v829_v20  ;;  %v939_v55 = vmul.f32 %v837_v35, %v837_v35 }
  0xa0   : > { %v1540_v51 = vmax.f32 %v530_v43, 0.0 }
  0xa1   : > { %v570_v52 = vmax.f32 %v492_v44, 0.0  ;;  %v1542_v53 = vmax.f32 %v512_v46, 0.0  ;;  %v963_v4 = vsel %vm861_vm7, %v931_v41, 0.0 }
  0xa2   : > { %v617_v56 = vpack.c.bf16 %v1540_v51, %v1540_v51  ;;  %v845_v45 = vmul.f32 %v1304_v31, %v1540_v51  ;;  %v1631_v51 = vsel %vm861_vm7, %v837_v35, 0.0 }
  0xa3   : > { %v602_v59 = vpack.c.bf16 %v570_v52, %v570_v52  ;;  %v610_v60 = vpack.c.bf16 %v1542_v53, %v1542_v53  ;;  %v830_v34 = vmul.f32 %v1289_v6, %v570_v52  ;;  %v838_v48 = vmul.f32 %v1297_v23, %v1542_v53 }
  0xa4   : > { %650 = vst.msk [vmem:[%s1517_s9 + $0x40] sm:$0xf] %vm633_vm3, %v617_v56  ;;  %v1626_v52 = vmax.f32 %v550_v32, 0.0  ;;  %v680_v53 = vadd.s32 96, %v1502_v27  ;;  %v947_v2 = vmul.f32 %v845_v45, %v845_v45  ;;  %v1648_v6 = vsel %vm861_vm7, %v939_v55, 0.0 }
  0xa5   : > { %635 = vst.msk [vmem:[%s1517_s9 + $0x4] sm:$0xf] %vm633_vm3, %v602_v59  ;;  %v531_v5 = vpop.f32.mrf.mxu2  ;;  %v1612_v39 = vpop.f32.mrf.mxu3  ;;  %v932_v54 = vmul.f32 %v830_v34, %v830_v34  ;;  %v863_v0 = vsel %vm861_vm7, %v830_v34, 0.0  ;;  %v940_v1 = vmul.f32 %v838_v48, %v838_v48  ;;  %v1656_v9 = vsel %vm861_vm7, %v838_v48, 0.0 }
  0xa6   : > { %v494_v7 = vpop.f32.mrf.mxu0  ;;  %643 = vst.msk [vmem:[%s1517_s9 + $0x24] sm:$0xf] %vm633_vm3, %v610_v60  ;;  %v514_v8 = vpop.f32.mrf.mxu1  ;;  %v532_v11 = vadd.f32 %v1499_v25, %v531_v5  ;;  %v625_v62 = vpack.c.bf16 %v1626_v52, %v1626_v52  ;;  %v864_v17 = vadd.f32 %v863_v0, %v862_v40  ;;  %v552_v41 = vadd.f32 %v1499_v25, %v1612_v39 }
  0xa7   : > { %v495_v13 = vadd.f32 %v1499_v25, %v494_v7  ;;  %v515_v14 = vadd.f32 %v1499_v25, %v514_v8  ;;  %v964_v5 = vsel %vm861_vm7, %v932_v54, 0.0  ;;  %v1653_v7 = vsel %vm861_vm7, %v845_v45, 0.0 }
  0xa8   : > { %v1577_v16 = vmax.f32 %v532_v11, 0.0  ;;  %658 = vst.msk [vmem:[%s1517_s9 + $0x60] sm:$0xf] %vm633_vm3, %v625_v62  ;;  %v965_v23 = vadd.f32 %v964_v5, %v963_v4 }
  0xa9   : > { %v1580_v18 = vmax.f32 %v495_v13, 0.0  ;;  %v1582_v19 = vmax.f32 %v515_v14, 0.0  ;;  %v713_v14 = vadd.s32 %v1505_v30, %v680_v53 }
  0xaa   : > { %v618_v21 = vpack.c.bf16 %v1577_v16, %v1577_v16  ;;  %v846_v11 = vmul.f32 %v1305_v58, %v1577_v16  ;;  %v1675_v16 = vsel %vm861_vm7, %v947_v2, 0.0 }
  0xab   : > { %v603_v22 = vpack.c.bf16 %v1580_v18, %v1580_v18  ;;  %v611_v24 = vpack.c.bf16 %v1582_v19, %v1582_v19  ;;  %v831_v31 = vmul.f32 %v1575_v15, %v1580_v18  ;;  %vm745_vm2 = vcmp.lt.s32.totalorder %v713_v14, 512 }
  0xac   : > { %651 = vst.msk [vmem:[%s1517_s9 + $0x44] sm:$0xf] %vm633_vm3, %v618_v21  ;;  %v1687_v40 = vsel %vm861_vm7, %v846_v11, 0.0  ;;  %v1306_v18 = vsel %vm751_vm1, 1.0, %v1398_v63  ;;  %v1300_v47 = vsel %vm745_vm2, 1.0, %v1398_v63 }
  0xad   : > { %636 = vst.msk [vmem:[%s1517_s9 + $0x8] sm:$0xf] %vm633_vm3, %v603_v22  ;;  %v534_v38 = vpop.f32.mrf.mxu2  ;;  %v692_v22 = vadd.s32 192, %v1502_v27  ;;  %v1677_v26 = vpop.f32.mrf.mxu3  ;;  %v865_v45 = vsel %vm861_vm7, %v831_v31, 0.0  ;;  %v933_v39 = vmul.f32 %v831_v31, %v831_v31 }
  0xae   : > { %v496_v42 = vpop.f32.mrf.mxu0  ;;  %644 = vst.msk [vmem:[%s1517_s9 + $0x28] sm:$0xf] %vm633_vm3, %v611_v24  ;;  %v516_v43 = vpop.f32.mrf.mxu1  ;;  %v535_v33 = vadd.f32 %v1499_v25, %v534_v38  ;;  %v1672_v24 = vsel %vm861_vm7, %v940_v1, 0.0  ;;  %v839_v38 = vmul.f32 %v1597_v29, %v1582_v19  ;;  %v674_v19 = vadd.s32 48, %v1502_v27 }
  0xaf   : > { %v497_v44 = vadd.f32 %v1499_v25, %v496_v42  ;;  %v517_v46 = vadd.f32 %v1499_v25, %v516_v43  ;;  %v725_v43 = vadd.s32 %v1505_v30, %v692_v22  ;;  %v966_v1 = vsel %vm861_vm7, %v933_v39, 0.0 }
  0xb0   : > { %v1623_v49 = vmax.f32 %v535_v33, 0.0  ;;  %v1706_v48 = vsel %vm861_vm7, %v839_v38, 0.0  ;;  %v941_v50 = vmul.f32 %v839_v38, %v839_v38  ;;  %v707_v0 = vadd.s32 %v1505_v30, %v674_v19 }
  0xb1   : > { %v572_v56 = vmax.f32 %v497_v44, 0.0  ;;  %v1628_v57 = vmax.f32 %v517_v46, 0.0  ;;  %v1699_v44 = vmax.f32 %v552_v41, 0.0  ;;  %v948_v46 = vmul.f32 %v846_v11, %v846_v11 }
  0xb2   : > { %v619_v59 = vpack.c.bf16 %v1623_v49, %v1623_v49  ;;  %v847_v54 = vmul.f32 %v1306_v18, %v1623_v49  ;;  %vm757_vm4 = vcmp.lt.s32.totalorder %v725_v43, 512  ;;  %v1729_v3 = vsel %vm861_vm7, %v941_v50, 0.0 }
  0xb3   : > { %v604_v60 = vpack.c.bf16 %v572_v56, %v572_v56  ;;  %v612_v61 = vpack.c.bf16 %v1628_v57, %v1628_v57  ;;  %v832_v33 = vmul.f32 %v1594_v28, %v572_v56  ;;  %v840_v58 = vmul.f32 %v1610_v37, %v1628_v57 }
  0xb4   : > { %652 = vst.msk [vmem:[%s1517_s9 + $0x48] sm:$0xf] %vm633_vm3, %v619_v59  ;;  %v626_v49 = vpack.c.bf16 %v1699_v44, %v1699_v44  ;;  %v1724_v37 = vsel %vm861_vm7, %v948_v46, 0.0  ;;  %v949_v4 = vmul.f32 %v847_v54, %v847_v54  ;;  %v1312_v5 = vsel %vm757_vm4, 1.0, %v1398_v63 }
  0xb5   : > { %637 = vst.msk [vmem:[%s1517_s9 + $0xc] sm:$0xf] %vm633_vm3, %v604_v60  ;;  %v536_v8 = vpop.f32.mrf.mxu2  ;;  %v934_v62 = vmul.f32 %v832_v33, %v832_v33  ;;  %v867_v11 = vsel %vm861_vm7, %v832_v33, 0.0  ;;  %vm739_vm5 = vcmp.lt.s32.totalorder %v707_v0, 512  ;;  %v687_v22 = vadd.s32 152, %v1502_v27 }
  0xb6   : > { %v499_v10 = vpop.f32.mrf.mxu0  ;;  %645 = vst.msk [vmem:[%s1517_s9 + $0x2c] sm:$0xf] %vm633_vm3, %v612_v61  ;;  %v519_v13 = vpop.f32.mrf.mxu1  ;;  %v537_v35 = vadd.f32 %v1499_v25, %v536_v8  ;;  %v866_v61 = vadd.f32 %v865_v45, %v864_v17  ;;  %v681_v8 = vadd.s32 104, %v1502_v27  ;;  %v967_v31 = vadd.f32 %v966_v1, %v965_v23 }
  0xb7   : > { %v500_v20 = vadd.f32 %v1499_v25, %v499_v10  ;;  %v520_v21 = vadd.f32 %v1499_v25, %v519_v13  ;;  %659 = vst.msk [vmem:[%s1517_s9 + $0x64] sm:$0xf] %vm633_vm3, %v626_v49  ;;  %v1735_v10 = vpop.f32.mrf.mxu3  ;;  %v942_v13 = vmul.f32 %v840_v58, %v840_v58  ;;  %v675_v38 = vadd.s32 56, %v1502_v27 }
  0xb8   : > { %v1697_v29 = vmax.f32 %v537_v35, 0.0  ;;  %v1746_v35 = vsel %vm861_vm7, %v847_v54, 0.0  ;;  %v1754_v18 = vsel %vm861_vm7, %v949_v4, 0.0  ;;  %v1294_v45 = vsel %vm739_vm5, 1.0, %v1398_v63 }
  0xb9   : > { %v573_v32 = vmax.f32 %v500_v20, 0.0  ;;  %v1681_v34 = vmax.f32 %v520_v21, 0.0  ;;  %v968_v20 = vsel %vm861_vm7, %v934_v62, 0.0  ;;  %v1762_v33 = vsel %vm861_vm7, %v942_v13, 0.0 }
  0xba   : > { %v620_v56 = vpack.c.bf16 %v1697_v29, %v1697_v29  ;;  %v969_v43 = vadd.f32 %v968_v20, %v967_v31  ;;  %v714_v46 = vadd.s32 %v1505_v30, %v681_v8  ;;  %v720_v50 = vadd.s32 %v1505_v30, %v687_v22 }
  0xbb   : > { %v605_v42 = vpack.c.bf16 %v573_v32, %v573_v32  ;;  %v613_v15 = vpack.c.bf16 %v1681_v34, %v1681_v34  ;;  %v833_v21 = vmul.f32 %v1607_v36, %v573_v32  ;;  %v1757_v36 = vmul.f32 %v1312_v5, %v1626_v52 }
  0xbc   : > { %653 = vst.msk [vmem:[%s1517_s9 + $0x4c] sm:$0xf] %vm633_vm3, %v620_v56  ;;  %vm746_vm6 = vcmp.lt.s32.totalorder %v714_v46, 512  ;;  %vm752_vm8 = vcmp.lt.s32.totalorder %v720_v50, 512  ;;  %v682_v13 = vadd.s32 112, %v1502_v27 }
  0xbd   : > { %638 = vst.msk [vmem:[%s1517_s9 + $0x10] sm:$0xf] %vm633_vm3, %v605_v42  ;;  %v539_v60 = vpop.f32.mrf.mxu2  ;;  %v868_v42 = vadd.f32 %v867_v11, %v866_v61  ;;  %v935_v39 = vmul.f32 %v833_v21, %v833_v21  ;;  %v555_v61 = vadd.f32 %v1499_v25, %v1677_v26  ;;  %v1301_v22 = vsel %vm746_vm6, 1.0, %v1398_v63 }
  0xbe   : > { %v501_v28 = vpop.f32.mrf.mxu0  ;;  %646 = vst.msk [vmem:[%s1517_s9 + $0x30] sm:$0xf] %vm633_vm3, %v613_v15  ;;  %v521_v55 = vpop.f32.mrf.mxu1  ;;  %v540_v41 = vadd.f32 %v1499_v25, %v539_v60  ;;  %v1751_v15 = vsel %vm861_vm7, %v840_v58, 0.0  ;;  %v715_v50 = vadd.s32 %v1505_v30, %v682_v13 }
  0xbf   : > { %v502_v53 = vadd.f32 %v1499_v25, %v501_v28  ;;  %v522_v59 = vadd.f32 %v1499_v25, %v521_v55  ;;  %v708_v55 = vadd.s32 %v1505_v30, %v675_v38  ;;  %v1791_v1 = vmax.f32 %v555_v61, 0.0 }
  0xc0   : > { %v1772_v56 = vmax.f32 %v540_v41, 0.0  ;;  %v970_v26 = vsel %vm861_vm7, %v935_v39, 0.0  ;;  %v1307_v41 = vsel %vm752_vm8, 1.0, %v1398_v63  ;;  %vm747_vm10 = vcmp.lt.s32.totalorder %v715_v50, 512 }
  0xc1   : > { %v574_v57 = vmax.f32 %v502_v53, 0.0  ;;  %v1726_v2 = vmax.f32 %v522_v59, 0.0  ;;  %v1775_v53 = vmul.f32 %v1300_v47, %v1681_v34  ;;  %v1779_v59 = vmul.f32 %v1757_v36, %v1757_v36 }
  0xc2   : > { %v621_v49 = vpack.c.bf16 %v1772_v56, %v1772_v56  ;;  %v693_v34 = vadd.s32 200, %v1502_v27  ;;  %vm740_vm9 = vcmp.lt.s32.totalorder %v708_v55, 512  ;;  %v971_v38 = vadd.f32 %v970_v26, %v969_v43 }
  0xc3   : > { %v606_v14 = vpack.c.bf16 %v574_v57, %v574_v57  ;;  %v614_v17 = vpack.c.bf16 %v1726_v2, %v1726_v2  ;;  %v834_v28 = vmul.f32 %v1663_v12, %v574_v57  ;;  %v869_v12 = vsel %vm861_vm7, %v833_v21, 0.0  ;;  %v1793_v57 = vpop.f32.mrf.mxu3 }
  0xc4   : > { %v870_v5 = vadd.f32 %v869_v12, %v868_v42  ;;  %v943_v8 = vmul.f32 %v1775_v53, %v1775_v53  ;;  %654 = vst.msk [vmem:[%s1517_s9 + $0x50] sm:$0xf] %vm633_vm3, %v621_v49  ;;  %v1295_v42 = vsel %vm740_vm9, 1.0, %v1398_v63  ;;  %v683_v43 = vadd.s32 120, %v1502_v27 }
  0xc5   : > { %639 = vst.msk [vmem:[%s1517_s9 + $0x14] sm:$0xf] %vm633_vm3, %v606_v14  ;;  %v541_v58 = vpop.f32.mrf.mxu2  ;;  %v936_v4 = vmul.f32 %v834_v28, %v834_v28  ;;  %v627_v14 = vpack.c.bf16 %v1791_v1, %v1791_v1  ;;  %v871_v20 = vsel %vm861_vm7, %v834_v28, 0.0  ;;  %v848_v13 = vmul.f32 %v1307_v41, %v1697_v29 }
  0xc6   : > { %v504_v23 = vpop.f32.mrf.mxu0  ;;  %647 = vst.msk [vmem:[%s1517_s9 + $0x34] sm:$0xf] %vm633_vm3, %v614_v17  ;;  %v524_v32 = vpop.f32.mrf.mxu1  ;;  %v872_v46 = vadd.f32 %v871_v20, %v870_v5  ;;  %v716_v5 = vadd.s32 %v1505_v30, %v683_v43  ;;  %v986_v29 = vsel %vm861_vm7, %v943_v8, 0.0  ;;  %vm1032_vm8 = vcmask 1040384  }
  0xc7   : > { %v505_v19 = vadd.f32 %v1499_v25, %v504_v23  ;;  %v525_v52 = vadd.f32 %v1499_v25, %v524_v32  ;;  %v688_v23 = vadd.s32 160, %v1502_v27  ;;  %660 = vst.msk [vmem:[%s1517_s9 + $0x68] sm:$0xf] %vm633_vm3, %v627_v14  ;;  %v972_v32 = vsel %vm861_vm7, %v936_v4, 0.0 }
  0xc8   : > { %vm748_vm11 = vcmp.lt.s32.totalorder %v716_v5, 512  ;;  %v950_v8 = vmul.f32 %v848_v13, %v848_v13 }
  0xc9   : > { %v575_v54 = vmax.f32 %v505_v19, 0.0  ;;  %v1781_v60 = vmax.f32 %v525_v52, 0.0  ;;  %v542_v52 = vadd.f32 %v1499_v25, %v541_v58 }
  0xcb   : > { %v607_v62 = vpack.c.bf16 %v575_v54, %v575_v54  ;;  %v835_v0 = vmul.f32 %v1294_v45, %v575_v54  ;;  %v615_v47 = vpack.c.bf16 %v1781_v60, %v1781_v60 }
  0xcd   : > { %640 = vst.msk [vmem:[%s1517_s9 + $0x18] sm:$0xf] %vm633_vm3, %v607_v62  ;;  %v937_v21 = vmul.f32 %v835_v0, %v835_v0  ;;  %v873_v19 = vsel %vm861_vm7, %v835_v0, 0.0  ;;  %v544_v12 = vpop.f32.mrf.mxu2  ;;  %v973_v62 = vadd.f32 %v972_v32, %v971_v38  ;;  %v1824_v0 = vadd.s32 %v1505_v30, %v693_v34  ;;  %v1835_v34 = vpop.f32.mrf.mxu3 }
  0xce   : > { %v506_v11 = vpop.f32.mrf.mxu0  ;;  %648 = vst.msk [vmem:[%s1517_s9 + $0x38] sm:$0xf] %vm633_vm3, %v615_v47  ;;  %v526_v17 = vpop.f32.mrf.mxu1  ;;  %v874_v49 = vadd.f32 %v873_v19, %v872_v46  ;;  %v1826_v47 = vmax.f32 %v542_v52, 0.0  ;;  %v885_v38 = vsel %vm861_vm7, %v1775_v53, 0.0  ;;  %v842_v32 = vmul.f32 %v1301_v22, %v1726_v2 }
  0xcf   : > { %v507_v31 = vadd.f32 %v1499_v25, %v506_v11  ;;  %v527_v39 = vadd.f32 %v1499_v25, %v526_v17  ;;  %v974_v28 = vsel %vm861_vm7, %v937_v21, 0.0  ;;  %v721_v21 = vadd.s32 %v1505_v30, %v688_v23 }
  0xd0   : > { %v975_v11 = vadd.f32 %v974_v28, %v973_v62  ;;  %v622_v17 = vpack.c.bf16 %v1826_v47, %v1826_v47  ;;  %v545_v23 = vadd.f32 %v1499_v25, %v544_v12  ;;  %vm758_vm12 = vcmp.lt.s32.totalorder %v1824_v0, 512 }
  0xd1   : > { %v576_v45 = vmax.f32 %v507_v31, 0.0  ;;  %v584_v61 = vmax.f32 %v527_v39, 0.0  ;;  %v557_v31 = vadd.f32 %v1499_v25, %v1735_v10  ;;  %vm753_vm13 = vcmp.lt.s32.totalorder %v721_v21, 512 }
  0xd2   : > { %655 = vst.msk [vmem:[%s1517_s9 + $0x54] sm:$0xf] %vm633_vm3, %v622_v17  ;;  %v689_v2 = vadd.s32 168, %v1502_v27  ;;  %v1867_v43 = vmax.f32 %v545_v23, 0.0  ;;  %v944_v50 = vmul.f32 %v842_v32, %v842_v32  ;;  %v560_v28 = vadd.f32 %v1499_v25, %v1793_v57 }
  0xd3   : > { %v608_v54 = vpack.c.bf16 %v576_v45, %v576_v45  ;;  %v836_v55 = vmul.f32 %v1295_v42, %v576_v45  ;;  %v616_v58 = vpack.c.bf16 %v584_v61, %v584_v61  ;;  %v1850_v19 = vmax.f32 %v557_v31, 0.0 }
  0xd4   : > { %v1854_v45 = vsel %vm861_vm7, %v848_v13, 0.0  ;;  %v623_v12 = vpack.c.bf16 %v1867_v43, %v1867_v43  ;;  %v1308_v62 = vsel %vm753_vm13, 1.0, %v1398_v63  ;;  %v988_v5 = vsel %vm861_vm7, %v944_v50, 0.0 }
  0xd5   : > { %641 = vst.msk [vmem:[%s1517_s9 + $0x1c] sm:$0xf] %vm633_vm3, %v608_v54  ;;  %v875_v26 = vsel %vm861_vm7, %v836_v55, 0.0  ;;  %v938_v4 = vmul.f32 %v836_v55, %v836_v55  ;;  %v628_v22 = vpack.c.bf16 %v1850_v19, %v1850_v19  ;;  %v546_v54 = vpop.f32.mrf.mxu2  ;;  %v694_v55 = vadd.s32 208, %v1502_v27 }
  0xd6   : > { %v876_v14 = vadd.f32 %v875_v26, %v874_v49  ;;  %649 = vst.msk [vmem:[%s1517_s9 + $0x3c] sm:$0xf] %vm633_vm3, %v616_v58  ;;  %v1883_v26 = vmax.f32 %v560_v28, 0.0  ;;  %v564_v58 = vpop.f32.mrf.mxu3  ;;  %v691_v13 = vadd.s32 184, %v1502_v27  ;;  %v562_v23 = vadd.f32 %v1499_v25, %v1835_v34 }
  0xd7   : > { %v976_v20 = vsel %vm861_vm7, %v938_v4, 0.0  ;;  %661 = vst.msk [vmem:[%s1517_s9 + $0x6c] sm:$0xf] %vm633_vm3, %v628_v22  ;;  %v695_v50 = vadd.s32 216, %v1502_v27  ;;  %v565_v28 = vadd.f32 %v1499_v25, %v564_v58 }
  0xd8   : > { %v878_v41 = vadd.f32 %v1631_v51, %v876_v14  ;;  %v977_v42 = vadd.f32 %v976_v20, %v975_v11  ;;  %v1302_v51 = vsel %vm747_vm10, 1.0, %v1398_v63  ;;  %656 = vst.msk [vmem:[%s1517_s9 + $0x58] sm:$0xf] %vm633_vm3, %v623_v12  ;;  %v727_v20 = vadd.s32 %v1505_v30, %v694_v55 }
  0xd9   : > { %v843_v52 = vmul.f32 %v1302_v51, %v1781_v60  ;;  %v690_v60 = vadd.s32 176, %v1502_v27  ;;  %v1000_v51 = vsel %vm861_vm7, %v950_v8, 0.0  ;;  %v1913_v34 = vmax.f32 %v562_v23, 0.0 }
  0xda   : > { %v880_v10 = vadd.f32 %v1656_v9, %v878_v41  ;;  %v979_v53 = vadd.f32 %v1648_v6, %v977_v42  ;;  %v1303_v9 = vsel %vm748_vm11, 1.0, %v1398_v63  ;;  %v887_v6 = vsel %vm861_vm7, %v842_v32, 0.0 }
  0xdb   : > { %v844_v49 = vmul.f32 %v1303_v9, %v584_v61  ;;  %v945_v11 = vmul.f32 %v843_v52, %v843_v52  ;;  %v629_v61 = vpack.c.bf16 %v1883_v26, %v1883_v26  ;;  %v889_v21 = vsel %vm861_vm7, %v843_v52, 0.0 }
  0xdc   : > { %v882_v39 = vadd.f32 %v1706_v48, %v880_v10  ;;  %v981_v46 = vadd.f32 %v1672_v24, %v979_v53  ;;  %v724_v53 = vadd.s32 %v1505_v30, %v691_v13  ;;  %vm759_vm0 = vcmp.lt.s32.totalorder %v727_v20, 512 }
  0xdd   : > { %v946_v31 = vmul.f32 %v844_v49, %v844_v49  ;;  %662 = vst.msk [vmem:[%s1517_s9 + $0x70] sm:$0xf] %vm633_vm3, %v629_v61  ;;  %v630_v52 = vpack.c.bf16 %v1913_v34, %v1913_v34 }
  0xde   : > { %v983_v48 = vadd.f32 %v1729_v3, %v981_v46  ;;  %v884_v24 = vadd.f32 %v1751_v15, %v882_v39  ;;  %v722_v3 = vadd.s32 %v1505_v30, %v689_v2  ;;  %v547_v15 = vadd.f32 %v1499_v25, %v546_v54  ;;  %v566_v12 = vpop.f32.mrf.mxu3 }
  0xdf   : > { %v1313_v2 = vsel %vm758_vm12, 1.0, %v1398_v63  ;;  %v992_v46 = vsel %vm861_vm7, %v946_v31, 0.0  ;;  %vm756_vm1 = vcmp.lt.s32.totalorder %v724_v53, 512  ;;  %663 = vst.msk [vmem:[%s1517_s9 + $0x74] sm:$0xf] %vm633_vm3, %v630_v52  ;;  %v567_v58 = vadd.f32 %v1499_v25, %v566_v12 }
  0xe0   : > { %v886_v4 = vadd.f32 %v885_v38, %v884_v24  ;;  %v985_v57 = vadd.f32 %v1762_v33, %v983_v48  ;;  %v849_v33 = vmul.f32 %v1308_v62, %v1772_v56  ;;  %v723_v38 = vadd.s32 %v1505_v30, %v690_v60 }
  0xe1   : > { %v592_v41 = vmax.f32 %v547_v15, 0.0  ;;  %vm754_vm14 = vcmp.lt.s32.totalorder %v722_v3, 512  ;;  %v891_v56 = vsel %vm861_vm7, %v844_v49, 0.0  ;;  %v1314_v62 = vsel %vm759_vm0, 1.0, %v1398_v63 }
  0xe2   : > { %v888_v14 = vadd.f32 %v887_v6, %v886_v4  ;;  %v987_v17 = vadd.f32 %v986_v29, %v985_v57  ;;  %v990_v29 = vsel %vm861_vm7, %v945_v11, 0.0  ;;  %v1309_v9 = vsel %vm754_vm14, 1.0, %v1398_v63 }
  0xe3   : > { %v624_v10 = vpack.c.bf16 %v592_v41, %v592_v41  ;;  %vm755_vm15 = vcmp.lt.s32.totalorder %v723_v38, 512  ;;  %v951_v0 = vmul.f32 %v849_v33, %v849_v33  ;;  %v850_v24 = vmul.f32 %v1309_v9, %v1826_v47 }
  0xe4   : > { %v890_v42 = vadd.f32 %v889_v21, %v888_v14  ;;  %v989_v32 = vadd.f32 %v988_v5, %v987_v17  ;;  %v1310_v55 = vsel %vm755_vm15, 1.0, %v1398_v63  ;;  %v696_v49 = vadd.s32 224, %v1502_v27 }
  0xe5   : > { %657 = vst.msk [vmem:[%s1517_s9 + $0x5c] sm:$0xf] %vm633_vm3, %v624_v10  ;;  %v1929_v60 = vmax.f32 %v565_v28, 0.0  ;;  %v728_v47 = vadd.s32 %v1505_v30, %v695_v50  ;;  %v1311_v4 = vsel %vm756_vm1, 1.0, %v1398_v63  ;;  %v851_v57 = vmul.f32 %v1310_v55, %v1867_v43 }
  0xe6   : > { %v991_v22 = vadd.f32 %v990_v29, %v989_v32  ;;  %v892_v39 = vadd.f32 %v891_v56, %v890_v42  ;;  %v697_v3 = vadd.s32 232, %v1502_v27  ;;  %v1002_v5 = vsel %vm861_vm7, %v951_v0, 0.0 }
  0xe7   : > { %v631_v15 = vpack.c.bf16 %v1929_v60, %v1929_v60  ;;  %v952_v11 = vmul.f32 %v850_v24, %v850_v24  ;;  %v729_v61 = vadd.s32 %v1505_v30, %v696_v49  ;;  %v852_v13 = vmul.f32 %v1311_v4, %v592_v41 }
  0xe8   : > { %v894_v6 = vadd.f32 %v1653_v7, %v892_v39  ;;  %v993_v8 = vadd.f32 %v992_v46, %v991_v22  ;;  %v901_v7 = vsel %vm861_vm7, %v849_v33, 0.0  ;;  %v698_v43 = vadd.s32 240, %v1502_v27 }
  0xe9   : > { %664 = vst.msk [vmem:[%s1517_s9 + $0x78] sm:$0xf] %vm633_vm3, %v631_v15  ;;  %v600_v14 = vmax.f32 %v567_v58, 0.0  ;;  %v903_v33 = vsel %vm861_vm7, %v850_v24, 0.0  ;;  %vm760_vm2 = vcmp.lt.s32.totalorder %v728_v47, 512  ;;  %v953_v20 = vmul.f32 %v851_v57, %v851_v57 }
  0xea   : > { %v896_v54 = vadd.f32 %v1687_v40, %v894_v6  ;;  %v995_v48 = vadd.f32 %v1675_v16, %v993_v8  ;;  %v854_v31 = vmul.f32 %v1313_v2, %v1699_v44  ;;  %v1004_v42 = vsel %vm861_vm7, %v952_v11, 0.0 }
  0xeb   : > { %v632_v21 = vpack.c.bf16 %v600_v14, %v600_v14  ;;  %v905_v32 = vsel %vm861_vm7, %v851_v57, 0.0  ;;  %vm761_vm4 = vcmp.lt.s32.totalorder %v729_v61, 512  ;;  %v954_v23 = vmul.f32 %v852_v13, %v852_v13 }
  0xec   : > { %v997_v40 = vadd.f32 %v1724_v37, %v995_v48  ;;  %v898_v16 = vadd.f32 %v1746_v35, %v896_v54  ;;  %v731_v29 = vadd.s32 %v1505_v30, %v698_v43  ;;  %v855_v56 = vmul.f32 %v1314_v62, %v1791_v1 }
  0xed   : > { %665 = vst.msk [vmem:[%s1517_s9 + $0x7c] sm:$0xf] %vm633_vm3, %v632_v21  ;;  %v1006_v44 = vsel %vm861_vm7, %v953_v20, 0.0  ;;  %v909_v22 = vsel %vm861_vm7, %v1757_v36, 0.0  ;;  %v1316_v46 = vsel %vm761_vm4, 1.0, %v1398_v63  ;;  %v956_v1 = vmul.f32 %v854_v31, %v854_v31 }
  0xee   : > { %v900_v37 = vadd.f32 %v1854_v45, %v898_v16  ;;  %v999_v35 = vadd.f32 %v1754_v18, %v997_v40  ;;  %v730_v45 = vadd.s32 %v1505_v30, %v697_v3  ;;  %v699_v18 = vadd.s32 248, %v1502_v27 }
  0xef   : > { %v1315_v27 = vsel %vm760_vm2, 1.0, %v1398_v63  ;;  %v1008_v8 = vsel %vm861_vm7, %v954_v23, 0.0  ;;  %vm763_vm3 = vcmp.lt.s32.totalorder %v731_v29, 512  ;;  %v1010_v50 = vsel %vm861_vm7, %v1779_v59, 0.0 }
  0xf0   : > { %v902_v17 = vadd.f32 %v901_v7, %v900_v37  ;;  %v1001_v25 = vadd.f32 %v1000_v51, %v999_v35  ;;  %v907_v51 = vsel %vm861_vm7, %v852_v13, 0.0  ;;  %vm762_vm5 = vcmp.lt.s32.totalorder %v730_v45, 512 }
  0xf1   : > { %v732_v2 = vadd.s32 %v1505_v30, %v699_v18  ;;  %v856_v6 = vmul.f32 %v1315_v27, %v1850_v19  ;;  %v1317_v30 = vsel %vm762_vm5, 1.0, %v1398_v63  ;;  %v911_v28 = vsel %vm861_vm7, %v854_v31, 0.0 }
  0xf2   : > { %v904_v38 = vadd.f32 %v903_v33, %v902_v17  ;;  %v1003_v41 = vadd.f32 %v1002_v5, %v1001_v25  ;;  %v957_v36 = vmul.f32 %v855_v56, %v855_v56  ;;  %v857_v54 = vmul.f32 %v1316_v46, %v1883_v26 }
  0xf3   : > { %vm764_vm6 = vcmp.lt.s32.totalorder %v732_v2, 512  ;;  %v1318_v19 = vsel %vm763_vm3, 1.0, %v1398_v63  ;;  %v1012_v55 = vsel %vm861_vm7, %v956_v1, 0.0  ;;  %v913_v12 = vsel %vm861_vm7, %v855_v56, 0.0 }
  0xf4   : > { %v1005_v10 = vadd.f32 %v1004_v42, %v1003_v41  ;;  %v906_v53 = vadd.f32 %v905_v32, %v904_v38  ;;  %v958_v7 = vmul.f32 %v856_v6, %v856_v6  ;;  %v858_v59 = vmul.f32 %v1317_v30, %v1913_v34 }
  0xf5   : > { %v1319_v40 = vsel %vm764_vm6, 1.0, %v1398_v63  ;;  %v1014_v16 = vsel %vm861_vm7, %v957_v36, 0.0  ;;  %v915_v26 = vsel %vm861_vm7, %v856_v6, 0.0  ;;  %v959_v47 = vmul.f32 %v857_v54, %v857_v54 }
  0xf6   : > { %v1007_v39 = vadd.f32 %v1006_v44, %v1005_v10  ;;  %v908_v9 = vadd.f32 %v907_v51, %v906_v53  ;;  %v859_v4 = vmul.f32 %v1318_v19, %v1929_v60  ;;  %v1016_v15 = vsel %vm861_vm7, %v958_v7, 0.0 }
  0xf7   : > { %v917_v58 = vsel %vm861_vm7, %v857_v54, 0.0  ;;  %v960_v5 = vmul.f32 %v858_v59, %v858_v59  ;;  %v860_v37 = vmul.f32 %v1319_v40, %v600_v14  ;;  %v1018_v35 = vsel %vm861_vm7, %v959_v47, 0.0 }
  0xf8   : > { %v910_v0 = vadd.f32 %v909_v22, %v908_v9  ;;  %v1009_v52 = vadd.f32 %v1008_v8, %v1007_v39  ;;  %v919_v63 = vsel %vm861_vm7, %v858_v59, 0.0  ;;  %v961_v61 = vmul.f32 %v859_v4, %v859_v4 }
  0xf9   : > { %v1020_v60 = vsel %vm861_vm7, %v960_v5, 0.0  ;;  %v921_v17 = vsel %vm861_vm7, %v859_v4, 0.0  ;;  %v962_v33 = vmul.f32 %v860_v37, %v860_v37  ;;  %v923_v45 = vsel %vm861_vm7, %v860_v37, 0.0 }
  0xfa   : > { %v912_v48 = vadd.f32 %v911_v28, %v910_v0  ;;  %v1011_v24 = vadd.f32 %v1010_v50, %v1009_v52  ;;  %v1022_v14 = vsel %vm861_vm7, %v961_v61, 0.0 }
  0xfb   : > { %v1024_v31 = vsel %vm861_vm7, %v962_v33, 0.0  ;;  %vm1034_vm7 = vcmask 58368  }
  0xfc   : > { %v1013_v62 = vadd.f32 %v1012_v55, %v1011_v24  ;;  %v914_v49 = vadd.f32 %v913_v12, %v912_v48 }
  0xfe   : > { %v916_v57 = vadd.f32 %v915_v26, %v914_v49  ;;  %v1015_v3 = vadd.f32 %v1014_v16, %v1013_v62 }
 0x100   : > { %v918_v34 = vadd.f32 %v917_v58, %v916_v57  ;;  %v1017_v11 = vadd.f32 %v1016_v15, %v1015_v3 }
 0x102   : > { %v920_v13 = vadd.f32 %v919_v63, %v918_v34  ;;  %v1019_v43 = vadd.f32 %v1018_v35, %v1017_v11 }
 0x104   : > { %v1021_v25 = vadd.f32 %v1020_v60, %v1019_v43  ;;  %v922_v20 = vadd.f32 %v921_v17, %v920_v13 }
 0x106   : > { %v1023_v21 = vadd.f32 %v1022_v14, %v1021_v25  ;;  %v924_v18 = vadd.f32 %v923_v45, %v922_v20 }
 0x108   : > { %v925_v38 = vrot.slane %v924_v18, 4  ;;  %v1025_v41 = vadd.f32 %v1024_v31, %v1023_v21 }
 0x10a   : > { %v926_v42 = vadd.f32 %v925_v38, %v924_v18  ;;  %v1026_v32 = vrot.slane %v1025_v41, 4 }
 0x10c   : > { %v927_v23 = vrot.slane %v926_v42, 2  ;;  %v1027_v29 = vadd.f32 %v1026_v32, %v1025_v41 }
 0x10e   : > { %v928_v56 = vadd.f32 %v927_v23, %v926_v42  ;;  %v1028_v10 = vrot.slane %v1027_v29, 2 }
 0x110   : > { %v929_v27 = vrot.slane %v928_v56, 1  ;;  %v1029_v53 = vadd.f32 %v1028_v10, %v1027_v29 }
 0x112   : > { %v1030_v44 = vrot.slane %v1029_v53, 1  ;;  %v930_v51 = vadd.f32 %v929_v27, %v928_v56 }
 0x114   : > { %v1031_v2 = vadd.f32 %v1030_v44, %v1029_v53 }
 0x116   : > { %v1033_v22 = vsel %vm1032_vm8, %v930_v51, %v1031_v2 }
 0x117   : > { %1035 = vst.msk [vmem:[%s289_s13] sm:$0x3] %vm1034_vm7, %v1033_v22 }
 0x118 PF: > { %s15_s17 = sadd.s32 1, %s1395_s17   ;;  %s2009_s15 = smov %s1391_s16 }
 0x119   : > { %p12_p6 = scmp.ge.s32.totalorder %s15_s17, 4   ;;  %s2010_s16 = smov %s2012_s18 }
 0x11b   :  { %14 = sbr.rel (!%p12_p6) target bundleno = 2 (0x2), region = 80 }

// kernel: rhnet_fpn_forward.13
= control target key start
LH: loop header
LB: loop body
LE: loop exit
PB: predicated region body
PF: predicated region fallthrough
CT: control target
= control target key end

     0   :  { %s847_s15 = smov 0   ;;  %s849_s16 = smov 0   ;;  %s962_s0 = inlined_call_operand.vmem [shape: bf16[1,128,72], index: 0, kind: input, shape index: {}]   ;;  %s963_s1 = inlined_call_operand.vmem [shape: bf16[1,72,8], index: 1, kind: input, shape index: {}]   ;;  %s964_s2 = inlined_call_operand.vmem [shape: f32[1,1,8], index: 2, kind: input, shape index: {}]   ;;  %s965_s3 = inlined_call_operand.vmem [shape: bf16[1,128,8], index: 3, kind: output, shape index: {0}]   ;;  %s966_s4 = inlined_call_operand.vmem [shape: f32[2,2,8], index: 4, kind: output, shape index: {1}]  }
   0x1   :  { %s851_s17 = smov 0  }
   0x2 LB: > { %s24_s18 = sadd.s32 1, %s815_s16  ;;  %p695_p0 = scmp.ge.s32.totalorder %s819_s17, 1  ;;  %s819_s17 = sphi %s851_s17, %s15_s17   ;;  %s815_s16 = sphi %s849_s16, %s968_s16   ;;  %s811_s15 = sphi %s847_s15, %s967_s15  }
   0x3   : > { %p25_p1 = scmp.ge.s32.totalorder %s24_s18, 2  ;;  %p208_p2 = scmp.lt.s32.totalorder %s819_s17, 3 }
   0x5   : > { %s970_s18 = smov (%p25_p1, %s24_s18), 0  ;;  %p209_p3 = pnand %p695_p0, %p208_p2 }
   0x6   : > { %s696_s21 = sshll.u32 (!%p209_p3), %s811_s15, 3  ;;  %s737_s8 = sshll.u32 (!%p209_p3), %s811_s15, 6 }
   0x7   : > { %212 = sbr.rel (%p209_p3) target bundleno = 208 (0xd0), region = 32  ;;  %p259_p4 = scmp.lt.s32.totalorder (!%p209_p3), %s696_s21, 15 }
   0x8   : > { %p286_p5 = scmp.lt.s32.totalorder (!%p209_p3), %s811_s15, 1 }
   0xc   : > { %v309_v0 = vld [vmem:[%s963_s1 + $0x20] sm:$0xf]  ;;  %vm374_vm0 = vcmask 1043456   ;;  %v755_v4 = vld [vmem:[%s963_s1 + $0x18] sm:$0xff]  ;;  %v754_v5 = vld [vmem:[%s963_s1 + $0x10] sm:$0xff]  ;;  %s972_s21 = smov (!%p259_p4, %s696_s21), 15  ;;  %v433_v12 = vlaneseq  ;;  %v442_v14 = vstv %s737_s8 }
   0xd   : > { %v351_v1 = vunpack.c.l.b16 %v309_v0  ;;  %v753_v6 = vld [vmem:[%s963_s1 + $0x8] sm:$0xff]  ;;  %s697_s28 = sshll.u32 %s972_s21, 2  ;;  %v752_v7 = vld [vmem:[%s963_s1] sm:$0xff]  ;;  %vm361_vm1 = vcmask 588800   ;;  %vm423_vm3 = vcmask 60416   ;;  %v821_v35 = vmov 0.0  }
   0xe   : > { %s264_s7 = scalar_lea.vmem %s962_s0, %s697_s28  ;;  %v434_v13 = vshrl.u32 %v433_v12, 7  ;;  %v895_v16 = vld [vmem:[%s964_s2] ss:$0 sm:$0xff]  ;;  %s904_s13 = scalar_lea.vmem %s965_s3, %s697_s28  ;;  %vm483_vm5 = vcmask 64512   ;;  %vm534_vm12 = vcmask 1040384   ;;  %vm536_vm13 = vcmask 58368  }
   0xf   : > { %v356_v2 = vpack.c.b16 %v351_v1, %v351_v1  ;;  %v748_v8 = vld [vmem:[%s264_s7] sm:$0xff]  ;;  %v749_v9 = vld [vmem:[%s264_s7 + $0x8] sm:$0xff]  ;;  %v750_v10 = vld [vmem:[%s264_s7 + $0x10] sm:$0xff]  ;;  %s974_s15 = smov (!%p286_p5, %s811_s15), 1 }
  0x10   : > { %v751_v11 = vld [vmem:[%s264_s7 + $0x18] sm:$0xff]  ;;  %v436_v15 = vadd.s32 16, %v434_v13  ;;  %v443_v17 = vadd.s32 %v442_v14, %v434_v13  ;;  %v438_v18 = vadd.s32 32, %v434_v13  ;;  %v435_v19 = vadd.s32 8, %v434_v13  ;;  %s700_s14 = sshll.u32 %s974_s15, 1 }
  0x11   : > { %v376_v3 = vsel %vm374_vm0, %v356_v2, 0  ;;  %v437_v20 = vadd.s32 24, %v434_v13  ;;  %v440_v31 = vadd.s32 48, %v434_v13  ;;  %v439_v32 = vadd.s32 40, %v434_v13  ;;  %s289_s21 = scalar_lea.vmem %s966_s4, %s700_s14 }
  0x12   : > { %381 = vmatpush.bf16.msra.mxu0 %v376_v3  ;;  %756 = vmatpush.bf16.msra.mxu1 %v376_v3  ;;  %v445_v23 = vadd.s32 %v442_v14, %v436_v15  ;;  %vm451_vm2 = vcmp.lt.s32.totalorder %v443_v17, 128  ;;  %v447_v26 = vadd.s32 %v442_v14, %v438_v18  ;;  %v444_v27 = vadd.s32 %v442_v14, %v435_v19 }
  0x13   : > { %757 = vmatpush.bf16.msra.mxu2 %v376_v3  ;;  %758 = vmatpush.bf16.msra.mxu3 %v376_v3  ;;  %v446_v28 = vadd.s32 %v442_v14, %v437_v20  ;;  %v441_v33 = vadd.s32 56, %v434_v13  ;;  %v738_v36 = vsel %vm451_vm2, 1.0, %v821_v35  ;;  %v449_v41 = vadd.s32 %v442_v14, %v440_v31 }
  0x14   : > { %vm453_vm4 = vcmp.lt.s32.totalorder %v445_v23, 128  ;;  %vm455_vm6 = vcmp.lt.s32.totalorder %v447_v26, 128  ;;  %vm452_vm7 = vcmp.lt.s32.totalorder %v444_v27, 128  ;;  %v448_v42 = vadd.s32 %v442_v14, %v439_v32 }
  0x15   : > { %v740_v38 = vsel %vm453_vm4, 1.0, %v821_v35  ;;  %vm454_vm8 = vcmp.lt.s32.totalorder %v446_v28, 128  ;;  %v450_v48 = vadd.s32 %v442_v14, %v441_v33  ;;  %v742_v49 = vsel %vm455_vm6, 1.0, %v821_v35 }
  0x16   : > { %382 = vmatpush.bf16.msra.mxu0 %v755_v4  ;;  %759 = vmatpush.bf16.msra.mxu1 %v755_v4  ;;  %v739_v51 = vsel %vm452_vm7, 1.0, %v821_v35  ;;  %v741_v56 = vsel %vm454_vm8, 1.0, %v821_v35  ;;  %vm457_vm9 = vcmp.lt.s32.totalorder %v449_v41, 128  ;;  %vm456_vm10 = vcmp.lt.s32.totalorder %v448_v42, 128 }
  0x17   : > { %760 = vmatpush.bf16.msra.mxu2 %v755_v4  ;;  %761 = vmatpush.bf16.msra.mxu3 %v755_v4  ;;  %vm458_vm11 = vcmp.lt.s32.totalorder %v450_v48, 128  ;;  %v744_v3 = vsel %vm457_vm9, 1.0, %v821_v35  ;;  %v743_v4 = vsel %vm456_vm10, 1.0, %v821_v35 }
  0x18   : > { %v745_v14 = vsel %vm458_vm11, 1.0, %v821_v35 }
  0x1a   : > { %383 = vmatpush.bf16.msra.mxu0 %v754_v5  ;;  %762 = vmatpush.bf16.msra.mxu1 %v754_v5 }
  0x1b   : > { %763 = vmatpush.bf16.msra.mxu2 %v754_v5  ;;  %764 = vmatpush.bf16.msra.mxu3 %v754_v5 }
  0x1e   : > { %384 = vmatpush.bf16.msra.mxu0 %v753_v6  ;;  %765 = vmatpush.bf16.msra.mxu1 %v753_v6 }
  0x1f   : > { %766 = vmatpush.bf16.msra.mxu2 %v753_v6  ;;  %767 = vmatpush.bf16.msra.mxu3 %v753_v6 }
  0x22   : > { %385 = vmatpush.bf16.msra.mxu0 %v752_v7  ;;  %768 = vmatpush.bf16.msra.mxu1 %v752_v7 }
  0x23   : > { %769 = vmatpush.bf16.msra.mxu2 %v752_v7  ;;  %770 = vmatpush.bf16.msra.mxu3 %v752_v7 }
  0x25   : > { %733 = vmatmul.msk.bf16.vlgmr.msra.gmra.mxu0 %vm361_vm1, %v748_v8  ;;  %734 = vmatmul.msk.bf16.vlgmr.msra.gmra.mxu1 %vm361_vm1, %v749_v9 }
  0x26   : > { %735 = vmatmul.msk.bf16.vlgmr.msra.gmra.mxu2 %vm361_vm1, %v750_v10  ;;  %736 = vmatmul.msk.bf16.vlgmr.msra.gmra.mxu3 %vm361_vm1, %v751_v11 }
  0xa2   : > { %v387_v21 = vpop.f32.mrf.mxu0  ;;  %v392_v22 = vpop.f32.mrf.mxu1 }
  0xa3   : > { %v388_v24 = vadd.f32 %v895_v16, %v387_v21  ;;  %v393_v25 = vadd.f32 %v895_v16, %v392_v22 }
  0xa5   : > { %v407_v29 = vmax.f32 %v388_v24, 0.0  ;;  %v409_v30 = vmax.f32 %v393_v25, 0.0 }
  0xa7   : > { %v415_v34 = vpack.c.bf16 %v407_v29, %v407_v29  ;;  %v417_v37 = vpack.c.bf16 %v409_v30, %v409_v30  ;;  %v475_v43 = vmul.f32 %v738_v36, %v407_v29  ;;  %v477_v53 = vmul.f32 %v740_v38, %v409_v30 }
  0xa9   : > { %424 = vst.msk [vmem:[%s904_s13] sm:$0xf] %vm423_vm3, %v415_v34  ;;  %v397_v39 = vpop.f32.mrf.mxu2  ;;  %v402_v40 = vpop.f32.mrf.mxu3  ;;  %v505_v59 = vmul.f32 %v475_v43, %v475_v43  ;;  %v507_v2 = vmul.f32 %v477_v53, %v477_v53  ;;  %v484_v5 = vsel %vm483_vm5, %v475_v43, 0.0  ;;  %v487_v11 = vsel %vm483_vm5, %v477_v53, 0.0 }
  0xaa   : > { %426 = vst.msk [vmem:[%s904_s13 + $0x8] sm:$0xf] %vm423_vm3, %v417_v37  ;;  %v398_v44 = vadd.f32 %v895_v16, %v397_v39  ;;  %v403_v45 = vadd.f32 %v895_v16, %v402_v40  ;;  %v389_v46 = vpop.f32.mrf.mxu0  ;;  %v394_v47 = vpop.f32.mrf.mxu1 }
  0xab   : > { %v390_v50 = vadd.f32 %v895_v16, %v389_v46  ;;  %v395_v52 = vadd.f32 %v895_v16, %v394_v47  ;;  %v513_v15 = vsel %vm483_vm5, %v505_v59, 0.0  ;;  %v516_v20 = vsel %vm483_vm5, %v507_v2, 0.0 }
  0xac   : > { %v411_v54 = vmax.f32 %v398_v44, 0.0  ;;  %v413_v55 = vmax.f32 %v403_v45, 0.0 }
  0xad   : > { %v408_v57 = vmax.f32 %v390_v50, 0.0  ;;  %v410_v58 = vmax.f32 %v395_v52, 0.0 }
  0xae   : > { %v419_v60 = vpack.c.bf16 %v411_v54, %v411_v54  ;;  %v421_v61 = vpack.c.bf16 %v413_v55, %v413_v55  ;;  %v479_v6 = vmul.f32 %v742_v49, %v411_v54  ;;  %v481_v25 = vmul.f32 %v744_v3, %v413_v55 }
  0xaf   : > { %v416_v62 = vpack.c.bf16 %v408_v57, %v408_v57  ;;  %v476_v63 = vmul.f32 %v739_v51, %v408_v57  ;;  %v418_v0 = vpack.c.bf16 %v410_v58, %v410_v58  ;;  %v478_v1 = vmul.f32 %v741_v56, %v410_v58 }
  0xb0   : > { %428 = vst.msk [vmem:[%s904_s13 + $0x10] sm:$0xf] %vm423_vm3, %v419_v60  ;;  %v509_v24 = vmul.f32 %v479_v6, %v479_v6  ;;  %v491_v32 = vsel %vm483_vm5, %v479_v6, 0.0  ;;  %v511_v39 = vmul.f32 %v481_v25, %v481_v25  ;;  %v495_v43 = vsel %vm483_vm5, %v481_v25, 0.0 }
  0xb1   : > { %430 = vst.msk [vmem:[%s904_s13 + $0x18] sm:$0xf] %vm423_vm3, %v421_v61  ;;  %v485_v7 = vsel %vm483_vm5, %v476_v63, 0.0  ;;  %v506_v8 = vmul.f32 %v476_v63, %v476_v63  ;;  %v399_v9 = vpop.f32.mrf.mxu2  ;;  %v404_v10 = vpop.f32.mrf.mxu3  ;;  %v508_v18 = vmul.f32 %v478_v1, %v478_v1  ;;  %v489_v26 = vsel %vm483_vm5, %v478_v1, 0.0 }
  0xb2   : > { %425 = vst.msk [vmem:[%s904_s13 + $0x4] sm:$0xf] %vm423_vm3, %v416_v62  ;;  %v486_v12 = vadd.f32 %v485_v7, %v484_v5  ;;  %v400_v13 = vadd.f32 %v895_v16, %v399_v9  ;;  %v405_v19 = vadd.f32 %v895_v16, %v404_v10  ;;  %v520_v38 = vsel %vm483_vm5, %v509_v24, 0.0 }
  0xb3   : > { %v514_v17 = vsel %vm483_vm5, %v506_v8, 0.0  ;;  %427 = vst.msk [vmem:[%s904_s13 + $0xc] sm:$0xf] %vm423_vm3, %v418_v0  ;;  %v518_v16 = vsel %vm483_vm5, %v508_v18, 0.0  ;;  %v524_v48 = vsel %vm483_vm5, %v511_v39, 0.0 }
  0xb4   : > { %v515_v21 = vadd.f32 %v514_v17, %v513_v15  ;;  %v488_v22 = vadd.f32 %v487_v11, %v486_v12  ;;  %v412_v23 = vmax.f32 %v400_v13, 0.0  ;;  %v414_v27 = vmax.f32 %v405_v19, 0.0 }
  0xb6   : > { %v490_v28 = vadd.f32 %v489_v26, %v488_v22  ;;  %v517_v29 = vadd.f32 %v516_v20, %v515_v21  ;;  %v420_v30 = vpack.c.bf16 %v412_v23, %v412_v23  ;;  %v480_v31 = vmul.f32 %v743_v4, %v412_v23 }
  0xb7   : > { %v422_v33 = vpack.c.bf16 %v414_v27, %v414_v27  ;;  %v482_v34 = vmul.f32 %v745_v14, %v414_v27 }
  0xb8   : > { %v519_v35 = vadd.f32 %v518_v16, %v517_v29  ;;  %429 = vst.msk [vmem:[%s904_s13 + $0x14] sm:$0xf] %vm423_vm3, %v420_v30  ;;  %v492_v36 = vadd.f32 %v491_v32, %v490_v28  ;;  %v510_v37 = vmul.f32 %v480_v31, %v480_v31  ;;  %v493_v40 = vsel %vm483_vm5, %v480_v31, 0.0 }
  0xb9   : > { %431 = vst.msk [vmem:[%s904_s13 + $0x1c] sm:$0xf] %vm423_vm3, %v422_v33  ;;  %v512_v45 = vmul.f32 %v482_v34, %v482_v34  ;;  %v497_v49 = vsel %vm483_vm5, %v482_v34, 0.0 }
  0xba   : > { %v494_v41 = vadd.f32 %v493_v40, %v492_v36  ;;  %v521_v42 = vadd.f32 %v520_v38, %v519_v35  ;;  %v522_v44 = vsel %vm483_vm5, %v510_v37, 0.0 }
  0xbb   : > { %v526_v52 = vsel %vm483_vm5, %v512_v45, 0.0 }
  0xbc   : > { %v523_v46 = vadd.f32 %v522_v44, %v521_v42  ;;  %v496_v47 = vadd.f32 %v495_v43, %v494_v41 }
  0xbe   : > { %v498_v50 = vadd.f32 %v497_v49, %v496_v47  ;;  %v525_v51 = vadd.f32 %v524_v48, %v523_v46 }
  0xc0   : > { %v499_v53 = vrot.slane %v498_v50, 4  ;;  %v527_v54 = vadd.f32 %v526_v52, %v525_v51 }
  0xc2   : > { %v500_v55 = vadd.f32 %v499_v53, %v498_v50  ;;  %v528_v56 = vrot.slane %v527_v54, 4 }
  0xc4   : > { %v501_v57 = vrot.slane %v500_v55, 2  ;;  %v529_v58 = vadd.f32 %v528_v56, %v527_v54 }
  0xc6   : > { %v502_v59 = vadd.f32 %v501_v57, %v500_v55  ;;  %v530_v60 = vrot.slane %v529_v58, 2 }
  0xc8   : > { %v503_v61 = vrot.slane %v502_v59, 1  ;;  %v531_v62 = vadd.f32 %v530_v60, %v529_v58 }
  0xca   : > { %v532_v63 = vrot.slane %v531_v62, 1  ;;  %v504_v0 = vadd.f32 %v503_v61, %v502_v59 }
  0xcc   : > { %v533_v1 = vadd.f32 %v532_v63, %v531_v62 }
  0xce   : > { %v535_v2 = vsel %vm534_vm12, %v504_v0, %v533_v1 }
  0xcf   : > { %537 = vst.msk [vmem:[%s289_s21] sm:$0x3] %vm536_vm13, %v535_v2 }
  0xd0 PF: > { %s15_s17 = sadd.s32 1, %s819_s17   ;;  %s967_s15 = smov %s815_s16 }
  0xd1   : > { %p12_p6 = scmp.ge.s32.totalorder %s15_s17, 4   ;;  %s968_s16 = smov %s970_s18 }
  0xd3   :  { %14 = sbr.rel (!%p12_p6) target bundleno = 2 (0x2), region = 80 }

// kernel: rhnet_fpn_forward.14
= control target key start
LH: loop header
LB: loop body
LE: loop exit
PB: predicated region body
PF: predicated region fallthrough
CT: control target
= control target key end

     0   :  { %s719_s21 = smov 0   ;;  %s796_s0 = inlined_call_operand.vmem [shape: bf16[128,72], index: 0, kind: input, shape index: {}]   ;;  %s797_s1 = inlined_call_operand.vmem [shape: bf16[72,16], index: 1, kind: input, shape index: {}]   ;;  %s798_s2 = inlined_call_operand.vmem [shape: f32[1,16], index: 2, kind: input, shape index: {}]   ;;  %s799_s3 = inlined_call_operand.vmem [shape: bf16[16,8], index: 3, kind: input, shape index: {}]   ;;  %s800_s4 = inlined_call_operand.vmem [shape: f32[1,8], index: 4, kind: input, shape index: {}]   ;;  %s801_s5 = inlined_call_operand.vmem [shape: bf16[128,8], index: 5, kind: input, shape index: {}]   ;;  %s802_s6 = inlined_call_operand.vmem [shape: bf16[128,8], index: 6, kind: output, shape index: {}]  }
   0x1 LB: > { %s575_s22 = sadd.s32 4294967295, %s682_s21   ;;  %p579_p0 = scmp.ge.s32.totalorder %s682_s21, 1  ;;  %s682_s21 = sphi %s719_s21, %s16_s21  }
   0x2   : > { %p224_p1 = scmp.lt.s32.totalorder %s682_s21, 3 }
   0x4   : > { %p225_p2 = pnand %p579_p0, %p224_p1 }
   0x5   : > { %s580_s25 = sshll.u32 (!%p225_p2), %s575_s22, 3 }
   0x6   : > { %228 = sbr.rel (%p225_p2) target bundleno = 373 (0x175), region = 44  ;;  %p260_p3 = scmp.lt.s32.totalorder (!%p225_p2), %s580_s25, 15 }
   0xb   : > { %v294_v0 = vld [vmem:[%s797_s1 + $0x20] sm:$0xf]  ;;  %vm359_vm0 = vcmask 1043456   ;;  %v639_v4 = vld [vmem:[%s797_s1 + $0x18] sm:$0xff]  ;;  %v638_v5 = vld [vmem:[%s797_s1 + $0x10] sm:$0xff]  ;;  %s804_s25 = smov (!%p260_p3, %s580_s25), 15 }
   0xc   : > { %v336_v1 = vunpack.c.l.b16 %v294_v0  ;;  %v637_v6 = vld [vmem:[%s797_s1 + $0x8] sm:$0xff]  ;;  %s739_s8 = sshll.u32 %s804_s25, 2  ;;  %v636_v7 = vld [vmem:[%s797_s1] sm:$0xff]  ;;  %vm346_vm1 = vcmask 588800   ;;  %vm416_vm2 = vcmask 130048   ;;  %vm498_vm3 = vcmask 60416  }
   0xd   : > { %s263_s13 = scalar_lea.vmem %s796_s0, %s739_s8  ;;  %v640_v12 = vld [vmem:[%s799_s3] sm:$0xff]  ;;  %s762_s20 = scalar_lea.vmem %s801_s5, %s739_s8 }
   0xe   : > { %v341_v2 = vpack.c.b16 %v336_v1, %v336_v1  ;;  %v632_v8 = vld [vmem:[%s263_s13] sm:$0xff]  ;;  %v634_v9 = vld [vmem:[%s263_s13 + $0x10] sm:$0xff]  ;;  %v633_v10 = vld [vmem:[%s263_s13 + $0x8] sm:$0xff]  ;;  %436 = vmatpush.bf16.msra.mxu1 %v640_v12  ;;  %665 = vmatpush.bf16.msra.mxu3 %v640_v12  ;;  %s772_s26 = scalar_lea.vmem %s802_s6, %s739_s8 }
   0xf   : > { %v635_v11 = vld [vmem:[%s263_s13 + $0x18] sm:$0xff]  ;;  %v674_v14 = vld [vmem:[%s798_s2] ss:$0 sm:$0xff]  ;;  %v657_v56 = vld [vmem:[%s762_s20 + $0x8] sm:$0xff]  }
  0x10   : > { %v361_v3 = vsel %vm359_vm0, %v341_v2, 0  ;;  %v675_v42 = vld [vmem:[%s800_s4] ss:$0 sm:$0xff]  ;;  %v647_v59 = vunpack.c.l.bf16 %v657_v56  ;;  %v648_v1 = vunpack.c.h.bf16 %v657_v56 }
  0x11   : > { %366 = vmatpush.bf16.msra.mxu0 %v361_v3  ;;  %660 = vmatpush.bf16.msra.mxu2 %v361_v3  ;;  %v642_v43 = vld [vmem:[%s762_s20] sm:$0xff]  }
  0x12   : > { %v643_v46 = vunpack.c.l.bf16 %v642_v43  ;;  %v644_v52 = vunpack.c.h.bf16 %v642_v43 }
  0x15   : > { %367 = vmatpush.bf16.msra.mxu0 %v639_v4  ;;  %661 = vmatpush.bf16.msra.mxu2 %v639_v4  ;;  %v658_v4 = vld [vmem:[%s762_s20 + $0x10] sm:$0xff]  }
  0x19   : > { %368 = vmatpush.bf16.msra.mxu0 %v638_v5  ;;  %662 = vmatpush.bf16.msra.mxu2 %v638_v5 }
  0x1d   : > { %369 = vmatpush.bf16.msra.mxu0 %v637_v6  ;;  %663 = vmatpush.bf16.msra.mxu2 %v637_v6 }
  0x21   : > { %370 = vmatpush.bf16.msra.mxu0 %v636_v7  ;;  %664 = vmatpush.bf16.msra.mxu2 %v636_v7 }
  0x24   : > { %618 = vmatmul.msk.bf16.vlgmr.msra.gmra.mxu0 %vm346_vm1, %v632_v8  ;;  %620 = vmatmul.msk.bf16.vlgmr.msra.gmra.mxu2 %vm346_vm1, %v634_v9  ;;  %v651_v8 = vunpack.c.l.bf16 %v658_v4 }
  0x34   : > { %619 = vmatmul.msk.bf16.gmra.mxu0 %vm346_vm1, %v633_v10  ;;  %621 = vmatmul.msk.bf16.gmra.mxu2 %vm346_vm1, %v635_v11 }
  0xa1   : > { %v372_v13 = vpop.f32.mrf.mxu0 }
  0xa2   : > { %v373_v15 = vadd.f32 %v674_v14, %v372_v13 }
  0xa4   : > { %v392_v18 = vmax.f32 %v373_v15, 0.0 }
  0xa7   : > { %v382_v22 = vpop.f32.mrf.mxu2 }
  0xa8   : > { %v383_v30 = vadd.f32 %v674_v14, %v382_v22 }
  0xa9   : > { %v374_v16 = vpop.f32.mrf.mxu0 }
  0xaa   : > { %v375_v17 = vadd.f32 %v674_v14, %v374_v16  ;;  %v396_v33 = vmax.f32 %v383_v30, 0.0 }
  0xac   : > { %v393_v19 = vmax.f32 %v375_v17, 0.0  ;;  %v659_v17 = vld [vmem:[%s762_s20 + $0x18] sm:$0xff]  }
  0xae   : > { %v400_v20 = vpack.c.bf16 %v393_v19, %v392_v18 }
  0xaf   : > { %v384_v29 = vpop.f32.mrf.mxu2 }
  0xb0   : > { %626 = vmatmul.msk.bf16.vlgmr.msra.gmra.mxu1 %vm416_vm2, %v400_v20  ;;  %v385_v31 = vadd.f32 %v674_v14, %v384_v29 }
  0xb1   : > { %v377_v21 = vpop.f32.mrf.mxu0 }
  0xb2   : > { %v378_v23 = vadd.f32 %v674_v14, %v377_v21  ;;  %v397_v34 = vmax.f32 %v385_v31, 0.0  ;;  %v655_v21 = vunpack.c.l.bf16 %v659_v17 }
  0xb4   : > { %v394_v26 = vmax.f32 %v378_v23, 0.0  ;;  %v402_v35 = vpack.c.bf16 %v397_v34, %v396_v33 }
  0xb7   : > { %v387_v32 = vpop.f32.mrf.mxu2 }
  0xb8   : > { %v388_v37 = vadd.f32 %v674_v14, %v387_v32 }
  0xb9   : > { %v379_v24 = vpop.f32.mrf.mxu0 }
  0xba   : > { %v380_v25 = vadd.f32 %v674_v14, %v379_v24  ;;  %v398_v39 = vmax.f32 %v388_v37, 0.0 }
  0xbc   : > { %v395_v27 = vmax.f32 %v380_v25, 0.0 }
  0xbe   : > { %v401_v28 = vpack.c.bf16 %v395_v27, %v394_v26  ;;  %v656_v27 = vunpack.c.h.bf16 %v659_v17 }
  0xbf   : > { %v389_v36 = vpop.f32.mrf.mxu2 }
  0xc0   : > { %627 = vmatmul.msk.bf16.vlgmr.msra.gmra.mxu3 %vm416_vm2, %v401_v28  ;;  %v390_v38 = vadd.f32 %v674_v14, %v389_v36  ;;  %v652_v14 = vunpack.c.h.bf16 %v658_v4 }
  0xc2   : > { %v399_v40 = vmax.f32 %v390_v38, 0.0 }
  0xc4   : > { %v403_v41 = vpack.c.bf16 %v399_v40, %v398_v39 }
  0xd0   : > { %628 = vmatmul.msk.bf16.gmra.mxu3 %vm416_vm2, %v402_v35 }
  0xe0   : > { %629 = vmatmul.msk.bf16.gmra.mxu3 %vm416_vm2, %v403_v41 }
 0x12d   : > { %v438_v44 = vpop.f32.mrf.mxu1 }
 0x12e   : > { %v439_v45 = vadd.f32 %v675_v42, %v438_v44 }
 0x130   : > { %v458_v47 = vmax.f32 %v439_v45, 0.0 }
 0x132   : > { %v482_v48 = vadd.f32 %v643_v46, %v458_v47 }
 0x134   : > { %v490_v49 = vpack.c.bf16 %v482_v48, %v482_v48 }
 0x135   : > { %v440_v50 = vpop.f32.mrf.mxu1 }
 0x136   : > { %499 = vst.msk [vmem:[%s772_s26] sm:$0xf] %vm498_vm3, %v490_v49  ;;  %v441_v51 = vadd.f32 %v675_v42, %v440_v50 }
 0x138   : > { %v459_v53 = vmax.f32 %v441_v51, 0.0 }
 0x13a   : > { %v483_v54 = vadd.f32 %v644_v52, %v459_v53 }
 0x13c   : > { %v491_v55 = vpack.c.bf16 %v483_v54, %v483_v54 }
 0x13e   : > { %500 = vst.msk [vmem:[%s772_s26 + $0x4] sm:$0xf] %vm498_vm3, %v491_v55 }
 0x143   : > { %v443_v57 = vpop.f32.mrf.mxu3 }
 0x144   : > { %v444_v58 = vadd.f32 %v675_v42, %v443_v57 }
 0x146   : > { %v460_v60 = vmax.f32 %v444_v58, 0.0 }
 0x148   : > { %v484_v61 = vadd.f32 %v647_v59, %v460_v60 }
 0x14a   : > { %v492_v62 = vpack.c.bf16 %v484_v61, %v484_v61 }
 0x14b   : > { %v445_v63 = vpop.f32.mrf.mxu3 }
 0x14c   : > { %501 = vst.msk [vmem:[%s772_s26 + $0x8] sm:$0xf] %vm498_vm3, %v492_v62  ;;  %v446_v0 = vadd.f32 %v675_v42, %v445_v63 }
 0x14e   : > { %v461_v2 = vmax.f32 %v446_v0, 0.0 }
 0x150   : > { %v485_v3 = vadd.f32 %v648_v1, %v461_v2 }
 0x152   : > { %v493_v5 = vpack.c.bf16 %v485_v3, %v485_v3 }
 0x153   : > { %v448_v6 = vpop.f32.mrf.mxu3 }
 0x154   : > { %502 = vst.msk [vmem:[%s772_s26 + $0xc] sm:$0xf] %vm498_vm3, %v493_v5  ;;  %v449_v7 = vadd.f32 %v675_v42, %v448_v6 }
 0x156   : > { %v462_v9 = vmax.f32 %v449_v7, 0.0 }
 0x158   : > { %v486_v10 = vadd.f32 %v651_v8, %v462_v9 }
 0x15a   : > { %v494_v11 = vpack.c.bf16 %v486_v10, %v486_v10 }
 0x15b   : > { %v450_v12 = vpop.f32.mrf.mxu3 }
 0x15c   : > { %503 = vst.msk [vmem:[%s772_s26 + $0x10] sm:$0xf] %vm498_vm3, %v494_v11  ;;  %v451_v13 = vadd.f32 %v675_v42, %v450_v12 }
 0x15e   : > { %v463_v15 = vmax.f32 %v451_v13, 0.0 }
 0x160   : > { %v487_v16 = vadd.f32 %v652_v14, %v463_v15 }
 0x162   : > { %v495_v18 = vpack.c.bf16 %v487_v16, %v487_v16 }
 0x163   : > { %v453_v19 = vpop.f32.mrf.mxu3 }
 0x164   : > { %504 = vst.msk [vmem:[%s772_s26 + $0x14] sm:$0xf] %vm498_vm3, %v495_v18  ;;  %v454_v20 = vadd.f32 %v675_v42, %v453_v19 }
 0x166   : > { %v464_v22 = vmax.f32 %v454_v20, 0.0 }
 0x168   : > { %v488_v23 = vadd.f32 %v655_v21, %v464_v22 }
 0x16a   : > { %v496_v24 = vpack.c.bf16 %v488_v23, %v488_v23 }
 0x16b   : > { %v455_v25 = vpop.f32.mrf.mxu3 }
 0x16c   : > { %505 = vst.msk [vmem:[%s772_s26 + $0x18] sm:$0xf] %vm498_vm3, %v496_v24  ;;  %v456_v26 = vadd.f32 %v675_v42, %v455_v25 }
 0x16e   : > { %v465_v28 = vmax.f32 %v456_v26, 0.0 }
 0x170   : > { %v489_v29 = vadd.f32 %v656_v27, %v465_v28 }
 0x172   : > { %v497_v30 = vpack.c.bf16 %v489_v29, %v489_v29 }
 0x174   : > { %506 = vst.msk [vmem:[%s772_s26 + $0x1c] sm:$0xf] %vm498_vm3, %v497_v30 }
 0x175 PF: > { %s16_s21 = sadd.s32 1, %s682_s21  }
 0x176   : > { %p13_p4 = scmp.ge.s32.totalorder %s16_s21, 4  }
 0x178   :  { %15 = sbr.rel (!%p13_p4) target bundleno = 1 (0x1), region = 77 }

// kernel: rhnet_fpn_forward.15
= control target key start
LH: loop header
LB: loop body
LE: loop exit
PB: predicated region body
PF: predicated region fallthrough
CT: control target
= control target key end

     0   :  { %s679_s15 = smov 0   ;;  %s681_s16 = smov 0   ;;  %s741_s0 = inlined_call_operand.vmem [shape: bf16[1,32,72], index: 0, kind: input, shape index: {}]   ;;  %s742_s1 = inlined_call_operand.vmem [shape: bf16[1,72,8], index: 1, kind: input, shape index: {}]   ;;  %s743_s2 = inlined_call_operand.vmem [shape: f32[1,1,8], index: 2, kind: input, shape index: {}]   ;;  %s744_s3 = inlined_call_operand.vmem [shape: bf16[1,32,8], index: 3, kind: output, shape index: {0}]   ;;  %s745_s4 = inlined_call_operand.vmem [shape: f32[2,2,8], index: 4, kind: output, shape index: {1}]  }
   0x1   :  { %s683_s17 = smov 0  }
   0x2 LB: > { %s24_s18 = sadd.s32 1, %s647_s16  ;;  %p566_p0 = scmp.ge.s32.totalorder %s651_s17, 1  ;;  %s651_s17 = sphi %s683_s17, %s15_s17   ;;  %s647_s16 = sphi %s681_s16, %s747_s16   ;;  %s643_s15 = sphi %s679_s15, %s746_s15  }
   0x3   : > { %p25_p1 = scmp.ge.s32.totalorder %s24_s18, 2  ;;  %p208_p2 = scmp.lt.s32.totalorder %s651_s17, 3 }
   0x5   : > { %s749_s18 = smov (%p25_p1, %s24_s18), 0  ;;  %p209_p3 = pnand %p566_p0, %p208_p2 }
   0x6   : > { %s567_s21 = sshll.u32 (!%p209_p3), %s643_s15, 1  ;;  %s593_s8 = sshll.u32 (!%p209_p3), %s643_s15, 4 }
   0x7   : > { %212 = sbr.rel (%p209_p3) target bundleno = 196 (0xc4), region = 32  ;;  %p259_p4 = scmp.lt.s32.totalorder (!%p209_p3), %s567_s21, 3 }
   0x8   : > { %p286_p5 = scmp.lt.s32.totalorder (!%p209_p3), %s643_s15, 1 }
   0xc   : > { %v303_v0 = vld [vmem:[%s742_s1 + $0x20] sm:$0xf]  ;;  %vm344_vm0 = vcmask 1043456   ;;  %v602_v4 = vld [vmem:[%s742_s1 + $0x18] sm:$0xff]  ;;  %v601_v5 = vld [vmem:[%s742_s1 + $0x10] sm:$0xff]  ;;  %s751_s21 = smov (!%p259_p4, %s567_s21), 3  ;;  %v370_v9 = vlaneseq  ;;  %v373_v11 = vstv %s593_s8 }
   0xd   : > { %v330_v1 = vunpack.c.l.b16 %v303_v0  ;;  %v600_v6 = vld [vmem:[%s742_s1 + $0x8] sm:$0xff]  ;;  %s568_s28 = sshll.u32 %s751_s21, 2  ;;  %v599_v7 = vld [vmem:[%s742_s1] sm:$0xff]  ;;  %vm340_vm1 = vcmask 588800   ;;  %vm366_vm3 = vcmask 60416   ;;  %v653_v20 = vmov 0.0  }
   0xe   : > { %s264_s7 = scalar_lea.vmem %s741_s0, %s568_s28  ;;  %v371_v10 = vshrl.u32 %v370_v9, 7  ;;  %v628_v12 = vld [vmem:[%s743_s2] ss:$0 sm:$0xff]  ;;  %s282_s13 = scalar_lea.vmem %s744_s3, %s568_s28  ;;  %vm384_vm5 = vcmask 64512   ;;  %vm405_vm6 = vcmask 1040384   ;;  %vm407_vm7 = vcmask 58368  }
   0xf   : > { %v335_v2 = vpack.c.b16 %v330_v1, %v330_v1  ;;  %v598_v8 = vld [vmem:[%s264_s7] sm:$0xff]  ;;  %s753_s15 = smov (!%p286_p5, %s643_s15), 1 }
  0x10   : > { %v374_v13 = vadd.s32 %v373_v11, %v371_v10  ;;  %v372_v14 = vadd.s32 8, %v371_v10  ;;  %s571_s14 = sshll.u32 %s753_s15, 1 }
  0x11   : > { %v346_v3 = vsel %vm344_vm0, %v335_v2, 0  ;;  %s289_s21 = scalar_lea.vmem %s745_s4, %s571_s14 }
  0x12   : > { %351 = vmatpush.bf16.msra.mxu0 %v346_v3  ;;  %vm376_vm2 = vcmp.lt.s32.totalorder %v374_v13, 32  ;;  %v375_v18 = vadd.s32 %v373_v11, %v372_v14 }
  0x13   : > { %v594_v21 = vsel %vm376_vm2, 1.0, %v653_v20 }
  0x14   : > { %vm377_vm4 = vcmp.lt.s32.totalorder %v375_v18, 32 }
  0x15   : > { %v595_v25 = vsel %vm377_vm4, 1.0, %v653_v20 }
  0x16   : > { %352 = vmatpush.bf16.msra.mxu0 %v602_v4 }
  0x1a   : > { %353 = vmatpush.bf16.msra.mxu0 %v601_v5 }
  0x1e   : > { %354 = vmatpush.bf16.msra.mxu0 %v600_v6 }
  0x22   : > { %355 = vmatpush.bf16.msra.mxu0 %v599_v7 }
  0x25   : > { %592 = vmatmul.msk.bf16.vlgmr.msra.gmra.mxu0 %vm340_vm1, %v598_v8 }
  0xa2   : > { %v357_v15 = vpop.f32.mrf.mxu0 }
  0xa3   : > { %v358_v16 = vadd.f32 %v628_v12, %v357_v15 }
  0xa5   : > { %v362_v17 = vmax.f32 %v358_v16, 0.0 }
  0xa7   : > { %v364_v19 = vpack.c.bf16 %v362_v17, %v362_v17  ;;  %v382_v23 = vmul.f32 %v594_v21, %v362_v17 }
  0xa9   : > { %367 = vst.msk [vmem:[%s282_s13] sm:$0xf] %vm366_vm3, %v364_v19  ;;  %v394_v27 = vmul.f32 %v382_v23, %v382_v23  ;;  %v385_v30 = vsel %vm384_vm5, %v382_v23, 0.0 }
  0xaa   : > { %v359_v22 = vpop.f32.mrf.mxu0 }
  0xab   : > { %v360_v24 = vadd.f32 %v628_v12, %v359_v22  ;;  %v396_v34 = vsel %vm384_vm5, %v394_v27, 0.0 }
  0xad   : > { %v363_v26 = vmax.f32 %v360_v24, 0.0 }
  0xaf   : > { %v365_v28 = vpack.c.bf16 %v363_v26, %v363_v26  ;;  %v383_v29 = vmul.f32 %v595_v25, %v363_v26 }
  0xb1   : > { %368 = vst.msk [vmem:[%s282_s13 + $0x4] sm:$0xf] %vm366_vm3, %v365_v28  ;;  %v386_v31 = vsel %vm384_vm5, %v383_v29, 0.0  ;;  %v395_v32 = vmul.f32 %v383_v29, %v383_v29 }
  0xb2   : > { %v387_v33 = vadd.f32 %v386_v31, %v385_v30 }
  0xb3   : > { %v397_v35 = vsel %vm384_vm5, %v395_v32, 0.0 }
  0xb4   : > { %v388_v36 = vrot.slane %v387_v33, 4  ;;  %v398_v37 = vadd.f32 %v397_v35, %v396_v34 }
  0xb6   : > { %v389_v38 = vadd.f32 %v388_v36, %v387_v33  ;;  %v399_v39 = vrot.slane %v398_v37, 4 }
  0xb8   : > { %v390_v40 = vrot.slane %v389_v38, 2  ;;  %v400_v41 = vadd.f32 %v399_v39, %v398_v37 }
  0xba   : > { %v391_v42 = vadd.f32 %v390_v40, %v389_v38  ;;  %v401_v43 = vrot.slane %v400_v41, 2 }
  0xbc   : > { %v392_v44 = vrot.slane %v391_v42, 1  ;;  %v402_v45 = vadd.f32 %v401_v43, %v400_v41 }
  0xbe   : > { %v403_v46 = vrot.slane %v402_v45, 1  ;;  %v393_v47 = vadd.f32 %v392_v44, %v391_v42 }
  0xc0   : > { %v404_v48 = vadd.f32 %v403_v46, %v402_v45 }
  0xc2   : > { %v406_v49 = vsel %vm405_vm6, %v393_v47, %v404_v48 }
  0xc3   : > { %408 = vst.msk [vmem:[%s289_s21] sm:$0x3] %vm407_vm7, %v406_v49 }
  0xc4 PF: > { %s15_s17 = sadd.s32 1, %s651_s17   ;;  %s746_s15 = smov %s647_s16 }
  0xc5   : > { %p12_p6 = scmp.ge.s32.totalorder %s15_s17, 4   ;;  %s747_s16 = smov %s749_s18 }
  0xc7   :  { %14 = sbr.rel (!%p12_p6) target bundleno = 2 (0x2), region = 80 }

// kernel: mul.82.clone
= control target key start
LH: loop header
LB: loop body
LE: loop exit
PB: predicated region body
PF: predicated region fallthrough
CT: control target
= control target key end

     0   :  { %s40_s0 = inlined_call_operand.vmem [shape: f32[16], index: 0, kind: input, shape index: {}]   ;;  %s41_s1 = inlined_call_operand.vmem [shape: f32[2,2,2,16], index: 1, kind: output, shape index: {}]  }
   0x1   :  { %v4_v0 = vld [vmem:[%s40_s0] ss:$0 sm:$0xff] }
   0x2   :  { %5 = vst [vmem:[%s41_s1] sm:$0x3] %v4_v0 }
   0x3   :  { %12 = vst [vmem:[%s41_s1 + $0x4] sm:$0x3] %v4_v0 }
   0x4   :  { %13 = vst [vmem:[%s41_s1 + $0x2] sm:$0x3] %v4_v0 }
   0x5   :  { %14 = vst [vmem:[%s41_s1 + $0x6] sm:$0x3] %v4_v0 }

// kernel: rhnet_fpn_forward.16
= control target key start
LH: loop header
LB: loop body
LE: loop exit
PB: predicated region body
PF: predicated region fallthrough
CT: control target
= control target key end

     0   :  { %s563_s21 = smov 0   ;;  %s607_s0 = inlined_call_operand.vmem [shape: bf16[32,72], index: 0, kind: input, shape index: {}]   ;;  %s608_s1 = inlined_call_operand.vmem [shape: bf16[72,16], index: 1, kind: input, shape index: {}]   ;;  %s609_s2 = inlined_call_operand.vmem [shape: f32[1,16], index: 2, kind: input, shape index: {}]   ;;  %s610_s3 = inlined_call_operand.vmem [shape: bf16[16,8], index: 3, kind: input, shape index: {}]   ;;  %s611_s4 = inlined_call_operand.vmem [shape: f32[1,8], index: 4, kind: input, shape index: {}]   ;;  %s612_s5 = inlined_call_operand.vmem [shape: bf16[32,8], index: 5, kind: input, shape index: {}]   ;;  %s613_s6 = inlined_call_operand.vmem [shape: bf16[32,8], index: 6, kind: output, shape index: {}]  }
   0x1 LB: > { %s461_s22 = sadd.s32 4294967295, %s526_s21   ;;  %p465_p0 = scmp.ge.s32.totalorder %s526_s21, 1  ;;  %s526_s21 = sphi %s563_s21, %s16_s21  }
   0x2   : > { %p224_p1 = scmp.lt.s32.totalorder %s526_s21, 3 }
   0x4   : > { %p225_p2 = pnand %p465_p0, %p224_p1 }
   0x5   : > { %s466_s25 = sshll.u32 (!%p225_p2), %s461_s22, 1 }
   0x6   : > { %228 = sbr.rel (%p225_p2) target bundleno = 319 (0x13f), region = 44  ;;  %p260_p3 = scmp.lt.s32.totalorder (!%p225_p2), %s466_s25, 3 }
   0xb   : > { %v288_v0 = vld [vmem:[%s608_s1 + $0x20] sm:$0xf]  ;;  %vm329_vm0 = vcmask 1043456   ;;  %v504_v4 = vld [vmem:[%s608_s1 + $0x18] sm:$0xff]  ;;  %v503_v5 = vld [vmem:[%s608_s1 + $0x10] sm:$0xff]  ;;  %s615_s25 = smov (!%p260_p3, %s466_s25), 3 }
   0xc   : > { %v315_v1 = vunpack.c.l.b16 %v288_v0  ;;  %v502_v6 = vld [vmem:[%s608_s1 + $0x8] sm:$0xff]  ;;  %s467_s8 = sshll.u32 %s615_s25, 2  ;;  %v501_v7 = vld [vmem:[%s608_s1] sm:$0xff]  ;;  %vm325_vm1 = vcmask 588800   ;;  %vm362_vm2 = vcmask 130048   ;;  %vm390_vm3 = vcmask 60416  }
   0xd   : > { %s263_s13 = scalar_lea.vmem %s607_s0, %s467_s8  ;;  %v505_v9 = vld [vmem:[%s610_s3] sm:$0xff]  ;;  %s269_s20 = scalar_lea.vmem %s612_s5, %s467_s8 }
   0xe   : > { %v320_v2 = vpack.c.b16 %v315_v1, %v315_v1  ;;  %v500_v8 = vld [vmem:[%s263_s13] sm:$0xff]  ;;  %373 = vmatpush.bf16.msra.mxu1 %v505_v9  ;;  %s275_s26 = scalar_lea.vmem %s613_s6, %s467_s8 }
   0xf   : > { %v518_v11 = vld [vmem:[%s609_s2] ss:$0 sm:$0xff] }
  0x10   : > { %v331_v3 = vsel %vm329_vm0, %v320_v2, 0  ;;  %v519_v18 = vld [vmem:[%s611_s4] ss:$0 sm:$0xff] }
  0x11   : > { %336 = vmatpush.bf16.msra.mxu0 %v331_v3  ;;  %v507_v19 = vld [vmem:[%s269_s20] sm:$0xff]  }
  0x12   : > { %v508_v22 = vunpack.c.l.bf16 %v507_v19  ;;  %v509_v28 = vunpack.c.h.bf16 %v507_v19 }
  0x15   : > { %337 = vmatpush.bf16.msra.mxu0 %v504_v4 }
  0x19   : > { %338 = vmatpush.bf16.msra.mxu0 %v503_v5 }
  0x1d   : > { %339 = vmatpush.bf16.msra.mxu0 %v502_v6 }
  0x21   : > { %340 = vmatpush.bf16.msra.mxu0 %v501_v7 }
  0x24   : > { %492 = vmatmul.msk.bf16.vlgmr.msra.gmra.mxu0 %vm325_vm1, %v500_v8 }
  0xa1   : > { %v342_v10 = vpop.f32.mrf.mxu0 }
  0xa2   : > { %v343_v12 = vadd.f32 %v518_v11, %v342_v10 }
  0xa4   : > { %v347_v15 = vmax.f32 %v343_v12, 0.0 }
  0xa9   : > { %v344_v13 = vpop.f32.mrf.mxu0 }
  0xaa   : > { %v345_v14 = vadd.f32 %v518_v11, %v344_v13 }
  0xac   : > { %v348_v16 = vmax.f32 %v345_v14, 0.0 }
  0xae   : > { %v349_v17 = vpack.c.bf16 %v348_v16, %v347_v15 }
  0xb0   : > { %497 = vmatmul.msk.bf16.vlgmr.msra.gmra.mxu1 %vm362_vm2, %v349_v17 }
 0x12d   : > { %v375_v20 = vpop.f32.mrf.mxu1 }
 0x12e   : > { %v376_v21 = vadd.f32 %v519_v18, %v375_v20 }
 0x130   : > { %v380_v23 = vmax.f32 %v376_v21, 0.0 }
 0x132   : > { %v386_v24 = vadd.f32 %v508_v22, %v380_v23 }
 0x134   : > { %v388_v25 = vpack.c.bf16 %v386_v24, %v386_v24 }
 0x135   : > { %v377_v26 = vpop.f32.mrf.mxu1 }
 0x136   : > { %391 = vst.msk [vmem:[%s275_s26] sm:$0xf] %vm390_vm3, %v388_v25  ;;  %v378_v27 = vadd.f32 %v519_v18, %v377_v26 }
 0x138   : > { %v381_v29 = vmax.f32 %v378_v27, 0.0 }
 0x13a   : > { %v387_v30 = vadd.f32 %v509_v28, %v381_v29 }
 0x13c   : > { %v389_v31 = vpack.c.bf16 %v387_v30, %v387_v30 }
 0x13e   : > { %392 = vst.msk [vmem:[%s275_s26 + $0x4] sm:$0xf] %vm390_vm3, %v389_v31 }
 0x13f PF: > { %s16_s21 = sadd.s32 1, %s526_s21  }
 0x140   : > { %p13_p4 = scmp.ge.s32.totalorder %s16_s21, 4  }
 0x142   :  { %15 = sbr.rel (!%p13_p4) target bundleno = 1 (0x1), region = 77 }

// kernel: rhnet_fpn_forward.17
= control target key start
LH: loop header
LB: loop body
LE: loop exit
PB: predicated region body
PF: predicated region fallthrough
CT: control target
= control target key end

     0   :  { %vm79_vm0 = vcmask 1043456   ;;  %vm75_vm1 = vcmask 588800   ;;  %vm101_vm2 = vcmask 125952   ;;  %vm119_vm3 = vcmask 130048   ;;  %s253_s1 = inlined_call_operand.vmem [shape: bf16[1,72,16], index: 1, kind: input, shape index: {}]   ;;  %s254_s2 = inlined_call_operand.vmem [shape: f32[1,1,16], index: 2, kind: input, shape index: {}]   ;;  %s255_s0 = inlined_call_operand.vmem [shape: bf16[1,16,72], index: 0, kind: input, shape index: {}]   ;;  %s256_s3 = inlined_call_operand.vmem [shape: bf16[1,16,16], index: 3, kind: output, shape index: {0}]   ;;  %s257_s4 = inlined_call_operand.vmem [shape: f32[1,2,16], index: 4, kind: output, shape index: {1}]  }
   0x1   :  { %v38_v0 = vld [vmem:[%s253_s1 + $0x20] sm:$0xf]  ;;  %v196_v4 = vld [vmem:[%s253_s1 + $0x18] sm:$0xff]  ;;  %v195_v5 = vld [vmem:[%s253_s1 + $0x10] sm:$0xff]  ;;  %vm140_vm4 = vcmask 1040384   ;;  %vm142_vm5 = vcmask 123904  }
   0x2   :  { %v65_v1 = vunpack.c.l.b16 %v38_v0  ;;  %v194_v6 = vld [vmem:[%s253_s1 + $0x8] sm:$0xff]  ;;  %v193_v7 = vld [vmem:[%s253_s1] sm:$0xff] }
   0x3   :  { %v192_v8 = vld [vmem:[%s255_s0] sm:$0xff] }
   0x4   :  { %v70_v2 = vpack.c.b16 %v65_v1, %v65_v1  ;;  %v197_v9 = vld [vmem:[%s254_s2] ss:$0 sm:$0xff] }
   0x6   :  { %v81_v3 = vsel %vm79_vm0, %v70_v2, 0 }
   0x7   :  { %86 = vmatpush.bf16.msra.mxu0 %v81_v3 }
   0xb   :  { %87 = vmatpush.bf16.msra.mxu0 %v196_v4 }
   0xf   :  { %88 = vmatpush.bf16.msra.mxu0 %v195_v5 }
  0x13   :  { %89 = vmatpush.bf16.msra.mxu0 %v194_v6 }
  0x17   :  { %90 = vmatpush.bf16.msra.mxu0 %v193_v7 }
  0x1a   :  { %191 = vmatmul.msk.bf16.vlgmr.msra.gmra.mxu0 %vm75_vm1, %v192_v8 }
  0x97   :  { %v92_v10 = vpop.f32.mrf.mxu0 }
  0x98   :  { %v93_v11 = vadd.f32 %v197_v9, %v92_v10 }
  0x9a   :  { %v97_v12 = vmax.f32 %v93_v11, 0.0 }
  0x9c   :  { %v99_v13 = vpack.c.bf16 %v97_v12, %v97_v12  ;;  %v129_v17 = vmul.f32 %v97_v12, %v97_v12  ;;  %v120_v20 = vsel %vm119_vm3, %v97_v12, 0.0 }
  0x9e   :  { %102 = vst.msk [vmem:[%s256_s3] sm:$0xf] %vm101_vm2, %v99_v13  ;;  %v131_v24 = vsel %vm119_vm3, %v129_v17, 0.0 }
  0x9f   :  { %v94_v14 = vpop.f32.mrf.mxu0 }
  0xa0   :  { %v95_v15 = vadd.f32 %v197_v9, %v94_v14 }
  0xa2   :  { %v98_v16 = vmax.f32 %v95_v15, 0.0 }
  0xa4   :  { %v100_v18 = vpack.c.bf16 %v98_v16, %v98_v16  ;;  %v118_v19 = vmul.f32 0.0, %v98_v16 }
  0xa6   :  { %103 = vst.msk [vmem:[%s256_s3 + $0x4] sm:$0xf] %vm101_vm2, %v100_v18  ;;  %v121_v21 = vsel %vm119_vm3, %v118_v19, 0.0  ;;  %v130_v22 = vmul.f32 %v118_v19, %v118_v19 }
  0xa7   :  { %v122_v23 = vadd.f32 %v121_v21, %v120_v20 }
  0xa8   :  { %v132_v25 = vsel %vm119_vm3, %v130_v22, 0.0 }
  0xa9   :  { %v123_v26 = vrot.slane %v122_v23, 4  ;;  %v133_v27 = vadd.f32 %v132_v25, %v131_v24 }
  0xab   :  { %v124_v28 = vadd.f32 %v123_v26, %v122_v23  ;;  %v134_v29 = vrot.slane %v133_v27, 4 }
  0xad   :  { %v125_v30 = vrot.slane %v124_v28, 2  ;;  %v135_v31 = vadd.f32 %v134_v29, %v133_v27 }
  0xaf   :  { %v126_v32 = vadd.f32 %v125_v30, %v124_v28  ;;  %v136_v33 = vrot.slane %v135_v31, 2 }
  0xb1   :  { %v127_v34 = vrot.slane %v126_v32, 1  ;;  %v137_v35 = vadd.f32 %v136_v33, %v135_v31 }
  0xb3   :  { %v138_v36 = vrot.slane %v137_v35, 1  ;;  %v128_v37 = vadd.f32 %v127_v34, %v126_v32 }
  0xb5   :  { %v139_v38 = vadd.f32 %v138_v36, %v137_v35 }
  0xb7   :  { %v141_v39 = vsel %vm140_vm4, %v128_v37, %v139_v38 }
  0xb8   :  { %143 = vst.msk [vmem:[%s257_s4] sm:$0x3] %vm142_vm5, %v141_v39 }

// kernel: tile.18
= control target key start
LH: loop header
LB: loop body
LE: loop exit
PB: predicated region body
PF: predicated region fallthrough
CT: control target
= control target key end

     0   :  { %s22_s0 = inlined_call_operand.vmem [shape: f32[16], index: 0, kind: input, shape index: {}]   ;;  %s23_s1 = inlined_call_operand.vmem [shape: f32[4,16], index: 1, kind: output, shape index: {}]  }
   0x1   :  { %v4_v0 = vld [vmem:[%s22_s0] ss:$0 sm:$0xff] }
   0x2   :  { %5 = vst [vmem:[%s23_s1] sm:$0xf] %v4_v0 }

// kernel: tile.19
= control target key start
LH: loop header
LB: loop body
LE: loop exit
PB: predicated region body
PF: predicated region fallthrough
CT: control target
= control target key end

     0   :  { %s37_s8 = smov 16   ;;  %s38_s9 = smov 32   ;;  %vm7_vm0 = vcmask 130048   ;;  %vm13_vm1 = vcmask 523648   ;;  %vm19_vm2 = vcmask 392448   ;;  %vm25_vm3 = vcmask 261248   ;;  %s55_s0 = inlined_call_operand.vmem [shape: f32[4,16], index: 0, kind: input, shape index: {}]   ;;  %s56_s1 = inlined_call_operand.vmem [shape: f32[1,1,64], index: 1, kind: output, shape index: {}]  }
   0x1   :  { %v4_v0 = vld [vmem:[%s55_s0] sm:$0xf]  ;;  %s36_s0 = smov 48  }
   0x2   :  { %5 = vst [vmem:[#allocation1] sm:$0xf] %v4_v0 }
   0x9   :  { %v10_v1 = vld [vmem:[#allocation1 + $0x3] sm:$0x1]   ;;  %v22_v2 = vld [vmem:[#allocation1 + $0x1] sm:$0x1]   ;;  %v16_v3 = vld [vmem:[#allocation1 + $0x2] sm:$0x1]  }
   0xa   :  { %11 = vrot.lane.b32.xlu0 %v10_v1, %s36_s0  ;;  %23 = vrot.lane.b32.xlu1 %v22_v2, %s37_s8  ;;  %v6_v4 = vld [vmem:[#allocation1] sm:$0x1]  }
   0xb   :  { %8 = vst.msk [vmem:[#allocation0] sm:$0x1] %vm7_vm0, %v6_v4  }
  0x12   :  { %17 = vrot.lane.b32.xlu0 %v16_v3, %s38_s9 }
  0x7c   :  { %v12_v5 = vpop.permute.xlu0 %11   ;;  %v24_v6 = vpop.permute.xlu1 %23  }
  0x7d   :  { %14 = vst.msk [vmem:[#allocation0] sm:$0x1] %vm13_vm1, %v12_v5  }
  0x84   :  { %v18_v7 = vpop.permute.xlu0 %17  }
  0x85   :  { %20 = vst.msk [vmem:[#allocation0] sm:$0x1] %vm19_vm2, %v18_v7  }
  0x86   :  { %26 = vst.msk [vmem:[#allocation0] sm:$0x1] %vm25_vm3, %v24_v6  }
  0x8d   :  { %v29_v8 = vld [vmem:[#allocation0] sm:$0x1] }
  0x8e   :  { %32 = vst [vmem:[%s56_s1] sm:$0x1] %v29_v8 }

// kernel: squeeze.75
= control target key start
LH: loop header
LB: loop body
LE: loop exit
PB: predicated region body
PF: predicated region fallthrough
CT: control target
= control target key end

     0   :  { %s44_s8 = smov 80   ;;  %s45_s9 = smov 96   ;;  %vm7_vm0 = vcmask 130048   ;;  %s65_s0 = inlined_call_operand.vmem [shape: f32[1,2,64], index: 0, kind: input, shape index: {}]   ;;  %s66_s1 = inlined_call_operand.vmem [shape: f32[2,4,16], index: 1, kind: output, shape index: {}]  }
   0x1   :  { %v4_v0 = vld [vmem:[%s65_s0] sm:$0x3]  ;;  %s43_s0 = smov 112  }
   0x2   :  { %5 = vst [vmem:[#allocation1] sm:$0x3] %v4_v0 }
   0x9   :  { %v9_v1 = vld [vmem:[#allocation1] sm:$0x3]  }
   0xa   :  { %v21_v2 = vld [vmem:[#allocation1] sm:$0x3]   ;;  %10 = vrot.lane.b32.xlu0 %v9_v1, %s43_s0 }
   0xb   :  { %22 = vrot.lane.b32.xlu1 %v21_v2, %s44_s8  ;;  %v15_v3 = vld [vmem:[#allocation1] sm:$0x3]  }
   0xc   :  { %v6_v4 = vld [vmem:[#allocation1] sm:$0x3]  }
   0xd   :  { %8 = vst.msk [vmem:[#allocation0] ss:$8 sm:$0x3] %vm7_vm0, %v6_v4  }
  0x12   :  { %16 = vrot.lane.b32.xlu0 %v15_v3, %s45_s9 }
  0x7c   :  { %v11_v5 = vpop.permute.xlu0 %10  }
  0x7d   :  { %v23_v6 = vpop.permute.xlu1 %22   ;;  %14 = vst.msk [vmem:[#allocation0 + $0x1] ss:$8 sm:$0x3] %vm7_vm0, %v11_v5  }
  0x7e   :  { %26 = vst.msk [vmem:[#allocation0 + $0x3] ss:$8 sm:$0x3] %vm7_vm0, %v23_v6  }
  0x84   :  { %v17_v7 = vpop.permute.xlu0 %16  }
  0x85   :  { %20 = vst.msk [vmem:[#allocation0 + $0x2] ss:$8 sm:$0x3] %vm7_vm0, %v17_v7  }
  0x8c   :  { %v29_v8 = vld [vmem:[#allocation0] sm:$0xf]  ;;  %v34_v9 = vld [vmem:[#allocation0 + $0x8] sm:$0xf] }
  0x8d   :  { %32 = vst [vmem:[%s66_s1] sm:$0xf] %v29_v8 }
  0x8e   :  { %39 = vst [vmem:[%s66_s1 + $0x4] sm:$0xf] %v34_v9 }

// kernel: rhnet_fpn_forward.18
= control target key start
LH: loop header
LB: loop body
LE: loop exit
PB: predicated region body
PF: predicated region fallthrough
CT: control target
= control target key end

     0   :  { %vm115_vm0 = vcmask 130048   ;;  %v155_v16 = vlaneseq  ;;  %vm151_vm2 = vcmask 125952   ;;  %v279_v24 = vmov 0.0   ;;  %s361_s1 = inlined_call_operand.vmem [shape: bf16[1,144,16], index: 1, kind: input, shape index: {}]   ;;  %s362_s0 = inlined_call_operand.vmem [shape: bf16[1,16,144], index: 0, kind: input, shape index: {}]   ;;  %s363_s2 = inlined_call_operand.vmem [shape: f32[1,1,16], index: 2, kind: input, shape index: {}]   ;;  %s364_s3 = inlined_call_operand.vmem [shape: bf16[1,16,16], index: 3, kind: output, shape index: {0}]   ;;  %s365_s4 = inlined_call_operand.vmem [shape: f32[1,2,16], index: 4, kind: output, shape index: {1}]  }
   0x1   :  { %v275_v0 = vld [vmem:[%s361_s1 + $0x38] sm:$0xff]  ;;  %v274_v1 = vld [vmem:[%s361_s1 + $0x30] sm:$0xff]  ;;  %v276_v2 = vld [vmem:[%s361_s1 + $0x40] sm:$0xff]  ;;  %vm189_vm3 = vcmask 1040384   ;;  %vm191_vm4 = vcmask 123904  }
   0x2   :  { %119 = vmatpush.bf16.msra.mxu0 %v275_v0  ;;  %v266_v3 = vld [vmem:[%s362_s0 + $0x4] sm:$0xf]  ;;  %v224_v4 = vld [vmem:[%s362_s0 + $0x8] sm:$0xf0]  ;;  %140 = vmatpush.bf16.msra.mxu1 %v276_v2  ;;  %v271_v8 = vld [vmem:[%s361_s1 + $0x18] sm:$0xff]  ;;  %v156_v20 = vshrl.u32 %v155_v16, 7 }
   0x3   :  { %v227_v5 = vor.u32 %v266_v3, %v224_v4  ;;  %v273_v6 = vld [vmem:[%s361_s1 + $0x28] sm:$0xff]  ;;  %v272_v7 = vld [vmem:[%s361_s1 + $0x20] sm:$0xff]  ;;  %v270_v9 = vld [vmem:[%s361_s1 + $0x10] sm:$0xff] }
   0x4   :  { %v269_v10 = vld [vmem:[%s361_s1 + $0x8] sm:$0xff]  ;;  %v268_v11 = vld [vmem:[%s361_s1] sm:$0xff]  ;;  %vm161_vm1 = vcmp.lt.s32.totalorder %v156_v20, 2 }
   0x5   :  { %264 = vmatmul.msk.bf16.vlgmr.msra.gmra.mxu1 %vm115_vm0, %v227_v5  ;;  %v222_v12 = vld [vmem:[%s362_s0] sm:$0xf]  ;;  %v267_v13 = vld [vmem:[%s362_s0 + $0x4] sm:$0xf0]  ;;  %v265_v25 = vsel %vm161_vm1, 1.0, %v279_v24 }
   0x6   :  { %120 = vmatpush.bf16.msra.mxu0 %v274_v1  ;;  %v223_v14 = vor.u32 %v267_v13, %v222_v12  ;;  %v278_v15 = vld [vmem:[%s363_s2] ss:$0 sm:$0xff] }
   0xa   :  { %121 = vmatpush.bf16.msra.mxu0 %v273_v6 }
   0xe   :  { %122 = vmatpush.bf16.msra.mxu0 %v272_v7 }
  0x12   :  { %123 = vmatpush.bf16.msra.mxu0 %v271_v8 }
  0x16   :  { %124 = vmatpush.bf16.msra.mxu0 %v270_v9 }
  0x1a   :  { %125 = vmatpush.bf16.msra.mxu0 %v269_v10 }
  0x1e   :  { %126 = vmatpush.bf16.msra.mxu0 %v268_v11 }
  0x21   :  { %127 = vmatmul.bf16.vlgmr.msra.gmra.mxu0 %v223_v14 }
  0x82   :  { %v142_v17 = vpop.f32.mrf.mxu1 }
  0x8a   :  { %v144_v28 = vpop.f32.mrf.mxu1 }
  0x9e   :  { %v128_v18 = vpop.f32.mrf.mxu0 }
  0x9f   :  { %v129_v19 = vadd.f32 %v278_v15, %v128_v18 }
  0xa1   :  { %v143_v21 = vadd.f32 %v142_v17, %v129_v19 }
  0xa3   :  { %v147_v22 = vmax.f32 %v143_v21, 0.0 }
  0xa5   :  { %v149_v23 = vpack.c.bf16 %v147_v22, %v147_v22  ;;  %v167_v29 = vmul.f32 %v265_v25, %v147_v22 }
  0xa6   :  { %v130_v26 = vpop.f32.mrf.mxu0 }
  0xa7   :  { %152 = vst.msk [vmem:[%s364_s3] sm:$0xf] %vm151_vm2, %v149_v23  ;;  %v131_v27 = vadd.f32 %v278_v15, %v130_v26  ;;  %v178_v32 = vmul.f32 %v167_v29, %v167_v29  ;;  %v169_v35 = vsel %vm115_vm0, %v167_v29, 0.0 }
  0xa9   :  { %v145_v30 = vadd.f32 %v144_v28, %v131_v27  ;;  %v180_v39 = vsel %vm115_vm0, %v178_v32, 0.0 }
  0xab   :  { %v148_v31 = vmax.f32 %v145_v30, 0.0 }
  0xad   :  { %v150_v33 = vpack.c.bf16 %v148_v31, %v148_v31  ;;  %v168_v34 = vmul.f32 0.0, %v148_v31 }
  0xaf   :  { %153 = vst.msk [vmem:[%s364_s3 + $0x4] sm:$0xf] %vm151_vm2, %v150_v33  ;;  %v170_v36 = vsel %vm115_vm0, %v168_v34, 0.0  ;;  %v179_v37 = vmul.f32 %v168_v34, %v168_v34 }
  0xb0   :  { %v171_v38 = vadd.f32 %v170_v36, %v169_v35 }
  0xb1   :  { %v181_v40 = vsel %vm115_vm0, %v179_v37, 0.0 }
  0xb2   :  { %v172_v41 = vrot.slane %v171_v38, 4  ;;  %v182_v42 = vadd.f32 %v181_v40, %v180_v39 }
  0xb4   :  { %v173_v43 = vadd.f32 %v172_v41, %v171_v38  ;;  %v183_v44 = vrot.slane %v182_v42, 4 }
  0xb6   :  { %v174_v45 = vrot.slane %v173_v43, 2  ;;  %v184_v46 = vadd.f32 %v183_v44, %v182_v42 }
  0xb8   :  { %v175_v47 = vadd.f32 %v174_v45, %v173_v43  ;;  %v185_v48 = vrot.slane %v184_v46, 2 }
  0xba   :  { %v176_v49 = vrot.slane %v175_v47, 1  ;;  %v186_v50 = vadd.f32 %v185_v48, %v184_v46 }
  0xbc   :  { %v187_v51 = vrot.slane %v186_v50, 1  ;;  %v177_v52 = vadd.f32 %v176_v49, %v175_v47 }
  0xbe   :  { %v188_v53 = vadd.f32 %v187_v51, %v186_v50 }
  0xc0   :  { %v190_v54 = vsel %vm189_vm3, %v177_v52, %v188_v53 }
  0xc1   :  { %192 = vst.msk [vmem:[%s365_s4] sm:$0x3] %vm191_vm4, %v190_v54 }

// kernel: tile.23
= control target key start
LH: loop header
LB: loop body
LE: loop exit
PB: predicated region body
PF: predicated region fallthrough
CT: control target
= control target key end

     0   :  { %s22_s0 = inlined_call_operand.vmem [shape: f32[16], index: 0, kind: input, shape index: {}]   ;;  %s23_s1 = inlined_call_operand.vmem [shape: f32[8,16], index: 1, kind: output, shape index: {}]  }
   0x1   :  { %v4_v0 = vld [vmem:[%s22_s0] ss:$0 sm:$0xff] }
   0x2   :  { %5 = vst [vmem:[%s23_s1] sm:$0xff] %v4_v0 }

// kernel: tile.24
= control target key start
LH: loop header
LB: loop body
LE: loop exit
PB: predicated region body
PF: predicated region fallthrough
CT: control target
= control target key end

     0   :  { %s67_s10 = smov 112   ;;  %s68_s11 = smov 80   ;;  %vm3_vm0 = vcmask 130048   ;;  %vm9_vm1 = vcmask 1048448   ;;  %vm15_vm2 = vcmask 917248   ;;  %vm21_vm3 = vcmask 786048   ;;  %s111_s0 = inlined_call_operand.vmem [shape: f32[8,16], index: 0, kind: input, shape index: {}]   ;;  %s112_s1 = inlined_call_operand.vmem [shape: f32[1,128], index: 1, kind: output, shape index: {}]  }
   0x1   :  { %v53_v0 = vld [vmem:[%s111_s0 + $0x7] sm:$0x1]   ;;  %v55_v1 = vld [vmem:[%s111_s0 + $0x5] sm:$0x1]   ;;  %v57_v2 = vld [vmem:[%s111_s0 + $0x3] sm:$0x1]  }
   0x2   :  { %7 = vrot.lane.b32.xlu0 %v53_v0, %s67_s10  ;;  %19 = vrot.lane.b32.xlu1 %v55_v1, %s68_s11  ;;  %s69_s14 = smov 48   ;;  %v54_v3 = vld [vmem:[%s111_s0 + $0x6] sm:$0x1]   ;;  %v56_v4 = vld [vmem:[%s111_s0 + $0x4] sm:$0x1]   ;;  %s70_s21 = smov 96  }
   0x3   :  { %31 = vrot.lane.b32.xlu2 %v57_v2, %s69_s14  ;;  %v58_v5 = vld [vmem:[%s111_s0 + $0x2] sm:$0x1]   ;;  %s71_s22 = smov 64   ;;  %s72_s23 = smov 32   ;;  %v59_v6 = vld [vmem:[%s111_s0 + $0x1] sm:$0x1]  }
   0x4   :  { %s73_s26 = smov 16   ;;  %v2_v7 = vld [vmem:[%s111_s0] sm:$0x1]   ;;  %vm27_vm4 = vcmask 654848   ;;  %vm33_vm5 = vcmask 523648   ;;  %vm39_vm6 = vcmask 392448  }
   0x5   :  { %4 = vst.msk [vmem:[#allocation0] sm:$0x1] %vm3_vm0, %v2_v7   ;;  %vm45_vm7 = vcmask 261248  }
   0xa   :  { %13 = vrot.lane.b32.xlu0 %v54_v3, %s70_s21  ;;  %25 = vrot.lane.b32.xlu1 %v56_v4, %s71_s22 }
   0xb   :  { %37 = vrot.lane.b32.xlu2 %v58_v5, %s72_s23 }
  0x12   :  { %43 = vrot.lane.b32.xlu0 %v59_v6, %s73_s26 }
  0x5d   :  { %v32_v8 = vpop.permute.xlu2 %31  }
  0x65   :  { %v38_v9 = vpop.permute.xlu2 %37  }
  0x74   :  { %v8_v10 = vpop.permute.xlu0 %7   ;;  %v20_v11 = vpop.permute.xlu1 %19  }
  0x75   :  { %10 = vst.msk [vmem:[#allocation0] sm:$0x1] %vm9_vm1, %v8_v10  }
  0x7c   :  { %v14_v12 = vpop.permute.xlu0 %13   ;;  %v26_v13 = vpop.permute.xlu1 %25  }
  0x7d   :  { %16 = vst.msk [vmem:[#allocation0] sm:$0x1] %vm15_vm2, %v14_v12  }
  0x7e   :  { %22 = vst.msk [vmem:[#allocation0] sm:$0x1] %vm21_vm3, %v20_v11  }
  0x7f   :  { %28 = vst.msk [vmem:[#allocation0] sm:$0x1] %vm27_vm4, %v26_v13  }
  0x80   :  { %34 = vst.msk [vmem:[#allocation0] sm:$0x1] %vm33_vm5, %v32_v8  }
  0x81   :  { %40 = vst.msk [vmem:[#allocation0] sm:$0x1] %vm39_vm6, %v38_v9  }
  0x84   :  { %v44_v14 = vpop.permute.xlu0 %43  }
  0x85   :  { %46 = vst.msk [vmem:[#allocation0] sm:$0x1] %vm45_vm7, %v44_v14  }
  0x8c   :  { %v49_v15 = vld [vmem:[#allocation0] sm:$0x1] }
  0x8d   :  { %52 = vst [vmem:[%s112_s1] sm:$0x1] %v49_v15 }

// kernel: rhnet_fpn_forward.19
= control target key start
LH: loop header
LB: loop body
LE: loop exit
PB: predicated region body
PF: predicated region fallthrough
CT: control target
= control target key end

     0   :  { %vm71_vm0 = vcmask 523264   ;;  %v97_v5 = vlaneseq  ;;  %vm93_vm2 = vcmask 519168   ;;  %v191_v12 = vmov 0.0   ;;  %s249_s1 = inlined_call_operand.vmem [shape: bf16[1,64,64], index: 1, kind: input, shape index: {}]   ;;  %s250_s2 = inlined_call_operand.vmem [shape: f32[1,1,64], index: 2, kind: input, shape index: {}]   ;;  %s251_s0 = inlined_call_operand.vmem [shape: bf16[1,16,64], index: 0, kind: input, shape index: {}]   ;;  %s252_s3 = inlined_call_operand.vmem [shape: bf16[1,16,64], index: 3, kind: output, shape index: {0}]   ;;  %s253_s4 = inlined_call_operand.vmem [shape: f32[1,2,64], index: 4, kind: output, shape index: {1}]  }
   0x1   :  { %v188_v0 = vld [vmem:[%s249_s1 + $0x18] sm:$0xff]  ;;  %v187_v1 = vld [vmem:[%s249_s1 + $0x10] sm:$0xff]  ;;  %v186_v2 = vld [vmem:[%s249_s1 + $0x8] sm:$0xff]  ;;  %vm131_vm3 = vcmask 1040384   ;;  %vm133_vm4 = vcmask 517120  }
   0x2   :  { %79 = vmatpush.bf16.msra.mxu0 %v188_v0  ;;  %v185_v3 = vld [vmem:[%s249_s1] sm:$0xff]  ;;  %v98_v7 = vshrl.u32 %v97_v5, 7 }
   0x3   :  { %v184_v4 = vld [vmem:[%s251_s0] sm:$0xff] }
   0x4   :  { %v190_v6 = vld [vmem:[%s250_s2] ss:$0 sm:$0xff]  ;;  %vm103_vm1 = vcmp.lt.s32.totalorder %v98_v7, 2 }
   0x5   :  { %v183_v13 = vsel %vm103_vm1, 1.0, %v191_v12 }
   0x6   :  { %80 = vmatpush.bf16.msra.mxu0 %v187_v1 }
   0xa   :  { %81 = vmatpush.bf16.msra.mxu0 %v186_v2 }
   0xe   :  { %82 = vmatpush.bf16.msra.mxu0 %v185_v3 }
  0x11   :  { %182 = vmatmul.msk.bf16.vlgmr.msra.gmra.mxu0 %vm71_vm0, %v184_v4 }
  0x8e   :  { %v84_v8 = vpop.f32.mrf.mxu0 }
  0x8f   :  { %v85_v9 = vadd.f32 %v190_v6, %v84_v8 }
  0x91   :  { %v89_v10 = vmax.f32 %v85_v9, 0.0 }
  0x93   :  { %v91_v11 = vpack.c.bf16 %v89_v10, %v89_v10  ;;  %v109_v15 = vmul.f32 %v183_v13, %v89_v10 }
  0x95   :  { %94 = vst.msk [vmem:[%s252_s3] sm:$0xf] %vm93_vm2, %v91_v11  ;;  %v120_v18 = vmul.f32 %v109_v15, %v109_v15  ;;  %v111_v21 = vsel %vm71_vm0, %v109_v15, 0.0 }
  0x96   :  { %v86_v14 = vpop.f32.mrf.mxu0 }
  0x97   :  { %v87_v16 = vadd.f32 %v190_v6, %v86_v14  ;;  %v122_v25 = vsel %vm71_vm0, %v120_v18, 0.0 }
  0x99   :  { %v90_v17 = vmax.f32 %v87_v16, 0.0 }
  0x9b   :  { %v92_v19 = vpack.c.bf16 %v90_v17, %v90_v17  ;;  %v110_v20 = vmul.f32 0.0, %v90_v17 }
  0x9d   :  { %95 = vst.msk [vmem:[%s252_s3 + $0x4] sm:$0xf] %vm93_vm2, %v92_v19  ;;  %v112_v22 = vsel %vm71_vm0, %v110_v20, 0.0  ;;  %v121_v23 = vmul.f32 %v110_v20, %v110_v20 }
  0x9e   :  { %v113_v24 = vadd.f32 %v112_v22, %v111_v21 }
  0x9f   :  { %v123_v26 = vsel %vm71_vm0, %v121_v23, 0.0 }
  0xa0   :  { %v114_v27 = vrot.slane %v113_v24, 4  ;;  %v124_v28 = vadd.f32 %v123_v26, %v122_v25 }
  0xa2   :  { %v115_v29 = vadd.f32 %v114_v27, %v113_v24  ;;  %v125_v30 = vrot.slane %v124_v28, 4 }
  0xa4   :  { %v116_v31 = vrot.slane %v115_v29, 2  ;;  %v126_v32 = vadd.f32 %v125_v30, %v124_v28 }
  0xa6   :  { %v117_v33 = vadd.f32 %v116_v31, %v115_v29  ;;  %v127_v34 = vrot.slane %v126_v32, 2 }
  0xa8   :  { %v118_v35 = vrot.slane %v117_v33, 1  ;;  %v128_v36 = vadd.f32 %v127_v34, %v126_v32 }
  0xaa   :  { %v129_v37 = vrot.slane %v128_v36, 1  ;;  %v119_v38 = vadd.f32 %v118_v35, %v117_v33 }
  0xac   :  { %v130_v39 = vadd.f32 %v129_v37, %v128_v36 }
  0xae   :  { %v132_v40 = vsel %vm131_vm3, %v119_v38, %v130_v39 }
  0xaf   :  { %134 = vst.msk [vmem:[%s253_s4] sm:$0x3] %vm133_vm4, %v132_v40 }

// kernel: rhnet_fpn_forward.20
= control target key start
LH: loop header
LB: loop body
LE: loop exit
PB: predicated region body
PF: predicated region fallthrough
CT: control target
= control target key end

     0   :  { %s101_s0 = inlined_call_operand.vmem [shape: bf16[16,128], index: 0, kind: input, shape index: {}]   ;;  %s102_s1 = inlined_call_operand.vmem [shape: f32[1,128], index: 1, kind: input, shape index: {}]   ;;  %s103_s2 = inlined_call_operand.vmem [shape: f32[1,128], index: 2, kind: input, shape index: {}]   ;;  %s104_s3 = inlined_call_operand.vmem [shape: f32[16,128], index: 3, kind: input, shape index: {}]   ;;  %s105_s4 = inlined_call_operand.vmem [shape: bf16[16,128], index: 4, kind: output, shape index: {}]  }
   0x1   :  { %v48_v0 = vld [vmem:[%s101_s0] sm:$0xff]   ;;  %v22_v10 = vld [vmem:[%s104_s3 + $0x8] sm:$0xff] }
   0x2   :  { %v49_v1 = vunpack.c.l.bf16 %v48_v0  ;;  %v50_v2 = vunpack.c.h.bf16 %v48_v0  ;;  %v56_v3 = vld [vmem:[%s102_s1] ss:$0 sm:$0xff] }
   0x3   :  { %v57_v4 = vld [vmem:[%s103_s2] ss:$0 sm:$0xff] }
   0x4   :  { %v27_v5 = vmul.f32 %v56_v3, %v49_v1  ;;  %v28_v6 = vmul.f32 %v56_v3, %v50_v2  ;;  %v21_v9 = vld [vmem:[%s104_s3] sm:$0xff] }
   0x6   :  { %v33_v7 = vadd.f32 %v57_v4, %v27_v5  ;;  %v34_v8 = vadd.f32 %v57_v4, %v28_v6 }
   0x8   :  { %v35_v11 = vmul.f32 0.5, %v33_v7  ;;  %v36_v12 = vmul.f32 0.5, %v34_v8 }
   0xa   :  { %v37_v13 = vadd.f32 %v35_v11, %v21_v9  ;;  %v38_v14 = vadd.f32 %v36_v12, %v22_v10 }
   0xc   :  { %v54_v15 = vpack.c.bf16 %v38_v14, %v37_v13 }
   0xe   :  { %55 = vst [vmem:[%s105_s4] sm:$0xff] %v54_v15  }

// kernel: rhnet_fpn_forward.21
= control target key start
LH: loop header
LB: loop body
LE: loop exit
PB: predicated region body
PF: predicated region fallthrough
CT: control target
= control target key end

     0   :  { %vm115_vm0 = vcmask 130048   ;;  %vm151_vm1 = vcmask 257024   ;;  %vm169_vm2 = vcmask 261120   ;;  %vm190_vm3 = vcmask 1040384   ;;  %s354_s1 = inlined_call_operand.vmem [shape: bf16[1,144,32], index: 1, kind: input, shape index: {}]   ;;  %s355_s0 = inlined_call_operand.vmem [shape: bf16[1,16,144], index: 0, kind: input, shape index: {}]   ;;  %s356_s2 = inlined_call_operand.vmem [shape: f32[1,1,32], index: 2, kind: input, shape index: {}]   ;;  %s357_s3 = inlined_call_operand.vmem [shape: bf16[1,16,32], index: 3, kind: output, shape index: {0}]   ;;  %s358_s4 = inlined_call_operand.vmem [shape: f32[1,2,32], index: 4, kind: output, shape index: {1}]  }
   0x1   :  { %v275_v0 = vld [vmem:[%s354_s1 + $0x38] sm:$0xff]  ;;  %v274_v1 = vld [vmem:[%s354_s1 + $0x30] sm:$0xff]  ;;  %v276_v2 = vld [vmem:[%s354_s1 + $0x40] sm:$0xff]  ;;  %vm192_vm4 = vcmask 254976  }
   0x2   :  { %119 = vmatpush.bf16.msra.mxu0 %v275_v0  ;;  %v266_v3 = vld [vmem:[%s355_s0 + $0x4] sm:$0xf]  ;;  %v225_v4 = vld [vmem:[%s355_s0 + $0x8] sm:$0xf0]  ;;  %140 = vmatpush.bf16.msra.mxu1 %v276_v2  ;;  %v271_v8 = vld [vmem:[%s354_s1 + $0x18] sm:$0xff] }
   0x3   :  { %v228_v5 = vor.u32 %v266_v3, %v225_v4  ;;  %v273_v6 = vld [vmem:[%s354_s1 + $0x28] sm:$0xff]  ;;  %v272_v7 = vld [vmem:[%s354_s1 + $0x20] sm:$0xff]  ;;  %v270_v9 = vld [vmem:[%s354_s1 + $0x10] sm:$0xff] }
   0x4   :  { %v269_v10 = vld [vmem:[%s354_s1 + $0x8] sm:$0xff]  ;;  %v268_v11 = vld [vmem:[%s354_s1] sm:$0xff] }
   0x5   :  { %265 = vmatmul.msk.bf16.vlgmr.msra.gmra.mxu1 %vm115_vm0, %v228_v5  ;;  %v223_v12 = vld [vmem:[%s355_s0] sm:$0xf]  ;;  %v267_v13 = vld [vmem:[%s355_s0 + $0x4] sm:$0xf0] }
   0x6   :  { %120 = vmatpush.bf16.msra.mxu0 %v274_v1  ;;  %v224_v14 = vor.u32 %v267_v13, %v223_v12  ;;  %v277_v15 = vld [vmem:[%s356_s2] ss:$0 sm:$0xff] }
   0xa   :  { %121 = vmatpush.bf16.msra.mxu0 %v273_v6 }
   0xe   :  { %122 = vmatpush.bf16.msra.mxu0 %v272_v7 }
  0x12   :  { %123 = vmatpush.bf16.msra.mxu0 %v271_v8 }
  0x16   :  { %124 = vmatpush.bf16.msra.mxu0 %v270_v9 }
  0x1a   :  { %125 = vmatpush.bf16.msra.mxu0 %v269_v10 }
  0x1e   :  { %126 = vmatpush.bf16.msra.mxu0 %v268_v11 }
  0x21   :  { %127 = vmatmul.bf16.vlgmr.msra.gmra.mxu0 %v224_v14 }
  0x82   :  { %v142_v16 = vpop.f32.mrf.mxu1 }
  0x8a   :  { %v144_v24 = vpop.f32.mrf.mxu1 }
  0x9e   :  { %v128_v17 = vpop.f32.mrf.mxu0 }
  0x9f   :  { %v129_v18 = vadd.f32 %v277_v15, %v128_v17 }
  0xa1   :  { %v143_v19 = vadd.f32 %v142_v16, %v129_v18 }
  0xa3   :  { %v147_v20 = vmax.f32 %v143_v19, 0.0 }
  0xa5   :  { %v149_v21 = vpack.c.bf16 %v147_v20, %v147_v20  ;;  %v179_v27 = vmul.f32 %v147_v20, %v147_v20  ;;  %v170_v30 = vsel %vm169_vm2, %v147_v20, 0.0 }
  0xa6   :  { %v130_v22 = vpop.f32.mrf.mxu0 }
  0xa7   :  { %v131_v23 = vadd.f32 %v277_v15, %v130_v22  ;;  %152 = vst.msk [vmem:[%s357_s3] sm:$0xf] %vm151_vm1, %v149_v21  ;;  %v181_v34 = vsel %vm169_vm2, %v179_v27, 0.0 }
  0xa9   :  { %v145_v25 = vadd.f32 %v144_v24, %v131_v23 }
  0xab   :  { %v148_v26 = vmax.f32 %v145_v25, 0.0 }
  0xad   :  { %v150_v28 = vpack.c.bf16 %v148_v26, %v148_v26  ;;  %v168_v29 = vmul.f32 0.0, %v148_v26 }
  0xaf   :  { %153 = vst.msk [vmem:[%s357_s3 + $0x4] sm:$0xf] %vm151_vm1, %v150_v28  ;;  %v171_v31 = vsel %vm169_vm2, %v168_v29, 0.0  ;;  %v180_v32 = vmul.f32 %v168_v29, %v168_v29 }
  0xb0   :  { %v172_v33 = vadd.f32 %v171_v31, %v170_v30 }
  0xb1   :  { %v182_v35 = vsel %vm169_vm2, %v180_v32, 0.0 }
  0xb2   :  { %v173_v36 = vrot.slane %v172_v33, 4  ;;  %v183_v37 = vadd.f32 %v182_v35, %v181_v34 }
  0xb4   :  { %v174_v38 = vadd.f32 %v173_v36, %v172_v33  ;;  %v184_v39 = vrot.slane %v183_v37, 4 }
  0xb6   :  { %v175_v40 = vrot.slane %v174_v38, 2  ;;  %v185_v41 = vadd.f32 %v184_v39, %v183_v37 }
  0xb8   :  { %v176_v42 = vadd.f32 %v175_v40, %v174_v38  ;;  %v186_v43 = vrot.slane %v185_v41, 2 }
  0xba   :  { %v177_v44 = vrot.slane %v176_v42, 1  ;;  %v187_v45 = vadd.f32 %v186_v43, %v185_v41 }
  0xbc   :  { %v188_v46 = vrot.slane %v187_v45, 1  ;;  %v178_v47 = vadd.f32 %v177_v44, %v176_v42 }
  0xbe   :  { %v189_v48 = vadd.f32 %v188_v46, %v187_v45 }
  0xc0   :  { %v191_v49 = vsel %vm190_vm3, %v178_v47, %v189_v48 }
  0xc1   :  { %193 = vst.msk [vmem:[%s358_s4] sm:$0x3] %vm192_vm4, %v191_v49 }

// kernel: rhnet_fpn_forward.22
= control target key start
LH: loop header
LB: loop body
LE: loop exit
PB: predicated region body
PF: predicated region fallthrough
CT: control target
= control target key end

     0   :  { %s748_s15 = smov 0   ;;  %s750_s16 = smov 0   ;;  %s797_s0 = inlined_call_operand.vmem [shape: bf16[2,16,144], index: 0, kind: input, shape index: {}]   ;;  %s798_s1 = inlined_call_operand.vmem [shape: bf16[2,144,8], index: 1, kind: input, shape index: {}]   ;;  %s799_s2 = inlined_call_operand.vmem [shape: f32[2,1,8], index: 2, kind: input, shape index: {}]   ;;  %s800_s3 = inlined_call_operand.vmem [shape: bf16[2,16,8], index: 3, kind: output, shape index: {0}]   ;;  %s801_s4 = inlined_call_operand.vmem [shape: f32[2,2,8], index: 4, kind: output, shape index: {1}]  }
   0x1   :  { %s752_s17 = smov 0  }
   0x2 LB: > { %s27_s18 = sadd.s32 1, %s717_s16  ;;  %p606_p0 = scmp.ge.s32.totalorder %s721_s17, 1  ;;  %s721_s17 = sphi %s752_s17, %s15_s17   ;;  %s717_s16 = sphi %s750_s16, %s803_s16   ;;  %s713_s15 = sphi %s748_s15, %s802_s15  }
   0x3   : > { %p29_p1 = scmp.ge.s32.totalorder %s27_s18, 2  ;;  %p207_p2 = scmp.lt.s32.totalorder %s721_s17, 3 }
   0x5   : > { %s805_s18 = smov (%p29_p1, %s27_s18), 0  ;;  %p208_p3 = pnand %p606_p0, %p207_p2 }
   0x6   : > { %p256_p4 = scmp.lt.s32.totalorder (!%p208_p3), %s713_s15, 1 }
   0x7   : > { %211 = sbr.rel (%p208_p3) target bundleno = 209 (0xd1), region = 32 }
   0xc   : > { %s807_s15 = smov (!%p256_p4, %s713_s15), 1  ;;  %vm378_vm0 = vcmask 130048   ;;  %vm414_vm1 = vcmask 60416   ;;  %vm432_vm2 = vcmask 64512   ;;  %vm453_vm3 = vcmask 1040384  }
   0xd   : > { %s673_s19 = smul.u32 72, %s807_s15  ;;  %s660_s20 = sshll.u32 %s807_s15, 4  ;;  %vm455_vm4 = vcmask 58368  }
   0xe   : > { %s264_s23 = scalar_lea.vmem %s797_s0, %s660_s20  ;;  %s273_s29 = scalar_lea.vmem %s799_s2, %s807_s15 }
   0xf   : > { %s270_s26 = scalar_lea.vmem %s798_s1, %s673_s19  ;;  %v662_v1 = vld [vmem:[%s264_s23 + $0x4] sm:$0xf]  ;;  %v617_v2 = vld [vmem:[%s264_s23 + $0x8] sm:$0xf0]  ;;  %v615_v12 = vld [vmem:[%s264_s23] sm:$0xf] }
  0x10   : > { %v671_v0 = vld [vmem:[%s270_s26 + $0x38] sm:$0xff]  ;;  %v670_v3 = vld [vmem:[%s270_s26 + $0x30] sm:$0xff]  ;;  %v672_v4 = vld [vmem:[%s270_s26 + $0x40] sm:$0xff]  ;;  %v620_v5 = vor.u32 %v662_v1, %v617_v2  ;;  %s661_s30 = sshll.u32 %s807_s15, 3  ;;  %s612_s8 = sshll.u32 %s807_s15, 1 }
  0x11   : > { %382 = vmatpush.bf16.msra.mxu0 %v671_v0  ;;  %403 = vmatpush.bf16.msra.mxu1 %v672_v4  ;;  %v669_v6 = vld [vmem:[%s270_s26 + $0x28] sm:$0xff]  ;;  %v668_v7 = vld [vmem:[%s270_s26 + $0x20] sm:$0xff]  ;;  %v667_v8 = vld [vmem:[%s270_s26 + $0x18] sm:$0xff]  ;;  %s282_s7 = scalar_lea.vmem %s800_s3, %s661_s30  ;;  %s288_s11 = scalar_lea.vmem %s801_s4, %s612_s8 }
  0x12   : > { %v666_v9 = vld [vmem:[%s270_s26 + $0x10] sm:$0xff]  ;;  %v665_v10 = vld [vmem:[%s270_s26 + $0x8] sm:$0xff]  ;;  %v664_v11 = vld [vmem:[%s270_s26] sm:$0xff] }
  0x13   : > { %v663_v13 = vld [vmem:[%s264_s23 + $0x4] sm:$0xf0]  ;;  %v698_v15 = vld [vmem:[%s273_s29] ss:$0 sm:$0xff] }
  0x14   : > { %657 = vmatmul.msk.bf16.vlgmr.msra.gmra.mxu1 %vm378_vm0, %v620_v5  ;;  %v616_v14 = vor.u32 %v663_v13, %v615_v12 }
  0x15   : > { %383 = vmatpush.bf16.msra.mxu0 %v670_v3 }
  0x19   : > { %384 = vmatpush.bf16.msra.mxu0 %v669_v6 }
  0x1d   : > { %385 = vmatpush.bf16.msra.mxu0 %v668_v7 }
  0x21   : > { %386 = vmatpush.bf16.msra.mxu0 %v667_v8 }
  0x25   : > { %387 = vmatpush.bf16.msra.mxu0 %v666_v9 }
  0x29   : > { %388 = vmatpush.bf16.msra.mxu0 %v665_v10 }
  0x2d   : > { %389 = vmatpush.bf16.msra.mxu0 %v664_v11 }
  0x30   : > { %390 = vmatmul.bf16.vlgmr.msra.gmra.mxu0 %v616_v14 }
  0x91   : > { %v405_v16 = vpop.f32.mrf.mxu1 }
  0x99   : > { %v407_v24 = vpop.f32.mrf.mxu1 }
  0xad   : > { %v391_v17 = vpop.f32.mrf.mxu0 }
  0xae   : > { %v392_v18 = vadd.f32 %v698_v15, %v391_v17 }
  0xb0   : > { %v406_v19 = vadd.f32 %v405_v16, %v392_v18 }
  0xb2   : > { %v410_v20 = vmax.f32 %v406_v19, 0.0 }
  0xb4   : > { %v412_v21 = vpack.c.bf16 %v410_v20, %v410_v20  ;;  %v442_v27 = vmul.f32 %v410_v20, %v410_v20  ;;  %v433_v30 = vsel %vm432_vm2, %v410_v20, 0.0 }
  0xb5   : > { %v393_v22 = vpop.f32.mrf.mxu0 }
  0xb6   : > { %v394_v23 = vadd.f32 %v698_v15, %v393_v22  ;;  %415 = vst.msk [vmem:[%s282_s7] sm:$0xf] %vm414_vm1, %v412_v21  ;;  %v444_v34 = vsel %vm432_vm2, %v442_v27, 0.0 }
  0xb8   : > { %v408_v25 = vadd.f32 %v407_v24, %v394_v23 }
  0xba   : > { %v411_v26 = vmax.f32 %v408_v25, 0.0 }
  0xbc   : > { %v413_v28 = vpack.c.bf16 %v411_v26, %v411_v26  ;;  %v431_v29 = vmul.f32 0.0, %v411_v26 }
  0xbe   : > { %416 = vst.msk [vmem:[%s282_s7 + $0x4] sm:$0xf] %vm414_vm1, %v413_v28  ;;  %v434_v31 = vsel %vm432_vm2, %v431_v29, 0.0  ;;  %v443_v32 = vmul.f32 %v431_v29, %v431_v29 }
  0xbf   : > { %v435_v33 = vadd.f32 %v434_v31, %v433_v30 }
  0xc0   : > { %v445_v35 = vsel %vm432_vm2, %v443_v32, 0.0 }
  0xc1   : > { %v436_v36 = vrot.slane %v435_v33, 4  ;;  %v446_v37 = vadd.f32 %v445_v35, %v444_v34 }
  0xc3   : > { %v437_v38 = vadd.f32 %v436_v36, %v435_v33  ;;  %v447_v39 = vrot.slane %v446_v37, 4 }
  0xc5   : > { %v438_v40 = vrot.slane %v437_v38, 2  ;;  %v448_v41 = vadd.f32 %v447_v39, %v446_v37 }
  0xc7   : > { %v439_v42 = vadd.f32 %v438_v40, %v437_v38  ;;  %v449_v43 = vrot.slane %v448_v41, 2 }
  0xc9   : > { %v440_v44 = vrot.slane %v439_v42, 1  ;;  %v450_v45 = vadd.f32 %v449_v43, %v448_v41 }
  0xcb   : > { %v451_v46 = vrot.slane %v450_v45, 1  ;;  %v441_v47 = vadd.f32 %v440_v44, %v439_v42 }
  0xcd   : > { %v452_v48 = vadd.f32 %v451_v46, %v450_v45 }
  0xcf   : > { %v454_v49 = vsel %vm453_vm3, %v441_v47, %v452_v48 }
  0xd0   : > { %456 = vst.msk [vmem:[%s288_s11] sm:$0x3] %vm455_vm4, %v454_v49 }
  0xd1 PF: > { %s15_s17 = sadd.s32 1, %s721_s17   ;;  %s802_s15 = smov %s717_s16 }
  0xd2   : > { %p12_p5 = scmp.ge.s32.totalorder %s15_s17, 4   ;;  %s803_s16 = smov %s805_s18 }
  0xd4   :  { %14 = sbr.rel (!%p12_p5) target bundleno = 2 (0x2), region = 80 }

// kernel: rhnet_fpn_forward.23
= control target key start
LH: loop header
LB: loop body
LE: loop exit
PB: predicated region body
PF: predicated region fallthrough
CT: control target
= control target key end

     0   :  { %s535_s12 = smov 0   ;;  %s537_s13 = smov 0   ;;  %s574_s0 = inlined_call_operand.vmem [shape: bf16[2,16,72], index: 0, kind: input, shape index: {}]   ;;  %s575_s1 = inlined_call_operand.vmem [shape: bf16[2,72,2], index: 1, kind: input, shape index: {}]   ;;  %s576_s2 = inlined_call_operand.vmem [shape: f32[2,1,2], index: 2, kind: input, shape index: {}]   ;;  %s577_s3 = inlined_call_operand.vmem [shape: f32[2,16,2], index: 3, kind: output, shape index: {}]  }
   0x1   :  { %s539_s14 = smov 0  }
   0x2 LB: > { %s25_s15 = sadd.s32 1, %s509_s13  ;;  %p429_p0 = scmp.ge.s32.totalorder %s513_s14, 1  ;;  %s513_s14 = sphi %s539_s14, %s13_s14   ;;  %s509_s13 = sphi %s537_s13, %s579_s13   ;;  %s505_s12 = sphi %s535_s12, %s578_s12  }
   0x3   : > { %p27_p1 = scmp.ge.s32.totalorder %s25_s15, 2  ;;  %p176_p2 = scmp.lt.s32.totalorder %s513_s14, 3 }
   0x5   : > { %s581_s15 = smov (%p27_p1, %s25_s15), 0  ;;  %p177_p3 = pnand %p429_p0, %p176_p2 }
   0x6   : > { %p217_p4 = scmp.lt.s32.totalorder (!%p177_p3), %s505_s12, 1 }
   0x7   : > { %180 = sbr.rel (%p177_p3) target bundleno = 178 (0xb2), region = 32 }
   0xc   : > { %s583_s12 = smov (!%p217_p4, %s505_s12), 1  ;;  %vm296_vm0 = vcmask 1043456   ;;  %vm292_vm1 = vcmask 588800   ;;  %vm314_vm2 = vcmask 15360  }
   0xd   : > { %s465_s16 = smul.u32 36, %s583_s12  ;;  %s233_s19 = scalar_lea.vmem %s576_s2, %s583_s12 }
   0xe   : > { %s458_s23 = sshll.u32 %s583_s12, 3  ;;  %s459_s27 = sshll.u32 %s583_s12, 4  ;;  %v490_v9 = vld [vmem:[%s233_s19] ss:$0 sm:$0xff] }
   0xf   : > { %s230_s22 = scalar_lea.vmem %s575_s1, %s465_s16  ;;  %s224_s26 = scalar_lea.vmem %s574_s0, %s458_s23 }
  0x10   : > { %v255_v0 = vld [vmem:[%s230_s22 + $0x20] sm:$0xf]  ;;  %v464_v4 = vld [vmem:[%s230_s22 + $0x18] sm:$0xff]  ;;  %v463_v5 = vld [vmem:[%s230_s22 + $0x10] sm:$0xff]  ;;  %s242_s30 = scalar_lea.vmem %s577_s3, %s459_s27 }
  0x11   : > { %v282_v1 = vunpack.c.l.b16 %v255_v0  ;;  %v462_v6 = vld [vmem:[%s230_s22 + $0x8] sm:$0xff]  ;;  %v461_v7 = vld [vmem:[%s230_s22] sm:$0xff] }
  0x12   : > { %v460_v8 = vld [vmem:[%s224_s26] sm:$0xff] }
  0x13   : > { %v287_v2 = vpack.c.b16 %v282_v1, %v282_v1 }
  0x15   : > { %v298_v3 = vsel %vm296_vm0, %v287_v2, 0 }
  0x16   : > { %303 = vmatpush.bf16.msra.mxu0 %v298_v3 }
  0x1a   : > { %304 = vmatpush.bf16.msra.mxu0 %v464_v4 }
  0x1e   : > { %305 = vmatpush.bf16.msra.mxu0 %v463_v5 }
  0x22   : > { %306 = vmatpush.bf16.msra.mxu0 %v462_v6 }
  0x26   : > { %307 = vmatpush.bf16.msra.mxu0 %v461_v7 }
  0x29   : > { %455 = vmatmul.msk.bf16.vlgmr.msra.gmra.mxu0 %vm292_vm1, %v460_v8 }
  0xa6   : > { %v309_v10 = vpop.f32.mrf.mxu0 }
  0xa7   : > { %v310_v11 = vadd.f32 %v490_v9, %v309_v10 }
  0xa9   : > { %315 = vst.msk [vmem:[%s242_s30] sm:$0xff] %vm314_vm2, %v310_v11 }
  0xae   : > { %v311_v12 = vpop.f32.mrf.mxu0 }
  0xaf   : > { %v312_v13 = vadd.f32 %v490_v9, %v311_v12 }
  0xb1   : > { %316 = vst.msk [vmem:[%s242_s30 + $0x8] sm:$0xff] %vm314_vm2, %v312_v13 }
  0xb2 PF: > { %s13_s14 = sadd.s32 1, %s513_s14   ;;  %s578_s12 = smov %s509_s13 }
  0xb3   : > { %p10_p5 = scmp.ge.s32.totalorder %s13_s14, 4   ;;  %s579_s13 = smov %s581_s15 }
  0xb5   :  { %12 = sbr.rel (!%p10_p5) target bundleno = 2 (0x2), region = 68 }

</bundles_post_ra>
